<compile_context>
chip_gen: v6e
topology: v6e:2x2x1
jax: 0.10.0
libtpu: 0.0.40
codegen_flags: <defaults>
</compile_context>

<pallas_src>
import math

import jax
import jax.numpy as jnp
from jax import lax
from jax.experimental import pallas as pl
from jax.experimental.pallas import tpu as pltpu

KERNEL_SIZE = 3
BN_EPS = 1e-5


def _layer_meta(seq_len, num_layers):
    """Per-layer (dilation, Lin, Lout), exactly like the PyTorch dummy-input probe."""
    meta = []
    L = seq_len
    for i in range(num_layers):
        d = 2 ** i
        Lout = L + 2 * d          # Lin + 2*pad - d*(K-1), pad=(K-1)*d=2d, K=3
        meta.append((d, L, Lout))
        L = Lout
    return meta, L


def _round_up(v, m):
    return ((v + m - 1) // m) * m


def _make_fused_kernel(B, S, H, num_layers, layer_meta, Lf, Lmax, proj_dim, compute_dtype):
    K = KERNEL_SIZE
    rows = Lmax * B                      # activation rows: r = l*B + b (l-major, batch-minor)
    n_in = 1 + 4 * num_layers + 8        # x, per-layer (wcat,bias,scale,shift), proj/fusion/MLP

    def kernel(*refs):
        x_ref = refs[0]                                    # (S, Lmax*B, F), zero rows for l>=L0
        layer_refs = refs[1:1 + 4 * num_layers]            # per layer: wcat, bias, scale, shift
        (pw_ref, pb_ref, fw_ref, fb_ref,
         p1w_ref, p1b_ref, p2w_ref, p2b_ref) = refs[1 + 4 * num_layers:n_in]
        o_ref = refs[n_in]                                 # (B, proj_dim)

        row_iota = lax.broadcasted_iota(jnp.int32, (rows, H), 0)

        def mm(a, b):
            # MXU matmul; operands optionally cast to bf16 on v6e/v7x, f32 accumulation.
            return jnp.dot(a.astype(compute_dtype), b.astype(compute_dtype),
                           preferred_element_type=jnp.float32)

        embs = []
        for s in range(S):                                 # static unroll over sensors
            h = x_ref[s].astype(jnp.float32)               # (rows, F); rows l>=L0 are zero
            for i, (d, Lin, Lout) in enumerate(layer_meta):
                wcat = layer_refs[4 * i][s]                # (Cin, K*H): tap-k block = cols kH..(k+1)H
                bias = layer_refs[4 * i + 1][s]            # (1, H)
                scale = layer_refs[4 * i + 2][s]           # (1, H) BN eval scale
                shift = layer_refs[4 * i + 3][s]           # (1, H) BN eval shift

                # One MXU matmul for all K taps of this layer (all B batch rows at once).
                hw = mm(h, wcat)                           # (rows, K*H)

                # Align tap k by a circular down-shift of (K-1-k)*d positions (= off*B rows).
                # pltpu.roll follows jnp.roll semantics: out[r] = in[r - shift].  The rows that
                # wrap around come from l >= Lin, which are exactly zero (invariant), so this is
                # identical to the zero-padded dilated conv.
                y = None
                for k in range(K):
                    blk = hw[:, k * H:(k + 1) * H]         # (rows, H)
                    off = (K - 1 - k) * d * B
                    if off:
                        blk = pltpu.roll(blk, off, 0)
                    y = blk if y is None else y + blk

                y = jnp.maximum(y + bias, 0.0)             # conv bias + ReLU
                y = y * scale + shift                      # BatchNorm1d (eval running stats)
                # TODO(synk): Dropout after BN is identity in eval mode (no mask).
                # Re-establish the zero-tail invariant (rows with l >= Lout set to 0).
                h = jnp.where(row_iota < Lout * B, y, 0.0)

            # Per-sensor projection: Linear(flatten(conv_out)).  Computed register-resident as
            # emb = sum_l h[l] @ Wp[l] (Wp stored per-position at init; equals the PyTorch
            # channel-major flatten + Linear for freshly initialized weights).
            acc = None
            for l in range(Lf):
                blk = h[l * B:(l + 1) * B, :]              # (B, H) rows of position l
                c = mm(blk, pw_ref[s, l])                  # (B, H)
                acc = c if acc is None else acc + c
            embs.append(acc + pb_ref[s])                   # (B, H)

        # Fusion linear on the concatenated embeddings, computed without a concat:
        # concat(embs) @ W == sum_s emb_s @ W[s*H:(s+1)*H, :].
        z = None
        for s in range(S):
            t = mm(embs[s], fw_ref[s])                     # (B, 128)
            z = t if z is None else z + t
        z = jnp.maximum(z + fb_ref[...], 0.0)              # fusion Linear + ReLU (Dropout=id)
        z = jnp.maximum(mm(z, p1w_ref[...]) + p1b_ref[...], 0.0)
        out = mm(z, p2w_ref[...]) + p2b_ref[...]           # (B, proj_dim)
        o_ref[...] = out.astype(o_ref.dtype)               # single dense output store

    return kernel


def multimodal_forward(params, cfg, x):
    B = x.shape[0]
    S, H, NL = cfg["S"], cfg["H"], cfg["NL"]
    Lf, Lmax, PD, L0 = cfg["Lf"], cfg["Lmax"], cfg["PD"], cfg["L0"]
    meta = cfg["meta"]
    F = x.shape[-1]
    compute_dtype = cfg.get("compute_dtype", jnp.float32)

    # Lay the input out as (S, Lmax*B, F) with rows r = l*B + b and zero rows for l >= L0
    # (the zero tail is what makes the in-kernel circular tap shifts exact).
    xt = jnp.transpose(x, (1, 2, 0, 3))                    # (S, L0, B, F)
    if Lmax > L0:
        pad = jnp.zeros((S, Lmax - L0, B, F), x.dtype)
        xt = jnp.concatenate([xt, pad], axis=1)            # (S, Lmax, B, F)
    xp = xt.reshape(S, Lmax * B, F)

    kernel = _make_fused_kernel(B, S, H, NL, meta, Lf, Lmax, PD, compute_dtype)

    args = [xp]
    for lp in params["layers"]:
        args += [lp["wcat"], lp["bias"], lp["scale"], lp["shift"]]
    args += [params["proj_w"], params["proj_b"],
             params["fusion_w"], params["fusion_b"],
             params["proj1_w"], params["proj1_b"],
             params["proj2_w"], params["proj2_b"]]

    # Grid-less single invocation: all weights/activations fit comfortably in VMEM at these
    # sizes (< 0.5 MiB total).  For larger B on v7x, switch to grid=(B//Bblk,) over the batch
    # with dimension_semantics=("parallel",); for larger hidden_dim/seq_len, BlockSpec-tile
    # proj_w over its (Lf*H) contraction and raise vmem_limit_bytes.
    return pl.pallas_call(
        kernel,
        out_shape=jax.ShapeDtypeStruct((B, PD), jnp.float32),
    )(*args)


def init_params(key, num_sensors, max_feature_dim, hidden_dim, num_layers, seq_len, proj_dim):
    meta, Lf = _layer_meta(seq_len, num_layers)
    S, H, K = num_sensors, hidden_dim, KERNEL_SIZE

    def normal(k, shape, s=0.05):
        return jax.random.normal(k, shape, jnp.float32) * s

    params = {"layers": []}
    # Fresh BatchNorm1d eval stats: mean=0, var=1, gamma=1, beta=0.
    # (Trained running stats / affine params must be folded into scale/shift.)
    bn_scale = jnp.full((S, 1, H), 1.0 / math.sqrt(1.0 + BN_EPS), jnp.float32)
    bn_shift = jnp.zeros((S, 1, H), jnp.float32)
    for i, _ in enumerate(meta):
        cin = max_feature_dim if i == 0 else H
        key, k1, k2 = jax.random.split(key, 3)
        params["layers"].append({
            # wcat[:, k*H:(k+1)*H][c, o] corresponds to torch Conv1d weight[o, c, k].
            "wcat": normal(k1, (S, cin, K * H)),
            "bias": normal(k2, (S, 1, H)),
            "scale": bn_scale,
            "shift": bn_shift,
        })

    key, k1, k2, k3, k4, k5, k6, k7, k8 = jax.random.split(key, 9)
    # proj_w[s, l][c, j] corresponds to torch project.weight[j, c*Lf + l]
    # (per-position blocks of the channel-major flatten; equivalent for fresh init).
    params["proj_w"] = normal(k1, (S, Lf, H, H))
    params["proj_b"] = normal(k2, (S, 1, H))
    # fusion_w[s][c, j] corresponds to torch fusion[0].weight[j, s*H + c].
    params["fusion_w"] = normal(k3, (S, H, 128))
    params["fusion_b"] = normal(k4, (1, 128))
    params["proj1_w"] = normal(k5, (128, 128))
    params["proj1_b"] = normal(k6, (1, 128))
    params["proj2_w"] = normal(k7, (128, proj_dim))
    params["proj2_b"] = normal(k8, (1, proj_dim))
    return params, meta, Lf


if __name__ == "__main__":
    sensors = ["acc", "gyro"]
    sensor_dims = {"acc": 4, "gyro": 3}
    hp = dict(hidden_dim=32, tcn_layers=2, dropout_rate=0.1,
              sequence_length=16, proj_dim=16)
    max_feature_dim = max(sensor_dims.values())
    S = len(sensors)
    B = 2

    key = jax.random.PRNGKey(0)
    key, kx = jax.random.split(key)
    # inputs: (B, num_sensors, sequence_length, max_feature_dim) == inputs[:, i, :, :] in PyTorch
    x = jax.random.normal(kx, (B, S, hp["sequence_length"], max_feature_dim), jnp.float32)

    params, meta, Lf = init_params(key, S, max_feature_dim, hp["hidden_dim"],
                                   hp["tcn_layers"], hp["sequence_length"], hp["proj_dim"])
    Lmax = _round_up(Lf, 8)   # 8-aligned row blocks keep sublane rolls/matmuls tidy

    cfg = dict(S=S, H=hp["hidden_dim"], NL=hp["tcn_layers"], meta=tuple(meta),
               Lf=Lf, Lmax=Lmax, PD=hp["proj_dim"], L0=hp["sequence_length"],
               compute_dtype=jnp.float32)   # set jnp.bfloat16 on v6e/v7x for MXU-bound sizes

    @jax.jit
    def fwd(p, xx):
        return multimodal_forward(p, cfg, xx)

    out = jax.block_until_ready(fwd(params, x))
    assert out.shape == (B, hp["proj_dim"]), out.shape
    assert bool(jnp.all(jnp.isfinite(out)))
    print("KERNEL_OK")
</pallas_src>

<mosaic_0001>
module attributes {stable_mosaic.version = 11 : i64} {
  func.func @kernel(%arg0: memref<2x48x4xf32, #tpu.memory_space<vmem>>, %arg1: memref<2x4x96xf32, #tpu.memory_space<vmem>>, %arg2: memref<2x1x32xf32, #tpu.memory_space<vmem>>, %arg3: memref<2x1x32xf32, #tpu.memory_space<vmem>>, %arg4: memref<2x1x32xf32, #tpu.memory_space<vmem>>, %arg5: memref<2x32x96xf32, #tpu.memory_space<vmem>>, %arg6: memref<2x1x32xf32, #tpu.memory_space<vmem>>, %arg7: memref<2x1x32xf32, #tpu.memory_space<vmem>>, %arg8: memref<2x1x32xf32, #tpu.memory_space<vmem>>, %arg9: memref<2x22x32x32xf32, #tpu.memory_space<vmem>>, %arg10: memref<2x1x32xf32, #tpu.memory_space<vmem>>, %arg11: memref<2x32x128xf32, #tpu.memory_space<vmem>>, %arg12: memref<1x128xf32, #tpu.memory_space<vmem>>, %arg13: memref<128x128xf32, #tpu.memory_space<vmem>>, %arg14: memref<1x128xf32, #tpu.memory_space<vmem>>, %arg15: memref<128x16xf32, #tpu.memory_space<vmem>>, %arg16: memref<1x16xf32, #tpu.memory_space<vmem>>, %arg17: memref<2x16xf32, #tpu.memory_space<vmem>>) attributes {dimension_semantics = [], scalar_prefetch = 0 : i64, scratch_operands = 0 : i64, tpu.core_type = #tpu.core_type<tc>} {
    %0 = tpu.iota {dimensions = array<i32: 0>} : vector<48x32xi32>
    %c0 = arith.constant 0 : index
    %c0_0 = arith.constant 0 : index
    %c0_1 = arith.constant 0 : index
    %1 = vector.load %arg0[%c0, %c0_0, %c0_1] : memref<2x48x4xf32, #tpu.memory_space<vmem>>, vector<1x48x4xf32>
    %2 = vector.shape_cast %1 : vector<1x48x4xf32> to vector<48x4xf32>
    %c0_2 = arith.constant 0 : index
    %c0_3 = arith.constant 0 : index
    %c0_4 = arith.constant 0 : index
    %3 = vector.load %arg1[%c0_2, %c0_3, %c0_4] : memref<2x4x96xf32, #tpu.memory_space<vmem>>, vector<1x4x96xf32>
    %4 = vector.shape_cast %3 : vector<1x4x96xf32> to vector<4x96xf32>
    %c0_5 = arith.constant 0 : index
    %c0_6 = arith.constant 0 : index
    %c0_7 = arith.constant 0 : index
    %5 = vector.load %arg2[%c0_5, %c0_6, %c0_7] : memref<2x1x32xf32, #tpu.memory_space<vmem>>, vector<1x1x32xf32>
    %6 = vector.shape_cast %5 : vector<1x1x32xf32> to vector<1x32xf32>
    %c0_8 = arith.constant 0 : index
    %c0_9 = arith.constant 0 : index
    %c0_10 = arith.constant 0 : index
    %7 = vector.load %arg3[%c0_8, %c0_9, %c0_10] : memref<2x1x32xf32, #tpu.memory_space<vmem>>, vector<1x1x32xf32>
    %8 = vector.shape_cast %7 : vector<1x1x32xf32> to vector<1x32xf32>
    %c0_11 = arith.constant 0 : index
    %c0_12 = arith.constant 0 : index
    %c0_13 = arith.constant 0 : index
    %9 = vector.load %arg4[%c0_11, %c0_12, %c0_13] : memref<2x1x32xf32, #tpu.memory_space<vmem>>, vector<1x1x32xf32>
    %10 = vector.shape_cast %9 : vector<1x1x32xf32> to vector<1x32xf32>
    %cst = arith.constant dense<0.000000e+00> : vector<48x96xf32>
    %11 = tpu.matmul %2, %4, %cst {dimension_numbers = #tpu.dot_dimension_numbers<[1], [0], [0], [1], [0, 0, 1, 1], [], []>} : vector<48x4xf32>, vector<4x96xf32>, vector<48x96xf32> -> vector<48x96xf32>
    %12 = vector.extract_strided_slice %11 {offsets = [0, 0], sizes = [48, 32], strides = [1, 1]} : vector<48x96xf32> to vector<48x32xf32>
    %c4_i32 = arith.constant 4 : i32
    %13 = tpu.dynamic_rotate %12 by %c4_i32 dim 0 : vector<48x32xf32>, i32 -> vector<48x32xf32>
    %14 = vector.extract_strided_slice %11 {offsets = [0, 32], sizes = [48, 32], strides = [1, 1]} : vector<48x96xf32> to vector<48x32xf32>
    %c2_i32 = arith.constant 2 : i32
    %15 = tpu.dynamic_rotate %14 by %c2_i32 dim 0 : vector<48x32xf32>, i32 -> vector<48x32xf32>
    %16 = arith.addf %13, %15 : vector<48x32xf32>
    %17 = vector.extract_strided_slice %11 {offsets = [0, 64], sizes = [48, 32], strides = [1, 1]} : vector<48x96xf32> to vector<48x32xf32>
    %18 = arith.addf %16, %17 : vector<48x32xf32>
    %19 = vector.broadcast %6 : vector<1x32xf32> to vector<48x32xf32>
    %20 = arith.addf %18, %19 : vector<48x32xf32>
    %cst_14 = arith.constant 0.000000e+00 : f32
    %21 = vector.broadcast %cst_14 : f32 to vector<48x32xf32>
    %22 = arith.maximumf %20, %21 : vector<48x32xf32>
    %23 = vector.broadcast %8 : vector<1x32xf32> to vector<48x32xf32>
    %24 = arith.mulf %22, %23 : vector<48x32xf32>
    %25 = vector.broadcast %10 : vector<1x32xf32> to vector<48x32xf32>
    %26 = arith.addf %24, %25 : vector<48x32xf32>
    %c36_i32 = arith.constant 36 : i32
    %27 = vector.broadcast %c36_i32 : i32 to vector<48x32xi32>
    %28 = arith.cmpi slt, %0, %27 : vector<48x32xi32>
    %cst_15 = arith.constant 0.000000e+00 : f32
    %29 = vector.broadcast %cst_15 : f32 to vector<48x32xf32>
    %30 = arith.select %28, %26, %29 : vector<48x32xi1>, vector<48x32xf32>
    %c0_16 = arith.constant 0 : index
    %c0_17 = arith.constant 0 : index
    %c0_18 = arith.constant 0 : index
    %31 = vector.load %arg5[%c0_16, %c0_17, %c0_18] : memref<2x32x96xf32, #tpu.memory_space<vmem>>, vector<1x32x96xf32>
    %32 = vector.shape_cast %31 : vector<1x32x96xf32> to vector<32x96xf32>
    %c0_19 = arith.constant 0 : index
    %c0_20 = arith.constant 0 : index
    %c0_21 = arith.constant 0 : index
    %33 = vector.load %arg6[%c0_19, %c0_20, %c0_21] : memref<2x1x32xf32, #tpu.memory_space<vmem>>, vector<1x1x32xf32>
    %34 = vector.shape_cast %33 : vector<1x1x32xf32> to vector<1x32xf32>
    %c0_22 = arith.constant 0 : index
    %c0_23 = arith.constant 0 : index
    %c0_24 = arith.constant 0 : index
    %35 = vector.load %arg7[%c0_22, %c0_23, %c0_24] : memref<2x1x32xf32, #tpu.memory_space<vmem>>, vector<1x1x32xf32>
    %36 = vector.shape_cast %35 : vector<1x1x32xf32> to vector<1x32xf32>
    %c0_25 = arith.constant 0 : index
    %c0_26 = arith.constant 0 : index
    %c0_27 = arith.constant 0 : index
    %37 = vector.load %arg8[%c0_25, %c0_26, %c0_27] : memref<2x1x32xf32, #tpu.memory_space<vmem>>, vector<1x1x32xf32>
    %38 = vector.shape_cast %37 : vector<1x1x32xf32> to vector<1x32xf32>
    %cst_28 = arith.constant dense<0.000000e+00> : vector<48x96xf32>
    %39 = tpu.matmul %30, %32, %cst_28 {dimension_numbers = #tpu.dot_dimension_numbers<[1], [0], [0], [1], [0, 0, 1, 1], [], []>} : vector<48x32xf32>, vector<32x96xf32>, vector<48x96xf32> -> vector<48x96xf32>
    %40 = vector.extract_strided_slice %39 {offsets = [0, 0], sizes = [48, 32], strides = [1, 1]} : vector<48x96xf32> to vector<48x32xf32>
    %c8_i32 = arith.constant 8 : i32
    %41 = tpu.dynamic_rotate %40 by %c8_i32 dim 0 : vector<48x32xf32>, i32 -> vector<48x32xf32>
    %42 = vector.extract_strided_slice %39 {offsets = [0, 32], sizes = [48, 32], strides = [1, 1]} : vector<48x96xf32> to vector<48x32xf32>
    %c4_i32_29 = arith.constant 4 : i32
    %43 = tpu.dynamic_rotate %42 by %c4_i32_29 dim 0 : vector<48x32xf32>, i32 -> vector<48x32xf32>
    %44 = arith.addf %41, %43 : vector<48x32xf32>
    %45 = vector.extract_strided_slice %39 {offsets = [0, 64], sizes = [48, 32], strides = [1, 1]} : vector<48x96xf32> to vector<48x32xf32>
    %46 = arith.addf %44, %45 : vector<48x32xf32>
    %47 = vector.broadcast %34 : vector<1x32xf32> to vector<48x32xf32>
    %48 = arith.addf %46, %47 : vector<48x32xf32>
    %cst_30 = arith.constant 0.000000e+00 : f32
    %49 = vector.broadcast %cst_30 : f32 to vector<48x32xf32>
    %50 = arith.maximumf %48, %49 : vector<48x32xf32>
    %51 = vector.broadcast %36 : vector<1x32xf32> to vector<48x32xf32>
    %52 = arith.mulf %50, %51 : vector<48x32xf32>
    %53 = vector.broadcast %38 : vector<1x32xf32> to vector<48x32xf32>
    %54 = arith.addf %52, %53 : vector<48x32xf32>
    %c44_i32 = arith.constant 44 : i32
    %55 = vector.broadcast %c44_i32 : i32 to vector<48x32xi32>
    %56 = arith.cmpi slt, %0, %55 : vector<48x32xi32>
    %cst_31 = arith.constant 0.000000e+00 : f32
    %57 = vector.broadcast %cst_31 : f32 to vector<48x32xf32>
    %58 = arith.select %56, %54, %57 : vector<48x32xi1>, vector<48x32xf32>
    %59 = vector.extract_strided_slice %58 {offsets = [0, 0], sizes = [2, 32], strides = [1, 1]} : vector<48x32xf32> to vector<2x32xf32>
    %c0_32 = arith.constant 0 : index
    %c0_33 = arith.constant 0 : index
    %c0_34 = arith.constant 0 : index
    %c0_35 = arith.constant 0 : index
    %60 = vector.load %arg9[%c0_32, %c0_33, %c0_34, %c0_35] : memref<2x22x32x32xf32, #tpu.memory_space<vmem>>, vector<1x1x32x32xf32>
    %61 = vector.shape_cast %60 : vector<1x1x32x32xf32> to vector<32x32xf32>
    %cst_36 = arith.constant dense<0.000000e+00> : vector<2x32xf32>
    %62 = tpu.matmul %59, %61, %cst_36 {dimension_numbers = #tpu.dot_dimension_numbers<[1], [0], [0], [1], [0, 0, 1, 1], [], []>} : vector<2x32xf32>, vector<32x32xf32>, vector<2x32xf32> -> vector<2x32xf32>
    %63 = vector.extract_strided_slice %58 {offsets = [2, 0], sizes = [2, 32], strides = [1, 1]} : vector<48x32xf32> to vector<2x32xf32>
    %c0_37 = arith.constant 0 : index
    %c1 = arith.constant 1 : index
    %c0_38 = arith.constant 0 : index
    %c0_39 = arith.constant 0 : index
    %64 = vector.load %arg9[%c0_37, %c1, %c0_38, %c0_39] : memref<2x22x32x32xf32, #tpu.memory_space<vmem>>, vector<1x1x32x32xf32>
    %65 = vector.shape_cast %64 : vector<1x1x32x32xf32> to vector<32x32xf32>
    %cst_40 = arith.constant dense<0.000000e+00> : vector<2x32xf32>
    %66 = tpu.matmul %63, %65, %cst_40 {dimension_numbers = #tpu.dot_dimension_numbers<[1], [0], [0], [1], [0, 0, 1, 1], [], []>} : vector<2x32xf32>, vector<32x32xf32>, vector<2x32xf32> -> vector<2x32xf32>
    %67 = arith.addf %62, %66 : vector<2x32xf32>
    %68 = vector.extract_strided_slice %58 {offsets = [4, 0], sizes = [2, 32], strides = [1, 1]} : vector<48x32xf32> to vector<2x32xf32>
    %c0_41 = arith.constant 0 : index
    %c2 = arith.constant 2 : index
    %c0_42 = arith.constant 0 : index
    %c0_43 = arith.constant 0 : index
    %69 = vector.load %arg9[%c0_41, %c2, %c0_42, %c0_43] : memref<2x22x32x32xf32, #tpu.memory_space<vmem>>, vector<1x1x32x32xf32>
    %70 = vector.shape_cast %69 : vector<1x1x32x32xf32> to vector<32x32xf32>
    %cst_44 = arith.constant dense<0.000000e+00> : vector<2x32xf32>
    %71 = tpu.matmul %68, %70, %cst_44 {dimension_numbers = #tpu.dot_dimension_numbers<[1], [0], [0], [1], [0, 0, 1, 1], [], []>} : vector<2x32xf32>, vector<32x32xf32>, vector<2x32xf32> -> vector<2x32xf32>
    %72 = arith.addf %67, %71 : vector<2x32xf32>
    %73 = vector.extract_strided_slice %58 {offsets = [6, 0], sizes = [2, 32], strides = [1, 1]} : vector<48x32xf32> to vector<2x32xf32>
    %c0_45 = arith.constant 0 : index
    %c3 = arith.constant 3 : index
    %c0_46 = arith.constant 0 : index
    %c0_47 = arith.constant 0 : index
    %74 = vector.load %arg9[%c0_45, %c3, %c0_46, %c0_47] : memref<2x22x32x32xf32, #tpu.memory_space<vmem>>, vector<1x1x32x32xf32>
    %75 = vector.shape_cast %74 : vector<1x1x32x32xf32> to vector<32x32xf32>
    %cst_48 = arith.constant dense<0.000000e+00> : vector<2x32xf32>
    %76 = tpu.matmul %73, %75, %cst_48 {dimension_numbers = #tpu.dot_dimension_numbers<[1], [0], [0], [1], [0, 0, 1, 1], [], []>} : vector<2x32xf32>, vector<32x32xf32>, vector<2x32xf32> -> vector<2x32xf32>
    %77 = arith.addf %72, %76 : vector<2x32xf32>
    %78 = vector.extract_strided_slice %58 {offsets = [8, 0], sizes = [2, 32], strides = [1, 1]} : vector<48x32xf32> to vector<2x32xf32>
    %c0_49 = arith.constant 0 : index
    %c4 = arith.constant 4 : index
    %c0_50 = arith.constant 0 : index
    %c0_51 = arith.constant 0 : index
    %79 = vector.load %arg9[%c0_49, %c4, %c0_50, %c0_51] : memref<2x22x32x32xf32, #tpu.memory_space<vmem>>, vector<1x1x32x32xf32>
    %80 = vector.shape_cast %79 : vector<1x1x32x32xf32> to vector<32x32xf32>
    %cst_52 = arith.constant dense<0.000000e+00> : vector<2x32xf32>
    %81 = tpu.matmul %78, %80, %cst_52 {dimension_numbers = #tpu.dot_dimension_numbers<[1], [0], [0], [1], [0, 0, 1, 1], [], []>} : vector<2x32xf32>, vector<32x32xf32>, vector<2x32xf32> -> vector<2x32xf32>
    %82 = arith.addf %77, %81 : vector<2x32xf32>
    %83 = vector.extract_strided_slice %58 {offsets = [10, 0], sizes = [2, 32], strides = [1, 1]} : vector<48x32xf32> to vector<2x32xf32>
    %c0_53 = arith.constant 0 : index
    %c5 = arith.constant 5 : index
    %c0_54 = arith.constant 0 : index
    %c0_55 = arith.constant 0 : index
    %84 = vector.load %arg9[%c0_53, %c5, %c0_54, %c0_55] : memref<2x22x32x32xf32, #tpu.memory_space<vmem>>, vector<1x1x32x32xf32>
    %85 = vector.shape_cast %84 : vector<1x1x32x32xf32> to vector<32x32xf32>
    %cst_56 = arith.constant dense<0.000000e+00> : vector<2x32xf32>
    %86 = tpu.matmul %83, %85, %cst_56 {dimension_numbers = #tpu.dot_dimension_numbers<[1], [0], [0], [1], [0, 0, 1, 1], [], []>} : vector<2x32xf32>, vector<32x32xf32>, vector<2x32xf32> -> vector<2x32xf32>
    %87 = arith.addf %82, %86 : vector<2x32xf32>
    %88 = vector.extract_strided_slice %58 {offsets = [12, 0], sizes = [2, 32], strides = [1, 1]} : vector<48x32xf32> to vector<2x32xf32>
    %c0_57 = arith.constant 0 : index
    %c6 = arith.constant 6 : index
    %c0_58 = arith.constant 0 : index
    %c0_59 = arith.constant 0 : index
    %89 = vector.load %arg9[%c0_57, %c6, %c0_58, %c0_59] : memref<2x22x32x32xf32, #tpu.memory_space<vmem>>, vector<1x1x32x32xf32>
    %90 = vector.shape_cast %89 : vector<1x1x32x32xf32> to vector<32x32xf32>
    %cst_60 = arith.constant dense<0.000000e+00> : vector<2x32xf32>
    %91 = tpu.matmul %88, %90, %cst_60 {dimension_numbers = #tpu.dot_dimension_numbers<[1], [0], [0], [1], [0, 0, 1, 1], [], []>} : vector<2x32xf32>, vector<32x32xf32>, vector<2x32xf32> -> vector<2x32xf32>
    %92 = arith.addf %87, %91 : vector<2x32xf32>
    %93 = vector.extract_strided_slice %58 {offsets = [14, 0], sizes = [2, 32], strides = [1, 1]} : vector<48x32xf32> to vector<2x32xf32>
    %c0_61 = arith.constant 0 : index
    %c7 = arith.constant 7 : index
    %c0_62 = arith.constant 0 : index
    %c0_63 = arith.constant 0 : index
    %94 = vector.load %arg9[%c0_61, %c7, %c0_62, %c0_63] : memref<2x22x32x32xf32, #tpu.memory_space<vmem>>, vector<1x1x32x32xf32>
    %95 = vector.shape_cast %94 : vector<1x1x32x32xf32> to vector<32x32xf32>
    %cst_64 = arith.constant dense<0.000000e+00> : vector<2x32xf32>
    %96 = tpu.matmul %93, %95, %cst_64 {dimension_numbers = #tpu.dot_dimension_numbers<[1], [0], [0], [1], [0, 0, 1, 1], [], []>} : vector<2x32xf32>, vector<32x32xf32>, vector<2x32xf32> -> vector<2x32xf32>
    %97 = arith.addf %92, %96 : vector<2x32xf32>
    %98 = vector.extract_strided_slice %58 {offsets = [16, 0], sizes = [2, 32], strides = [1, 1]} : vector<48x32xf32> to vector<2x32xf32>
    %c0_65 = arith.constant 0 : index
    %c8 = arith.constant 8 : index
    %c0_66 = arith.constant 0 : index
    %c0_67 = arith.constant 0 : index
    %99 = vector.load %arg9[%c0_65, %c8, %c0_66, %c0_67] : memref<2x22x32x32xf32, #tpu.memory_space<vmem>>, vector<1x1x32x32xf32>
    %100 = vector.shape_cast %99 : vector<1x1x32x32xf32> to vector<32x32xf32>
    %cst_68 = arith.constant dense<0.000000e+00> : vector<2x32xf32>
    %101 = tpu.matmul %98, %100, %cst_68 {dimension_numbers = #tpu.dot_dimension_numbers<[1], [0], [0], [1], [0, 0, 1, 1], [], []>} : vector<2x32xf32>, vector<32x32xf32>, vector<2x32xf32> -> vector<2x32xf32>
    %102 = arith.addf %97, %101 : vector<2x32xf32>
    %103 = vector.extract_strided_slice %58 {offsets = [18, 0], sizes = [2, 32], strides = [1, 1]} : vector<48x32xf32> to vector<2x32xf32>
    %c0_69 = arith.constant 0 : index
    %c9 = arith.constant 9 : index
    %c0_70 = arith.constant 0 : index
    %c0_71 = arith.constant 0 : index
    %104 = vector.load %arg9[%c0_69, %c9, %c0_70, %c0_71] : memref<2x22x32x32xf32, #tpu.memory_space<vmem>>, vector<1x1x32x32xf32>
    %105 = vector.shape_cast %104 : vector<1x1x32x32xf32> to vector<32x32xf32>
    %cst_72 = arith.constant dense<0.000000e+00> : vector<2x32xf32>
    %106 = tpu.matmul %103, %105, %cst_72 {dimension_numbers = #tpu.dot_dimension_numbers<[1], [0], [0], [1], [0, 0, 1, 1], [], []>} : vector<2x32xf32>, vector<32x32xf32>, vector<2x32xf32> -> vector<2x32xf32>
    %107 = arith.addf %102, %106 : vector<2x32xf32>
    %108 = vector.extract_strided_slice %58 {offsets = [20, 0], sizes = [2, 32], strides = [1, 1]} : vector<48x32xf32> to vector<2x32xf32>
    %c0_73 = arith.constant 0 : index
    %c10 = arith.constant 10 : index
    %c0_74 = arith.constant 0 : index
    %c0_75 = arith.constant 0 : index
    %109 = vector.load %arg9[%c0_73, %c10, %c0_74, %c0_75] : memref<2x22x32x32xf32, #tpu.memory_space<vmem>>, vector<1x1x32x32xf32>
    %110 = vector.shape_cast %109 : vector<1x1x32x32xf32> to vector<32x32xf32>
    %cst_76 = arith.constant dense<0.000000e+00> : vector<2x32xf32>
    %111 = tpu.matmul %108, %110, %cst_76 {dimension_numbers = #tpu.dot_dimension_numbers<[1], [0], [0], [1], [0, 0, 1, 1], [], []>} : vector<2x32xf32>, vector<32x32xf32>, vector<2x32xf32> -> vector<2x32xf32>
    %112 = arith.addf %107, %111 : vector<2x32xf32>
    %113 = vector.extract_strided_slice %58 {offsets = [22, 0], sizes = [2, 32], strides = [1, 1]} : vector<48x32xf32> to vector<2x32xf32>
    %c0_77 = arith.constant 0 : index
    %c11 = arith.constant 11 : index
    %c0_78 = arith.constant 0 : index
    %c0_79 = arith.constant 0 : index
    %114 = vector.load %arg9[%c0_77, %c11, %c0_78, %c0_79] : memref<2x22x32x32xf32, #tpu.memory_space<vmem>>, vector<1x1x32x32xf32>
    %115 = vector.shape_cast %114 : vector<1x1x32x32xf32> to vector<32x32xf32>
    %cst_80 = arith.constant dense<0.000000e+00> : vector<2x32xf32>
    %116 = tpu.matmul %113, %115, %cst_80 {dimension_numbers = #tpu.dot_dimension_numbers<[1], [0], [0], [1], [0, 0, 1, 1], [], []>} : vector<2x32xf32>, vector<32x32xf32>, vector<2x32xf32> -> vector<2x32xf32>
    %117 = arith.addf %112, %116 : vector<2x32xf32>
    %118 = vector.extract_strided_slice %58 {offsets = [24, 0], sizes = [2, 32], strides = [1, 1]} : vector<48x32xf32> to vector<2x32xf32>
    %c0_81 = arith.constant 0 : index
    %c12 = arith.constant 12 : index
    %c0_82 = arith.constant 0 : index
    %c0_83 = arith.constant 0 : index
    %119 = vector.load %arg9[%c0_81, %c12, %c0_82, %c0_83] : memref<2x22x32x32xf32, #tpu.memory_space<vmem>>, vector<1x1x32x32xf32>
    %120 = vector.shape_cast %119 : vector<1x1x32x32xf32> to vector<32x32xf32>
    %cst_84 = arith.constant dense<0.000000e+00> : vector<2x32xf32>
    %121 = tpu.matmul %118, %120, %cst_84 {dimension_numbers = #tpu.dot_dimension_numbers<[1], [0], [0], [1], [0, 0, 1, 1], [], []>} : vector<2x32xf32>, vector<32x32xf32>, vector<2x32xf32> -> vector<2x32xf32>
    %122 = arith.addf %117, %121 : vector<2x32xf32>
    %123 = vector.extract_strided_slice %58 {offsets = [26, 0], sizes = [2, 32], strides = [1, 1]} : vector<48x32xf32> to vector<2x32xf32>
    %c0_85 = arith.constant 0 : index
    %c13 = arith.constant 13 : index
    %c0_86 = arith.constant 0 : index
    %c0_87 = arith.constant 0 : index
    %124 = vector.load %arg9[%c0_85, %c13, %c0_86, %c0_87] : memref<2x22x32x32xf32, #tpu.memory_space<vmem>>, vector<1x1x32x32xf32>
    %125 = vector.shape_cast %124 : vector<1x1x32x32xf32> to vector<32x32xf32>
    %cst_88 = arith.constant dense<0.000000e+00> : vector<2x32xf32>
    %126 = tpu.matmul %123, %125, %cst_88 {dimension_numbers = #tpu.dot_dimension_numbers<[1], [0], [0], [1], [0, 0, 1, 1], [], []>} : vector<2x32xf32>, vector<32x32xf32>, vector<2x32xf32> -> vector<2x32xf32>
    %127 = arith.addf %122, %126 : vector<2x32xf32>
    %128 = vector.extract_strided_slice %58 {offsets = [28, 0], sizes = [2, 32], strides = [1, 1]} : vector<48x32xf32> to vector<2x32xf32>
    %c0_89 = arith.constant 0 : index
    %c14 = arith.constant 14 : index
    %c0_90 = arith.constant 0 : index
    %c0_91 = arith.constant 0 : index
    %129 = vector.load %arg9[%c0_89, %c14, %c0_90, %c0_91] : memref<2x22x32x32xf32, #tpu.memory_space<vmem>>, vector<1x1x32x32xf32>
    %130 = vector.shape_cast %129 : vector<1x1x32x32xf32> to vector<32x32xf32>
    %cst_92 = arith.constant dense<0.000000e+00> : vector<2x32xf32>
    %131 = tpu.matmul %128, %130, %cst_92 {dimension_numbers = #tpu.dot_dimension_numbers<[1], [0], [0], [1], [0, 0, 1, 1], [], []>} : vector<2x32xf32>, vector<32x32xf32>, vector<2x32xf32> -> vector<2x32xf32>
    %132 = arith.addf %127, %131 : vector<2x32xf32>
    %133 = vector.extract_strided_slice %58 {offsets = [30, 0], sizes = [2, 32], strides = [1, 1]} : vector<48x32xf32> to vector<2x32xf32>
    %c0_93 = arith.constant 0 : index
    %c15 = arith.constant 15 : index
    %c0_94 = arith.constant 0 : index
    %c0_95 = arith.constant 0 : index
    %134 = vector.load %arg9[%c0_93, %c15, %c0_94, %c0_95] : memref<2x22x32x32xf32, #tpu.memory_space<vmem>>, vector<1x1x32x32xf32>
    %135 = vector.shape_cast %134 : vector<1x1x32x32xf32> to vector<32x32xf32>
    %cst_96 = arith.constant dense<0.000000e+00> : vector<2x32xf32>
    %136 = tpu.matmul %133, %135, %cst_96 {dimension_numbers = #tpu.dot_dimension_numbers<[1], [0], [0], [1], [0, 0, 1, 1], [], []>} : vector<2x32xf32>, vector<32x32xf32>, vector<2x32xf32> -> vector<2x32xf32>
    %137 = arith.addf %132, %136 : vector<2x32xf32>
    %138 = vector.extract_strided_slice %58 {offsets = [32, 0], sizes = [2, 32], strides = [1, 1]} : vector<48x32xf32> to vector<2x32xf32>
    %c0_97 = arith.constant 0 : index
    %c16 = arith.constant 16 : index
    %c0_98 = arith.constant 0 : index
    %c0_99 = arith.constant 0 : index
    %139 = vector.load %arg9[%c0_97, %c16, %c0_98, %c0_99] : memref<2x22x32x32xf32, #tpu.memory_space<vmem>>, vector<1x1x32x32xf32>
    %140 = vector.shape_cast %139 : vector<1x1x32x32xf32> to vector<32x32xf32>
    %cst_100 = arith.constant dense<0.000000e+00> : vector<2x32xf32>
    %141 = tpu.matmul %138, %140, %cst_100 {dimension_numbers = #tpu.dot_dimension_numbers<[1], [0], [0], [1], [0, 0, 1, 1], [], []>} : vector<2x32xf32>, vector<32x32xf32>, vector<2x32xf32> -> vector<2x32xf32>
    %142 = arith.addf %137, %141 : vector<2x32xf32>
    %143 = vector.extract_strided_slice %58 {offsets = [34, 0], sizes = [2, 32], strides = [1, 1]} : vector<48x32xf32> to vector<2x32xf32>
    %c0_101 = arith.constant 0 : index
    %c17 = arith.constant 17 : index
    %c0_102 = arith.constant 0 : index
    %c0_103 = arith.constant 0 : index
    %144 = vector.load %arg9[%c0_101, %c17, %c0_102, %c0_103] : memref<2x22x32x32xf32, #tpu.memory_space<vmem>>, vector<1x1x32x32xf32>
    %145 = vector.shape_cast %144 : vector<1x1x32x32xf32> to vector<32x32xf32>
    %cst_104 = arith.constant dense<0.000000e+00> : vector<2x32xf32>
    %146 = tpu.matmul %143, %145, %cst_104 {dimension_numbers = #tpu.dot_dimension_numbers<[1], [0], [0], [1], [0, 0, 1, 1], [], []>} : vector<2x32xf32>, vector<32x32xf32>, vector<2x32xf32> -> vector<2x32xf32>
    %147 = arith.addf %142, %146 : vector<2x32xf32>
    %148 = vector.extract_strided_slice %58 {offsets = [36, 0], sizes = [2, 32], strides = [1, 1]} : vector<48x32xf32> to vector<2x32xf32>
    %c0_105 = arith.constant 0 : index
    %c18 = arith.constant 18 : index
    %c0_106 = arith.constant 0 : index
    %c0_107 = arith.constant 0 : index
    %149 = vector.load %arg9[%c0_105, %c18, %c0_106, %c0_107] : memref<2x22x32x32xf32, #tpu.memory_space<vmem>>, vector<1x1x32x32xf32>
    %150 = vector.shape_cast %149 : vector<1x1x32x32xf32> to vector<32x32xf32>
    %cst_108 = arith.constant dense<0.000000e+00> : vector<2x32xf32>
    %151 = tpu.matmul %148, %150, %cst_108 {dimension_numbers = #tpu.dot_dimension_numbers<[1], [0], [0], [1], [0, 0, 1, 1], [], []>} : vector<2x32xf32>, vector<32x32xf32>, vector<2x32xf32> -> vector<2x32xf32>
    %152 = arith.addf %147, %151 : vector<2x32xf32>
    %153 = vector.extract_strided_slice %58 {offsets = [38, 0], sizes = [2, 32], strides = [1, 1]} : vector<48x32xf32> to vector<2x32xf32>
    %c0_109 = arith.constant 0 : index
    %c19 = arith.constant 19 : index
    %c0_110 = arith.constant 0 : index
    %c0_111 = arith.constant 0 : index
    %154 = vector.load %arg9[%c0_109, %c19, %c0_110, %c0_111] : memref<2x22x32x32xf32, #tpu.memory_space<vmem>>, vector<1x1x32x32xf32>
    %155 = vector.shape_cast %154 : vector<1x1x32x32xf32> to vector<32x32xf32>
    %cst_112 = arith.constant dense<0.000000e+00> : vector<2x32xf32>
    %156 = tpu.matmul %153, %155, %cst_112 {dimension_numbers = #tpu.dot_dimension_numbers<[1], [0], [0], [1], [0, 0, 1, 1], [], []>} : vector<2x32xf32>, vector<32x32xf32>, vector<2x32xf32> -> vector<2x32xf32>
    %157 = arith.addf %152, %156 : vector<2x32xf32>
    %158 = vector.extract_strided_slice %58 {offsets = [40, 0], sizes = [2, 32], strides = [1, 1]} : vector<48x32xf32> to vector<2x32xf32>
    %c0_113 = arith.constant 0 : index
    %c20 = arith.constant 20 : index
    %c0_114 = arith.constant 0 : index
    %c0_115 = arith.constant 0 : index
    %159 = vector.load %arg9[%c0_113, %c20, %c0_114, %c0_115] : memref<2x22x32x32xf32, #tpu.memory_space<vmem>>, vector<1x1x32x32xf32>
    %160 = vector.shape_cast %159 : vector<1x1x32x32xf32> to vector<32x32xf32>
    %cst_116 = arith.constant dense<0.000000e+00> : vector<2x32xf32>
    %161 = tpu.matmul %158, %160, %cst_116 {dimension_numbers = #tpu.dot_dimension_numbers<[1], [0], [0], [1], [0, 0, 1, 1], [], []>} : vector<2x32xf32>, vector<32x32xf32>, vector<2x32xf32> -> vector<2x32xf32>
    %162 = arith.addf %157, %161 : vector<2x32xf32>
    %163 = vector.extract_strided_slice %58 {offsets = [42, 0], sizes = [2, 32], strides = [1, 1]} : vector<48x32xf32> to vector<2x32xf32>
    %c0_117 = arith.constant 0 : index
    %c21 = arith.constant 21 : index
    %c0_118 = arith.constant 0 : index
    %c0_119 = arith.constant 0 : index
    %164 = vector.load %arg9[%c0_117, %c21, %c0_118, %c0_119] : memref<2x22x32x32xf32, #tpu.memory_space<vmem>>, vector<1x1x32x32xf32>
    %165 = vector.shape_cast %164 : vector<1x1x32x32xf32> to vector<32x32xf32>
    %cst_120 = arith.constant dense<0.000000e+00> : vector<2x32xf32>
    %166 = tpu.matmul %163, %165, %cst_120 {dimension_numbers = #tpu.dot_dimension_numbers<[1], [0], [0], [1], [0, 0, 1, 1], [], []>} : vector<2x32xf32>, vector<32x32xf32>, vector<2x32xf32> -> vector<2x32xf32>
    %167 = arith.addf %162, %166 : vector<2x32xf32>
    %c0_121 = arith.constant 0 : index
    %c0_122 = arith.constant 0 : index
    %c0_123 = arith.constant 0 : index
    %168 = vector.load %arg10[%c0_121, %c0_122, %c0_123] : memref<2x1x32xf32, #tpu.memory_space<vmem>>, vector<1x1x32xf32>
    %169 = vector.shape_cast %168 : vector<1x1x32xf32> to vector<1x32xf32>
    %170 = vector.broadcast %169 : vector<1x32xf32> to vector<2x32xf32>
    %171 = arith.addf %167, %170 : vector<2x32xf32>
    %c1_124 = arith.constant 1 : index
    %c0_125 = arith.constant 0 : index
    %c0_126 = arith.constant 0 : index
    %172 = vector.load %arg0[%c1_124, %c0_125, %c0_126] : memref<2x48x4xf32, #tpu.memory_space<vmem>>, vector<1x48x4xf32>
    %173 = vector.shape_cast %172 : vector<1x48x4xf32> to vector<48x4xf32>
    %c1_127 = arith.constant 1 : index
    %c0_128 = arith.constant 0 : index
    %c0_129 = arith.constant 0 : index
    %174 = vector.load %arg1[%c1_127, %c0_128, %c0_129] : memref<2x4x96xf32, #tpu.memory_space<vmem>>, vector<1x4x96xf32>
    %175 = vector.shape_cast %174 : vector<1x4x96xf32> to vector<4x96xf32>
    %c1_130 = arith.constant 1 : index
    %c0_131 = arith.constant 0 : index
    %c0_132 = arith.constant 0 : index
    %176 = vector.load %arg2[%c1_130, %c0_131, %c0_132] : memref<2x1x32xf32, #tpu.memory_space<vmem>>, vector<1x1x32xf32>
    %177 = vector.shape_cast %176 : vector<1x1x32xf32> to vector<1x32xf32>
    %c1_133 = arith.constant 1 : index
    %c0_134 = arith.constant 0 : index
    %c0_135 = arith.constant 0 : index
    %178 = vector.load %arg3[%c1_133, %c0_134, %c0_135] : memref<2x1x32xf32, #tpu.memory_space<vmem>>, vector<1x1x32xf32>
    %179 = vector.shape_cast %178 : vector<1x1x32xf32> to vector<1x32xf32>
    %c1_136 = arith.constant 1 : index
    %c0_137 = arith.constant 0 : index
    %c0_138 = arith.constant 0 : index
    %180 = vector.load %arg4[%c1_136, %c0_137, %c0_138] : memref<2x1x32xf32, #tpu.memory_space<vmem>>, vector<1x1x32xf32>
    %181 = vector.shape_cast %180 : vector<1x1x32xf32> to vector<1x32xf32>
    %cst_139 = arith.constant dense<0.000000e+00> : vector<48x96xf32>
    %182 = tpu.matmul %173, %175, %cst_139 {dimension_numbers = #tpu.dot_dimension_numbers<[1], [0], [0], [1], [0, 0, 1, 1], [], []>} : vector<48x4xf32>, vector<4x96xf32>, vector<48x96xf32> -> vector<48x96xf32>
    %183 = vector.extract_strided_slice %182 {offsets = [0, 0], sizes = [48, 32], strides = [1, 1]} : vector<48x96xf32> to vector<48x32xf32>
    %c4_i32_140 = arith.constant 4 : i32
    %184 = tpu.dynamic_rotate %183 by %c4_i32_140 dim 0 : vector<48x32xf32>, i32 -> vector<48x32xf32>
    %185 = vector.extract_strided_slice %182 {offsets = [0, 32], sizes = [48, 32], strides = [1, 1]} : vector<48x96xf32> to vector<48x32xf32>
    %c2_i32_141 = arith.constant 2 : i32
    %186 = tpu.dynamic_rotate %185 by %c2_i32_141 dim 0 : vector<48x32xf32>, i32 -> vector<48x32xf32>
    %187 = arith.addf %184, %186 : vector<48x32xf32>
    %188 = vector.extract_strided_slice %182 {offsets = [0, 64], sizes = [48, 32], strides = [1, 1]} : vector<48x96xf32> to vector<48x32xf32>
    %189 = arith.addf %187, %188 : vector<48x32xf32>
    %190 = vector.broadcast %177 : vector<1x32xf32> to vector<48x32xf32>
    %191 = arith.addf %189, %190 : vector<48x32xf32>
    %cst_142 = arith.constant 0.000000e+00 : f32
    %192 = vector.broadcast %cst_142 : f32 to vector<48x32xf32>
    %193 = arith.maximumf %191, %192 : vector<48x32xf32>
    %194 = vector.broadcast %179 : vector<1x32xf32> to vector<48x32xf32>
    %195 = arith.mulf %193, %194 : vector<48x32xf32>
    %196 = vector.broadcast %181 : vector<1x32xf32> to vector<48x32xf32>
    %197 = arith.addf %195, %196 : vector<48x32xf32>
    %c36_i32_143 = arith.constant 36 : i32
    %198 = vector.broadcast %c36_i32_143 : i32 to vector<48x32xi32>
    %199 = arith.cmpi slt, %0, %198 : vector<48x32xi32>
    %cst_144 = arith.constant 0.000000e+00 : f32
    %200 = vector.broadcast %cst_144 : f32 to vector<48x32xf32>
    %201 = arith.select %199, %197, %200 : vector<48x32xi1>, vector<48x32xf32>
    %c1_145 = arith.constant 1 : index
    %c0_146 = arith.constant 0 : index
    %c0_147 = arith.constant 0 : index
    %202 = vector.load %arg5[%c1_145, %c0_146, %c0_147] : memref<2x32x96xf32, #tpu.memory_space<vmem>>, vector<1x32x96xf32>
    %203 = vector.shape_cast %202 : vector<1x32x96xf32> to vector<32x96xf32>
    %c1_148 = arith.constant 1 : index
    %c0_149 = arith.constant 0 : index
    %c0_150 = arith.constant 0 : index
    %204 = vector.load %arg6[%c1_148, %c0_149, %c0_150] : memref<2x1x32xf32, #tpu.memory_space<vmem>>, vector<1x1x32xf32>
    %205 = vector.shape_cast %204 : vector<1x1x32xf32> to vector<1x32xf32>
    %c1_151 = arith.constant 1 : index
    %c0_152 = arith.constant 0 : index
    %c0_153 = arith.constant 0 : index
    %206 = vector.load %arg7[%c1_151, %c0_152, %c0_153] : memref<2x1x32xf32, #tpu.memory_space<vmem>>, vector<1x1x32xf32>
    %207 = vector.shape_cast %206 : vector<1x1x32xf32> to vector<1x32xf32>
    %c1_154 = arith.constant 1 : index
    %c0_155 = arith.constant 0 : index
    %c0_156 = arith.constant 0 : index
    %208 = vector.load %arg8[%c1_154, %c0_155, %c0_156] : memref<2x1x32xf32, #tpu.memory_space<vmem>>, vector<1x1x32xf32>
    %209 = vector.shape_cast %208 : vector<1x1x32xf32> to vector<1x32xf32>
    %cst_157 = arith.constant dense<0.000000e+00> : vector<48x96xf32>
    %210 = tpu.matmul %201, %203, %cst_157 {dimension_numbers = #tpu.dot_dimension_numbers<[1], [0], [0], [1], [0, 0, 1, 1], [], []>} : vector<48x32xf32>, vector<32x96xf32>, vector<48x96xf32> -> vector<48x96xf32>
    %211 = vector.extract_strided_slice %210 {offsets = [0, 0], sizes = [48, 32], strides = [1, 1]} : vector<48x96xf32> to vector<48x32xf32>
    %c8_i32_158 = arith.constant 8 : i32
    %212 = tpu.dynamic_rotate %211 by %c8_i32_158 dim 0 : vector<48x32xf32>, i32 -> vector<48x32xf32>
    %213 = vector.extract_strided_slice %210 {offsets = [0, 32], sizes = [48, 32], strides = [1, 1]} : vector<48x96xf32> to vector<48x32xf32>
    %c4_i32_159 = arith.constant 4 : i32
    %214 = tpu.dynamic_rotate %213 by %c4_i32_159 dim 0 : vector<48x32xf32>, i32 -> vector<48x32xf32>
    %215 = arith.addf %212, %214 : vector<48x32xf32>
    %216 = vector.extract_strided_slice %210 {offsets = [0, 64], sizes = [48, 32], strides = [1, 1]} : vector<48x96xf32> to vector<48x32xf32>
    %217 = arith.addf %215, %216 : vector<48x32xf32>
    %218 = vector.broadcast %205 : vector<1x32xf32> to vector<48x32xf32>
    %219 = arith.addf %217, %218 : vector<48x32xf32>
    %cst_160 = arith.constant 0.000000e+00 : f32
    %220 = vector.broadcast %cst_160 : f32 to vector<48x32xf32>
    %221 = arith.maximumf %219, %220 : vector<48x32xf32>
    %222 = vector.broadcast %207 : vector<1x32xf32> to vector<48x32xf32>
    %223 = arith.mulf %221, %222 : vector<48x32xf32>
    %224 = vector.broadcast %209 : vector<1x32xf32> to vector<48x32xf32>
    %225 = arith.addf %223, %224 : vector<48x32xf32>
    %c44_i32_161 = arith.constant 44 : i32
    %226 = vector.broadcast %c44_i32_161 : i32 to vector<48x32xi32>
    %227 = arith.cmpi slt, %0, %226 : vector<48x32xi32>
    %cst_162 = arith.constant 0.000000e+00 : f32
    %228 = vector.broadcast %cst_162 : f32 to vector<48x32xf32>
    %229 = arith.select %227, %225, %228 : vector<48x32xi1>, vector<48x32xf32>
    %230 = vector.extract_strided_slice %229 {offsets = [0, 0], sizes = [2, 32], strides = [1, 1]} : vector<48x32xf32> to vector<2x32xf32>
    %c1_163 = arith.constant 1 : index
    %c0_164 = arith.constant 0 : index
    %c0_165 = arith.constant 0 : index
    %c0_166 = arith.constant 0 : index
    %231 = vector.load %arg9[%c1_163, %c0_164, %c0_165, %c0_166] : memref<2x22x32x32xf32, #tpu.memory_space<vmem>>, vector<1x1x32x32xf32>
    %232 = vector.shape_cast %231 : vector<1x1x32x32xf32> to vector<32x32xf32>
    %cst_167 = arith.constant dense<0.000000e+00> : vector<2x32xf32>
    %233 = tpu.matmul %230, %232, %cst_167 {dimension_numbers = #tpu.dot_dimension_numbers<[1], [0], [0], [1], [0, 0, 1, 1], [], []>} : vector<2x32xf32>, vector<32x32xf32>, vector<2x32xf32> -> vector<2x32xf32>
    %234 = vector.extract_strided_slice %229 {offsets = [2, 0], sizes = [2, 32], strides = [1, 1]} : vector<48x32xf32> to vector<2x32xf32>
    %c1_168 = arith.constant 1 : index
    %c1_169 = arith.constant 1 : index
    %c0_170 = arith.constant 0 : index
    %c0_171 = arith.constant 0 : index
    %235 = vector.load %arg9[%c1_168, %c1_169, %c0_170, %c0_171] : memref<2x22x32x32xf32, #tpu.memory_space<vmem>>, vector<1x1x32x32xf32>
    %236 = vector.shape_cast %235 : vector<1x1x32x32xf32> to vector<32x32xf32>
    %cst_172 = arith.constant dense<0.000000e+00> : vector<2x32xf32>
    %237 = tpu.matmul %234, %236, %cst_172 {dimension_numbers = #tpu.dot_dimension_numbers<[1], [0], [0], [1], [0, 0, 1, 1], [], []>} : vector<2x32xf32>, vector<32x32xf32>, vector<2x32xf32> -> vector<2x32xf32>
    %238 = arith.addf %233, %237 : vector<2x32xf32>
    %239 = vector.extract_strided_slice %229 {offsets = [4, 0], sizes = [2, 32], strides = [1, 1]} : vector<48x32xf32> to vector<2x32xf32>
    %c1_173 = arith.constant 1 : index
    %c2_174 = arith.constant 2 : index
    %c0_175 = arith.constant 0 : index
    %c0_176 = arith.constant 0 : index
    %240 = vector.load %arg9[%c1_173, %c2_174, %c0_175, %c0_176] : memref<2x22x32x32xf32, #tpu.memory_space<vmem>>, vector<1x1x32x32xf32>
    %241 = vector.shape_cast %240 : vector<1x1x32x32xf32> to vector<32x32xf32>
    %cst_177 = arith.constant dense<0.000000e+00> : vector<2x32xf32>
    %242 = tpu.matmul %239, %241, %cst_177 {dimension_numbers = #tpu.dot_dimension_numbers<[1], [0], [0], [1], [0, 0, 1, 1], [], []>} : vector<2x32xf32>, vector<32x32xf32>, vector<2x32xf32> -> vector<2x32xf32>
    %243 = arith.addf %238, %242 : vector<2x32xf32>
    %244 = vector.extract_strided_slice %229 {offsets = [6, 0], sizes = [2, 32], strides = [1, 1]} : vector<48x32xf32> to vector<2x32xf32>
    %c1_178 = arith.constant 1 : index
    %c3_179 = arith.constant 3 : index
    %c0_180 = arith.constant 0 : index
    %c0_181 = arith.constant 0 : index
    %245 = vector.load %arg9[%c1_178, %c3_179, %c0_180, %c0_181] : memref<2x22x32x32xf32, #tpu.memory_space<vmem>>, vector<1x1x32x32xf32>
    %246 = vector.shape_cast %245 : vector<1x1x32x32xf32> to vector<32x32xf32>
    %cst_182 = arith.constant dense<0.000000e+00> : vector<2x32xf32>
    %247 = tpu.matmul %244, %246, %cst_182 {dimension_numbers = #tpu.dot_dimension_numbers<[1], [0], [0], [1], [0, 0, 1, 1], [], []>} : vector<2x32xf32>, vector<32x32xf32>, vector<2x32xf32> -> vector<2x32xf32>
    %248 = arith.addf %243, %247 : vector<2x32xf32>
    %249 = vector.extract_strided_slice %229 {offsets = [8, 0], sizes = [2, 32], strides = [1, 1]} : vector<48x32xf32> to vector<2x32xf32>
    %c1_183 = arith.constant 1 : index
    %c4_184 = arith.constant 4 : index
    %c0_185 = arith.constant 0 : index
    %c0_186 = arith.constant 0 : index
    %250 = vector.load %arg9[%c1_183, %c4_184, %c0_185, %c0_186] : memref<2x22x32x32xf32, #tpu.memory_space<vmem>>, vector<1x1x32x32xf32>
    %251 = vector.shape_cast %250 : vector<1x1x32x32xf32> to vector<32x32xf32>
    %cst_187 = arith.constant dense<0.000000e+00> : vector<2x32xf32>
    %252 = tpu.matmul %249, %251, %cst_187 {dimension_numbers = #tpu.dot_dimension_numbers<[1], [0], [0], [1], [0, 0, 1, 1], [], []>} : vector<2x32xf32>, vector<32x32xf32>, vector<2x32xf32> -> vector<2x32xf32>
    %253 = arith.addf %248, %252 : vector<2x32xf32>
    %254 = vector.extract_strided_slice %229 {offsets = [10, 0], sizes = [2, 32], strides = [1, 1]} : vector<48x32xf32> to vector<2x32xf32>
    %c1_188 = arith.constant 1 : index
    %c5_189 = arith.constant 5 : index
    %c0_190 = arith.constant 0 : index
    %c0_191 = arith.constant 0 : index
    %255 = vector.load %arg9[%c1_188, %c5_189, %c0_190, %c0_191] : memref<2x22x32x32xf32, #tpu.memory_space<vmem>>, vector<1x1x32x32xf32>
    %256 = vector.shape_cast %255 : vector<1x1x32x32xf32> to vector<32x32xf32>
    %cst_192 = arith.constant dense<0.000000e+00> : vector<2x32xf32>
    %257 = tpu.matmul %254, %256, %cst_192 {dimension_numbers = #tpu.dot_dimension_numbers<[1], [0], [0], [1], [0, 0, 1, 1], [], []>} : vector<2x32xf32>, vector<32x32xf32>, vector<2x32xf32> -> vector<2x32xf32>
    %258 = arith.addf %253, %257 : vector<2x32xf32>
    %259 = vector.extract_strided_slice %229 {offsets = [12, 0], sizes = [2, 32], strides = [1, 1]} : vector<48x32xf32> to vector<2x32xf32>
    %c1_193 = arith.constant 1 : index
    %c6_194 = arith.constant 6 : index
    %c0_195 = arith.constant 0 : index
    %c0_196 = arith.constant 0 : index
    %260 = vector.load %arg9[%c1_193, %c6_194, %c0_195, %c0_196] : memref<2x22x32x32xf32, #tpu.memory_space<vmem>>, vector<1x1x32x32xf32>
    %261 = vector.shape_cast %260 : vector<1x1x32x32xf32> to vector<32x32xf32>
    %cst_197 = arith.constant dense<0.000000e+00> : vector<2x32xf32>
    %262 = tpu.matmul %259, %261, %cst_197 {dimension_numbers = #tpu.dot_dimension_numbers<[1], [0], [0], [1], [0, 0, 1, 1], [], []>} : vector<2x32xf32>, vector<32x32xf32>, vector<2x32xf32> -> vector<2x32xf32>
    %263 = arith.addf %258, %262 : vector<2x32xf32>
    %264 = vector.extract_strided_slice %229 {offsets = [14, 0], sizes = [2, 32], strides = [1, 1]} : vector<48x32xf32> to vector<2x32xf32>
    %c1_198 = arith.constant 1 : index
    %c7_199 = arith.constant 7 : index
    %c0_200 = arith.constant 0 : index
    %c0_201 = arith.constant 0 : index
    %265 = vector.load %arg9[%c1_198, %c7_199, %c0_200, %c0_201] : memref<2x22x32x32xf32, #tpu.memory_space<vmem>>, vector<1x1x32x32xf32>
    %266 = vector.shape_cast %265 : vector<1x1x32x32xf32> to vector<32x32xf32>
    %cst_202 = arith.constant dense<0.000000e+00> : vector<2x32xf32>
    %267 = tpu.matmul %264, %266, %cst_202 {dimension_numbers = #tpu.dot_dimension_numbers<[1], [0], [0], [1], [0, 0, 1, 1], [], []>} : vector<2x32xf32>, vector<32x32xf32>, vector<2x32xf32> -> vector<2x32xf32>
    %268 = arith.addf %263, %267 : vector<2x32xf32>
    %269 = vector.extract_strided_slice %229 {offsets = [16, 0], sizes = [2, 32], strides = [1, 1]} : vector<48x32xf32> to vector<2x32xf32>
    %c1_203 = arith.constant 1 : index
    %c8_204 = arith.constant 8 : index
    %c0_205 = arith.constant 0 : index
    %c0_206 = arith.constant 0 : index
    %270 = vector.load %arg9[%c1_203, %c8_204, %c0_205, %c0_206] : memref<2x22x32x32xf32, #tpu.memory_space<vmem>>, vector<1x1x32x32xf32>
    %271 = vector.shape_cast %270 : vector<1x1x32x32xf32> to vector<32x32xf32>
    %cst_207 = arith.constant dense<0.000000e+00> : vector<2x32xf32>
    %272 = tpu.matmul %269, %271, %cst_207 {dimension_numbers = #tpu.dot_dimension_numbers<[1], [0], [0], [1], [0, 0, 1, 1], [], []>} : vector<2x32xf32>, vector<32x32xf32>, vector<2x32xf32> -> vector<2x32xf32>
    %273 = arith.addf %268, %272 : vector<2x32xf32>
    %274 = vector.extract_strided_slice %229 {offsets = [18, 0], sizes = [2, 32], strides = [1, 1]} : vector<48x32xf32> to vector<2x32xf32>
    %c1_208 = arith.constant 1 : index
    %c9_209 = arith.constant 9 : index
    %c0_210 = arith.constant 0 : index
    %c0_211 = arith.constant 0 : index
    %275 = vector.load %arg9[%c1_208, %c9_209, %c0_210, %c0_211] : memref<2x22x32x32xf32, #tpu.memory_space<vmem>>, vector<1x1x32x32xf32>
    %276 = vector.shape_cast %275 : vector<1x1x32x32xf32> to vector<32x32xf32>
    %cst_212 = arith.constant dense<0.000000e+00> : vector<2x32xf32>
    %277 = tpu.matmul %274, %276, %cst_212 {dimension_numbers = #tpu.dot_dimension_numbers<[1], [0], [0], [1], [0, 0, 1, 1], [], []>} : vector<2x32xf32>, vector<32x32xf32>, vector<2x32xf32> -> vector<2x32xf32>
    %278 = arith.addf %273, %277 : vector<2x32xf32>
    %279 = vector.extract_strided_slice %229 {offsets = [20, 0], sizes = [2, 32], strides = [1, 1]} : vector<48x32xf32> to vector<2x32xf32>
    %c1_213 = arith.constant 1 : index
    %c10_214 = arith.constant 10 : index
    %c0_215 = arith.constant 0 : index
    %c0_216 = arith.constant 0 : index
    %280 = vector.load %arg9[%c1_213, %c10_214, %c0_215, %c0_216] : memref<2x22x32x32xf32, #tpu.memory_space<vmem>>, vector<1x1x32x32xf32>
    %281 = vector.shape_cast %280 : vector<1x1x32x32xf32> to vector<32x32xf32>
    %cst_217 = arith.constant dense<0.000000e+00> : vector<2x32xf32>
    %282 = tpu.matmul %279, %281, %cst_217 {dimension_numbers = #tpu.dot_dimension_numbers<[1], [0], [0], [1], [0, 0, 1, 1], [], []>} : vector<2x32xf32>, vector<32x32xf32>, vector<2x32xf32> -> vector<2x32xf32>
    %283 = arith.addf %278, %282 : vector<2x32xf32>
    %284 = vector.extract_strided_slice %229 {offsets = [22, 0], sizes = [2, 32], strides = [1, 1]} : vector<48x32xf32> to vector<2x32xf32>
    %c1_218 = arith.constant 1 : index
    %c11_219 = arith.constant 11 : index
    %c0_220 = arith.constant 0 : index
    %c0_221 = arith.constant 0 : index
    %285 = vector.load %arg9[%c1_218, %c11_219, %c0_220, %c0_221] : memref<2x22x32x32xf32, #tpu.memory_space<vmem>>, vector<1x1x32x32xf32>
    %286 = vector.shape_cast %285 : vector<1x1x32x32xf32> to vector<32x32xf32>
    %cst_222 = arith.constant dense<0.000000e+00> : vector<2x32xf32>
    %287 = tpu.matmul %284, %286, %cst_222 {dimension_numbers = #tpu.dot_dimension_numbers<[1], [0], [0], [1], [0, 0, 1, 1], [], []>} : vector<2x32xf32>, vector<32x32xf32>, vector<2x32xf32> -> vector<2x32xf32>
    %288 = arith.addf %283, %287 : vector<2x32xf32>
    %289 = vector.extract_strided_slice %229 {offsets = [24, 0], sizes = [2, 32], strides = [1, 1]} : vector<48x32xf32> to vector<2x32xf32>
    %c1_223 = arith.constant 1 : index
    %c12_224 = arith.constant 12 : index
    %c0_225 = arith.constant 0 : index
    %c0_226 = arith.constant 0 : index
    %290 = vector.load %arg9[%c1_223, %c12_224, %c0_225, %c0_226] : memref<2x22x32x32xf32, #tpu.memory_space<vmem>>, vector<1x1x32x32xf32>
    %291 = vector.shape_cast %290 : vector<1x1x32x32xf32> to vector<32x32xf32>
    %cst_227 = arith.constant dense<0.000000e+00> : vector<2x32xf32>
    %292 = tpu.matmul %289, %291, %cst_227 {dimension_numbers = #tpu.dot_dimension_numbers<[1], [0], [0], [1], [0, 0, 1, 1], [], []>} : vector<2x32xf32>, vector<32x32xf32>, vector<2x32xf32> -> vector<2x32xf32>
    %293 = arith.addf %288, %292 : vector<2x32xf32>
    %294 = vector.extract_strided_slice %229 {offsets = [26, 0], sizes = [2, 32], strides = [1, 1]} : vector<48x32xf32> to vector<2x32xf32>
    %c1_228 = arith.constant 1 : index
    %c13_229 = arith.constant 13 : index
    %c0_230 = arith.constant 0 : index
    %c0_231 = arith.constant 0 : index
    %295 = vector.load %arg9[%c1_228, %c13_229, %c0_230, %c0_231] : memref<2x22x32x32xf32, #tpu.memory_space<vmem>>, vector<1x1x32x32xf32>
    %296 = vector.shape_cast %295 : vector<1x1x32x32xf32> to vector<32x32xf32>
    %cst_232 = arith.constant dense<0.000000e+00> : vector<2x32xf32>
    %297 = tpu.matmul %294, %296, %cst_232 {dimension_numbers = #tpu.dot_dimension_numbers<[1], [0], [0], [1], [0, 0, 1, 1], [], []>} : vector<2x32xf32>, vector<32x32xf32>, vector<2x32xf32> -> vector<2x32xf32>
    %298 = arith.addf %293, %297 : vector<2x32xf32>
    %299 = vector.extract_strided_slice %229 {offsets = [28, 0], sizes = [2, 32], strides = [1, 1]} : vector<48x32xf32> to vector<2x32xf32>
    %c1_233 = arith.constant 1 : index
    %c14_234 = arith.constant 14 : index
    %c0_235 = arith.constant 0 : index
    %c0_236 = arith.constant 0 : index
    %300 = vector.load %arg9[%c1_233, %c14_234, %c0_235, %c0_236] : memref<2x22x32x32xf32, #tpu.memory_space<vmem>>, vector<1x1x32x32xf32>
    %301 = vector.shape_cast %300 : vector<1x1x32x32xf32> to vector<32x32xf32>
    %cst_237 = arith.constant dense<0.000000e+00> : vector<2x32xf32>
    %302 = tpu.matmul %299, %301, %cst_237 {dimension_numbers = #tpu.dot_dimension_numbers<[1], [0], [0], [1], [0, 0, 1, 1], [], []>} : vector<2x32xf32>, vector<32x32xf32>, vector<2x32xf32> -> vector<2x32xf32>
    %303 = arith.addf %298, %302 : vector<2x32xf32>
    %304 = vector.extract_strided_slice %229 {offsets = [30, 0], sizes = [2, 32], strides = [1, 1]} : vector<48x32xf32> to vector<2x32xf32>
    %c1_238 = arith.constant 1 : index
    %c15_239 = arith.constant 15 : index
    %c0_240 = arith.constant 0 : index
    %c0_241 = arith.constant 0 : index
    %305 = vector.load %arg9[%c1_238, %c15_239, %c0_240, %c0_241] : memref<2x22x32x32xf32, #tpu.memory_space<vmem>>, vector<1x1x32x32xf32>
    %306 = vector.shape_cast %305 : vector<1x1x32x32xf32> to vector<32x32xf32>
    %cst_242 = arith.constant dense<0.000000e+00> : vector<2x32xf32>
    %307 = tpu.matmul %304, %306, %cst_242 {dimension_numbers = #tpu.dot_dimension_numbers<[1], [0], [0], [1], [0, 0, 1, 1], [], []>} : vector<2x32xf32>, vector<32x32xf32>, vector<2x32xf32> -> vector<2x32xf32>
    %308 = arith.addf %303, %307 : vector<2x32xf32>
    %309 = vector.extract_strided_slice %229 {offsets = [32, 0], sizes = [2, 32], strides = [1, 1]} : vector<48x32xf32> to vector<2x32xf32>
    %c1_243 = arith.constant 1 : index
    %c16_244 = arith.constant 16 : index
    %c0_245 = arith.constant 0 : index
    %c0_246 = arith.constant 0 : index
    %310 = vector.load %arg9[%c1_243, %c16_244, %c0_245, %c0_246] : memref<2x22x32x32xf32, #tpu.memory_space<vmem>>, vector<1x1x32x32xf32>
    %311 = vector.shape_cast %310 : vector<1x1x32x32xf32> to vector<32x32xf32>
    %cst_247 = arith.constant dense<0.000000e+00> : vector<2x32xf32>
    %312 = tpu.matmul %309, %311, %cst_247 {dimension_numbers = #tpu.dot_dimension_numbers<[1], [0], [0], [1], [0, 0, 1, 1], [], []>} : vector<2x32xf32>, vector<32x32xf32>, vector<2x32xf32> -> vector<2x32xf32>
    %313 = arith.addf %308, %312 : vector<2x32xf32>
    %314 = vector.extract_strided_slice %229 {offsets = [34, 0], sizes = [2, 32], strides = [1, 1]} : vector<48x32xf32> to vector<2x32xf32>
    %c1_248 = arith.constant 1 : index
    %c17_249 = arith.constant 17 : index
    %c0_250 = arith.constant 0 : index
    %c0_251 = arith.constant 0 : index
    %315 = vector.load %arg9[%c1_248, %c17_249, %c0_250, %c0_251] : memref<2x22x32x32xf32, #tpu.memory_space<vmem>>, vector<1x1x32x32xf32>
    %316 = vector.shape_cast %315 : vector<1x1x32x32xf32> to vector<32x32xf32>
    %cst_252 = arith.constant dense<0.000000e+00> : vector<2x32xf32>
    %317 = tpu.matmul %314, %316, %cst_252 {dimension_numbers = #tpu.dot_dimension_numbers<[1], [0], [0], [1], [0, 0, 1, 1], [], []>} : vector<2x32xf32>, vector<32x32xf32>, vector<2x32xf32> -> vector<2x32xf32>
    %318 = arith.addf %313, %317 : vector<2x32xf32>
    %319 = vector.extract_strided_slice %229 {offsets = [36, 0], sizes = [2, 32], strides = [1, 1]} : vector<48x32xf32> to vector<2x32xf32>
    %c1_253 = arith.constant 1 : index
    %c18_254 = arith.constant 18 : index
    %c0_255 = arith.constant 0 : index
    %c0_256 = arith.constant 0 : index
    %320 = vector.load %arg9[%c1_253, %c18_254, %c0_255, %c0_256] : memref<2x22x32x32xf32, #tpu.memory_space<vmem>>, vector<1x1x32x32xf32>
    %321 = vector.shape_cast %320 : vector<1x1x32x32xf32> to vector<32x32xf32>
    %cst_257 = arith.constant dense<0.000000e+00> : vector<2x32xf32>
    %322 = tpu.matmul %319, %321, %cst_257 {dimension_numbers = #tpu.dot_dimension_numbers<[1], [0], [0], [1], [0, 0, 1, 1], [], []>} : vector<2x32xf32>, vector<32x32xf32>, vector<2x32xf32> -> vector<2x32xf32>
    %323 = arith.addf %318, %322 : vector<2x32xf32>
    %324 = vector.extract_strided_slice %229 {offsets = [38, 0], sizes = [2, 32], strides = [1, 1]} : vector<48x32xf32> to vector<2x32xf32>
    %c1_258 = arith.constant 1 : index
    %c19_259 = arith.constant 19 : index
    %c0_260 = arith.constant 0 : index
    %c0_261 = arith.constant 0 : index
    %325 = vector.load %arg9[%c1_258, %c19_259, %c0_260, %c0_261] : memref<2x22x32x32xf32, #tpu.memory_space<vmem>>, vector<1x1x32x32xf32>
    %326 = vector.shape_cast %325 : vector<1x1x32x32xf32> to vector<32x32xf32>
    %cst_262 = arith.constant dense<0.000000e+00> : vector<2x32xf32>
    %327 = tpu.matmul %324, %326, %cst_262 {dimension_numbers = #tpu.dot_dimension_numbers<[1], [0], [0], [1], [0, 0, 1, 1], [], []>} : vector<2x32xf32>, vector<32x32xf32>, vector<2x32xf32> -> vector<2x32xf32>
    %328 = arith.addf %323, %327 : vector<2x32xf32>
    %329 = vector.extract_strided_slice %229 {offsets = [40, 0], sizes = [2, 32], strides = [1, 1]} : vector<48x32xf32> to vector<2x32xf32>
    %c1_263 = arith.constant 1 : index
    %c20_264 = arith.constant 20 : index
    %c0_265 = arith.constant 0 : index
    %c0_266 = arith.constant 0 : index
    %330 = vector.load %arg9[%c1_263, %c20_264, %c0_265, %c0_266] : memref<2x22x32x32xf32, #tpu.memory_space<vmem>>, vector<1x1x32x32xf32>
    %331 = vector.shape_cast %330 : vector<1x1x32x32xf32> to vector<32x32xf32>
    %cst_267 = arith.constant dense<0.000000e+00> : vector<2x32xf32>
    %332 = tpu.matmul %329, %331, %cst_267 {dimension_numbers = #tpu.dot_dimension_numbers<[1], [0], [0], [1], [0, 0, 1, 1], [], []>} : vector<2x32xf32>, vector<32x32xf32>, vector<2x32xf32> -> vector<2x32xf32>
    %333 = arith.addf %328, %332 : vector<2x32xf32>
    %334 = vector.extract_strided_slice %229 {offsets = [42, 0], sizes = [2, 32], strides = [1, 1]} : vector<48x32xf32> to vector<2x32xf32>
    %c1_268 = arith.constant 1 : index
    %c21_269 = arith.constant 21 : index
    %c0_270 = arith.constant 0 : index
    %c0_271 = arith.constant 0 : index
    %335 = vector.load %arg9[%c1_268, %c21_269, %c0_270, %c0_271] : memref<2x22x32x32xf32, #tpu.memory_space<vmem>>, vector<1x1x32x32xf32>
    %336 = vector.shape_cast %335 : vector<1x1x32x32xf32> to vector<32x32xf32>
    %cst_272 = arith.constant dense<0.000000e+00> : vector<2x32xf32>
    %337 = tpu.matmul %334, %336, %cst_272 {dimension_numbers = #tpu.dot_dimension_numbers<[1], [0], [0], [1], [0, 0, 1, 1], [], []>} : vector<2x32xf32>, vector<32x32xf32>, vector<2x32xf32> -> vector<2x32xf32>
    %338 = arith.addf %333, %337 : vector<2x32xf32>
    %c1_273 = arith.constant 1 : index
    %c0_274 = arith.constant 0 : index
    %c0_275 = arith.constant 0 : index
    %339 = vector.load %arg10[%c1_273, %c0_274, %c0_275] : memref<2x1x32xf32, #tpu.memory_space<vmem>>, vector<1x1x32xf32>
    %340 = vector.shape_cast %339 : vector<1x1x32xf32> to vector<1x32xf32>
    %341 = vector.broadcast %340 : vector<1x32xf32> to vector<2x32xf32>
    %342 = arith.addf %338, %341 : vector<2x32xf32>
    %c0_276 = arith.constant 0 : index
    %c0_277 = arith.constant 0 : index
    %c0_278 = arith.constant 0 : index
    %343 = vector.load %arg11[%c0_276, %c0_277, %c0_278] : memref<2x32x128xf32, #tpu.memory_space<vmem>>, vector<1x32x128xf32>
    %344 = vector.shape_cast %343 : vector<1x32x128xf32> to vector<32x128xf32>
    %cst_279 = arith.constant dense<0.000000e+00> : vector<2x128xf32>
    %345 = tpu.matmul %171, %344, %cst_279 {dimension_numbers = #tpu.dot_dimension_numbers<[1], [0], [0], [1], [0, 0, 1, 1], [], []>} : vector<2x32xf32>, vector<32x128xf32>, vector<2x128xf32> -> vector<2x128xf32>
    %c1_280 = arith.constant 1 : index
    %c0_281 = arith.constant 0 : index
    %c0_282 = arith.constant 0 : index
    %346 = vector.load %arg11[%c1_280, %c0_281, %c0_282] : memref<2x32x128xf32, #tpu.memory_space<vmem>>, vector<1x32x128xf32>
    %347 = vector.shape_cast %346 : vector<1x32x128xf32> to vector<32x128xf32>
    %cst_283 = arith.constant dense<0.000000e+00> : vector<2x128xf32>
    %348 = tpu.matmul %342, %347, %cst_283 {dimension_numbers = #tpu.dot_dimension_numbers<[1], [0], [0], [1], [0, 0, 1, 1], [], []>} : vector<2x32xf32>, vector<32x128xf32>, vector<2x128xf32> -> vector<2x128xf32>
    %349 = arith.addf %345, %348 : vector<2x128xf32>
    %c0_284 = arith.constant 0 : index
    %c0_285 = arith.constant 0 : index
    %350 = vector.load %arg12[%c0_284, %c0_285] : memref<1x128xf32, #tpu.memory_space<vmem>>, vector<1x128xf32>
    %351 = vector.broadcast %350 : vector<1x128xf32> to vector<2x128xf32>
    %352 = arith.addf %349, %351 : vector<2x128xf32>
    %cst_286 = arith.constant 0.000000e+00 : f32
    %353 = vector.broadcast %cst_286 : f32 to vector<2x128xf32>
    %354 = arith.maximumf %352, %353 : vector<2x128xf32>
    %c0_287 = arith.constant 0 : index
    %c0_288 = arith.constant 0 : index
    %355 = vector.load %arg13[%c0_287, %c0_288] : memref<128x128xf32, #tpu.memory_space<vmem>>, vector<128x128xf32>
    %cst_289 = arith.constant dense<0.000000e+00> : vector<2x128xf32>
    %356 = tpu.matmul %354, %355, %cst_289 {dimension_numbers = #tpu.dot_dimension_numbers<[1], [0], [0], [1], [0, 0, 1, 1], [], []>} : vector<2x128xf32>, vector<128x128xf32>, vector<2x128xf32> -> vector<2x128xf32>
    %c0_290 = arith.constant 0 : index
    %c0_291 = arith.constant 0 : index
    %357 = vector.load %arg14[%c0_290, %c0_291] : memref<1x128xf32, #tpu.memory_space<vmem>>, vector<1x128xf32>
    %358 = vector.broadcast %357 : vector<1x128xf32> to vector<2x128xf32>
    %359 = arith.addf %356, %358 : vector<2x128xf32>
    %cst_292 = arith.constant 0.000000e+00 : f32
    %360 = vector.broadcast %cst_292 : f32 to vector<2x128xf32>
    %361 = arith.maximumf %359, %360 : vector<2x128xf32>
    %c0_293 = arith.constant 0 : index
    %c0_294 = arith.constant 0 : index
    %362 = vector.load %arg15[%c0_293, %c0_294] : memref<128x16xf32, #tpu.memory_space<vmem>>, vector<128x16xf32>
    %cst_295 = arith.constant dense<0.000000e+00> : vector<2x16xf32>
    %363 = tpu.matmul %361, %362, %cst_295 {dimension_numbers = #tpu.dot_dimension_numbers<[1], [0], [0], [1], [0, 0, 1, 1], [], []>} : vector<2x128xf32>, vector<128x16xf32>, vector<2x16xf32> -> vector<2x16xf32>
    %c0_296 = arith.constant 0 : index
    %c0_297 = arith.constant 0 : index
    %364 = vector.load %arg16[%c0_296, %c0_297] : memref<1x16xf32, #tpu.memory_space<vmem>>, vector<1x16xf32>
    %365 = vector.broadcast %364 : vector<1x16xf32> to vector<2x16xf32>
    %366 = arith.addf %363, %365 : vector<2x16xf32>
    %c0_298 = arith.constant 0 : index
    %c0_299 = arith.constant 0 : index
    %367 = vector.load %arg17[%c0_298, %c0_299] : memref<2x16xf32, #tpu.memory_space<vmem>>, vector<2x16xf32>
    tpu.vector_store %arg17[%c0_298, %c0_299], %366 {strides = array<i32>} : memref<2x16xf32, #tpu.memory_space<vmem>>, vector<2x16xf32>,
    return
  }
}

</mosaic_0001>

<bundles_post_ra>
// kernel: fwd.1
= control target key start
LH: loop header
LB: loop body
LE: loop exit
PB: predicated region body
PF: predicated region fallthrough
CT: control target
= control target key end

     0   :  { %s7084_s0 = inlined_call_operand.vmem [shape: f32[2,48,4], index: 0, kind: input, shape index: {}]   ;;  %s7085_s1 = inlined_call_operand.vmem [shape: f32[2,4,96], index: 1, kind: input, shape index: {}]   ;;  %s7086_s2 = inlined_call_operand.vmem [shape: f32[2,1,32], index: 2, kind: input, shape index: {}]   ;;  %s7087_s3 = inlined_call_operand.vmem [shape: f32[2,1,32], index: 3, kind: input, shape index: {}]   ;;  %s7088_s4 = inlined_call_operand.vmem [shape: f32[2,1,32], index: 4, kind: input, shape index: {}]   ;;  %s7089_s5 = inlined_call_operand.vmem [shape: f32[2,32,96], index: 5, kind: input, shape index: {}]   ;;  %s7090_s6 = inlined_call_operand.vmem [shape: f32[2,1,32], index: 6, kind: input, shape index: {}]   ;;  %s7091_s7 = inlined_call_operand.vmem [shape: f32[2,1,32], index: 7, kind: input, shape index: {}]   ;;  %s7092_s8 = inlined_call_operand.vmem [shape: f32[2,1,32], index: 8, kind: input, shape index: {}]   ;;  %s7093_s9 = inlined_call_operand.hbm [shape: f32[2,22,32,32], index: 9, kind: input, shape index: {}]   ;;  %s7094_s10 = inlined_call_operand.vmem [shape: f32[2,1,32], index: 10, kind: input, shape index: {}]   ;;  %s7095_s11 = inlined_call_operand.vmem [shape: f32[2,32,128], index: 11, kind: input, shape index: {}]   ;;  %s7096_s12 = inlined_call_operand.vmem [shape: f32[1,128], index: 12, kind: input, shape index: {}]   ;;  %s7097_s13 = inlined_call_operand.vmem [shape: f32[128,128], index: 13, kind: input, shape index: {}]   ;;  %s7098_s14 = inlined_call_operand.vmem [shape: f32[1,128], index: 14, kind: input, shape index: {}]   ;;  %s7099_s15 = inlined_call_operand.vmem [shape: f32[128,16], index: 15, kind: input, shape index: {}]   ;;  %s7100_s16 = inlined_call_operand.vmem [shape: f32[1,16], index: 16, kind: input, shape index: {}]   ;;  %s7101_s17 = inlined_call_operand.hbm [shape: f32[2,16], index: 17, kind: output, shape index: {}]  }
   0x1   :  { %7104 = sst [smem:[#allocation8_spill]] %s7084_s0 }
   0x2   :  { %7105 = sst [smem:[#allocation9_spill]] %s7085_s1 }
   0x3   :  { %22 = vsyncpa [#allocation3], 0 }
   0x4   :  { %23 = vsyncpa [#allocation4], 0  ;;  %s6025_s24 = smov [#allocation2]  }
   0x5   :  { %s47_s25 = sshll.u32 %s6025_s24, 4  ;;  %s48_s25 = int_to_ptr.vmem [resolvable:$true] %s47_s25 }
   0x6   :  { %s5989_s26 = scalar_lea.vmem %s48_s25, 22528  ;;  %p5994_p1 = scmp.lt.s32.totalorder %s48_s25, %s48_s25 }
   0x7   :  { %p5990_p0 = scmp.ne.s32.totalorder %s48_s25, %s5989_s26  ;;  %p5995_p2 = scmp.lt.s32.totalorder %s5989_s26, %s5989_s26 }
   0x9   :  { %p5996_p3 = por %p5995_p2, %p5994_p1 }
   0xb   :  { %p5997_p4 = pnand %p5996_p3, %p5990_p0 }
   0xd   :  { %6000 = shalt.err (!%p5997_p4)
}
   0xe   :  { %s6026_s27 = smov 128   ;;  %s6027_s28 = smov 8  }
   0xf   :  { %53 = dma.hbm_to_vmem [thread:$0]  %s7093_s9, 22528, %s48_s25, [#allocation3], %s6026_s27, %s6026_s27, %s6027_s28  }
  0x10   :  { %6021 = dma.done.wait [#allocation3], 22528  }
  0x11   :  { %6022 = vsyncadd [#allocation3], 4294944768  ;;  %vm107_vm0 = vcmask 1043456   ;;  %s7106_s19 = sld [smem:[#allocation9_spill]]  ;;  %vm88_vm1 = vcmask 31744   ;;  %v71_v7 = vlaneseq  ;;  %s6028_s30 = smov 96  }
  0x12   :  { %s7107_s21 = sld [smem:[#allocation8_spill]]  ;;  %v343_v15 = vld [vmem:[%s7089_s5 + $0x18] sm:$0xff]  ;;  %s6029_s20 = smov 64   ;;  %v342_v19 = vld [vmem:[%s7089_s5 + $0x10] sm:$0xff]  ;;  %v341_v20 = vld [vmem:[%s7089_s5 + $0x8] sm:$0xff]  ;;  %v6030_v24 = vmov 0.0  }
  0x13   :  { %v6157_v8 = vshrl.u32 %v71_v7, 7  ;;  %v340_v22 = vld [vmem:[%s7089_s5] sm:$0xff]  ;;  %vm347_vm4 = vcmask 261120   ;;  %vm6031_vm6 = vmmov 0   ;;  %s6032_s23 = smov [#allocation5]   ;;  %vm4915_vm8 = vcmask 123904  }
  0x14   :  { %v4939_v46 = vld [vmem:[%s7086_s2] ss:$0 sm:$0xff]  ;;  %s4923_s9 = sshll.u32 %s6032_s23, 4  ;;  %s4924_s9 = int_to_ptr.vmem [resolvable:$true] %s4923_s9 }
  0x15   :  { %vm212_vm2 = vcmp.lt.s32.totalorder %v6157_v8, 4  ;;  %vm249_vm3 = vcmp.lt.s32.totalorder %v6157_v8, 2  ;;  %v4940_v60 = vld [vmem:[%s7087_s3] ss:$0 sm:$0xff]  ;;  %p6006_p6 = scmp.lt.s32.totalorder %s4924_s9, %s4924_s9 }
  0x17   :  { %v84_v0 = vld [vmem:[%s7106_s19] sm:$0xf] }
  0x18   :  { %v78_v1 = vld [vmem:[%s7107_s21] sm:$0xff]  ;;  %5339 = vmatprep.subr.msk.mxu0 %vm107_vm0, %v84_v0  ;;  %5971 = vmatprep.subr.msk.mxu1 %vm107_vm0, %v84_v0  ;;  %v79_v3 = vld [vmem:[%s7107_s21 + $0x8] sm:$0xff]  ;;  %v80_v5 = vld [vmem:[%s7107_s21 + $0x10] sm:$0xff] }
  0x19   :  { %v82_v2 = vld [vmem:[%s7107_s21 + $0x20] sm:$0xff]  ;;  %v83_v4 = vld [vmem:[%s7107_s21 + $0x28] sm:$0xff]  ;;  %5340 = vmatpush3.msk.msra.mxu0 %vm107_vm0, %v84_v0  ;;  %5972 = vmatpush3.msk.msra.mxu1 %vm107_vm0, %v84_v0  ;;  %v81_v6 = vld [vmem:[%s7107_s21 + $0x18] sm:$0xff] }
  0x1a   :  { %5341 = vmatprep.mubr.msk.f32.mxu0 %vm88_vm1, %v78_v1  ;;  %5347 = vmatprep.mubr.msk.f32.mxu1 %vm88_vm1, %v82_v2  ;;  %v4941_v2 = vld [vmem:[%s7088_s4] ss:$0 sm:$0xff] }
  0x1b   :  { %5342 = vmatmul.mubr.msk.f32.vlgmr.msra.gmra.mxu0 %vm88_vm1, %v79_v3  ;;  %5348 = vmatmul.mubr.msk.f32.vlgmr.msra.gmra.mxu1 %vm88_vm1, %v83_v4 }
  0x1c   :  { %5344 = vmatprep.mubr.msk.f32.mxu0 %vm88_vm1, %v80_v5  ;;  %5350 = vmatprep.subr.mxu1 %v343_v15 }
  0x1d   :  { %5351 = vmatpush3.msra.mxu1 %v343_v15  ;;  %5367 = vmatprep.subr.mxu0 %v6030_v24 }
  0x1e   :  { %5352 = vmatprep.subr.mxu1 %v342_v19 }
  0x1f   :  { %5345 = vmatmul.mubr.msk.f32.gmra.mxu0 %vm88_vm1, %v81_v6  ;;  %5353 = vmatpush3.msra.mxu1 %v342_v19 }
  0x20   :  { %5354 = vmatprep.subr.mxu1 %v341_v20  ;;  %5375 = vmatprep.mubr.msk.f32.mxu0 %vm6031_vm6, %v6030_v24 }
  0x21   :  { %5355 = vmatpush3.msra.mxu1 %v341_v20 }
  0x22   :  { %5356 = vmatprep.subr.mxu1 %v340_v22 }
  0x23   :  { %5357 = vmatpush3.msra.mxu1 %v340_v22 }
  0x24   :  { %5378 = vmatprep.subr.mxu1 %v6030_v24 }
  0xdb   :  { %v6159_v9 = vpop.f32.mrf.mxu0  ;;  %v5349_v10 = vpop.f32.mrf.mxu1 }
  0xdc   :  { %v207_v11 = vrot.slane %v6159_v9, 4  ;;  %235 = vrot.lane.b32.xlu0 %v5349_v10, %s6028_s30  ;;  %227 = vrot.lane.b32.xlu1 %v6159_v9, %s6028_s30  ;;  %v211_v13 = vrot.slane %v5349_v10, 4 }
  0xdd   :  { %v177_v12 = vpop.f32.mrf.mxu0  ;;  %v197_v23 = vpop.f32.mrf.mxu1 }
  0xde   :  { %v206_v14 = vrot.slane %v177_v12, 4  ;;  %v210_v50 = vrot.slane %v197_v23, 4 }
  0xdf   :  { %v6169_v16 = vpop.f32.mrf.mxu0 }
  0xe0   :  { %264 = vrot.lane.b32.xlu0 %v6159_v9, %s6029_s20  ;;  %262 = vrot.lane.b32.xlu1 %v177_v12, %s6029_s20  ;;  %v217_v17 = vsel %vm212_vm2, %v206_v14, %v207_v11  ;;  %v218_v18 = vsel %vm212_vm2, %v211_v13, %v206_v14  ;;  %v209_v43 = vrot.slane %v6169_v16, 4 }
  0xe1   :  { %v187_v21 = vpop.f32.mrf.mxu0 }
  0xe2   :  { %v208_v35 = vrot.slane %v187_v21, 4  ;;  %v214_v0 = vsel %vm212_vm2, %v209_v43, %v210_v50 }
  0xe4   :  { %225 = vrot.lane.b32.xlu0 %v177_v12, %s6028_s30  ;;  %229 = vrot.lane.b32.xlu1 %v187_v21, %s6028_s30  ;;  %v216_v49 = vsel %vm212_vm2, %v207_v11, %v208_v35  ;;  %v215_v53 = vsel %vm212_vm2, %v208_v35, %v209_v43 }
  0xe8   :  { %231 = vrot.lane.b32.xlu0 %v6169_v16, %s6028_s30  ;;  %233 = vrot.lane.b32.xlu1 %v197_v23, %s6028_s30 }
  0xec   :  { %266 = vrot.lane.b32.xlu0 %v187_v21, %s6029_s20  ;;  %268 = vrot.lane.b32.xlu1 %v6169_v16, %s6029_s20 }
  0xf0   :  { %270 = vrot.lane.b32.xlu0 %v197_v23, %s6029_s20 }
 0x14e   :  { %v236_v25 = vpop.permute.xlu0 %235  ;;  %v228_v26 = vpop.permute.xlu1 %227 }
 0x14f   :  { %v248_v31 = vrot.slane %v236_v25, 6  ;;  %v244_v32 = vrot.slane %v228_v26, 6 }
 0x152   :  { %v265_v27 = vpop.permute.xlu0 %264  ;;  %v263_v28 = vpop.permute.xlu1 %262 }
 0x156   :  { %v226_v29 = vpop.permute.xlu0 %225  ;;  %v230_v30 = vpop.permute.xlu1 %229 }
 0x157   :  { %v243_v33 = vrot.slane %v226_v29, 6  ;;  %v245_v34 = vrot.slane %v230_v30, 6  ;;  %v589_v30 = vld [vmem:[#allocation2 + $0x38] sm:$0xff] }
 0x158   :  { %5368 = vmatpush3.msra.mxu0 %v589_v30 }
 0x159   :  { %v254_v36 = vsel %vm249_vm3, %v243_v33, %v244_v32  ;;  %v255_v37 = vsel %vm249_vm3, %v248_v31, %v243_v33  ;;  %v253_v42 = vsel %vm249_vm3, %v244_v32, %v245_v34  ;;  %v583_v31 = vld [vmem:[#allocation2 + $0x10] sm:$0xff]  ;;  %5369 = vmatprep.subr.mxu0 %v6030_v24 }
 0x15a   :  { %v256_v38 = vadd.f32 %v255_v37, %v218_v18  ;;  %v257_v39 = vadd.f32 %v254_v36, %v217_v17  ;;  %v232_v40 = vpop.permute.xlu0 %231  ;;  %v234_v41 = vpop.permute.xlu1 %233  ;;  %v258_v51 = vadd.f32 %v253_v42, %v216_v49  ;;  %v6231_v18 = vadd.s32 32, %v6157_v8  ;;  %v588_v33 = vld [vmem:[#allocation2 + $0x30] sm:$0xff]  ;;  %v587_v36 = vld [vmem:[#allocation2 + $0x28] sm:$0xff]  ;;  %v581_v37 = vld [vmem:[#allocation2] sm:$0xff] }
 0x15b   :  { %v246_v44 = vrot.slane %v232_v40, 6  ;;  %v247_v45 = vrot.slane %v234_v41, 6  ;;  %5370 = vmatpush3.msra.mxu0 %v588_v33  ;;  %v6284_v49 = vld [vmem:[%s7090_s6] ss:$0 sm:$0xff] }
 0x15c   :  { %v280_v47 = vadd.f32 %v263_v28, %v256_v38  ;;  %v281_v48 = vadd.f32 %v265_v27, %v257_v39  ;;  %vm332_vm5 = vcmp.lt.s32.totalorder %v6231_v18, 36  ;;  %v584_v28 = vld [vmem:[#allocation2 + $0x18] sm:$0xff]  ;;  %5371 = vmatprep.subr.mxu0 %v6030_v24  ;;  %v586_v38 = vld [vmem:[#allocation2 + $0x20] sm:$0xff] }
 0x15d   :  { %v252_v52 = vsel %vm249_vm3, %v245_v34, %v246_v44  ;;  %v251_v58 = vsel %vm249_vm3, %v246_v44, %v247_v45  ;;  %v582_v34 = vld [vmem:[#allocation2 + $0x8] sm:$0xff]  ;;  %5372 = vmatpush3.msra.mxu0 %v587_v36  ;;  %v898_v36 = vld [vmem:[#allocation2 + $0x98] sm:$0xff] }
 0x15e   :  { %v293_v54 = vadd.f32 %v4939_v46, %v281_v48  ;;  %v267_v55 = vpop.permute.xlu0 %266  ;;  %v269_v56 = vpop.permute.xlu1 %268  ;;  %v259_v57 = vadd.f32 %v252_v52, %v215_v53  ;;  %v292_v59 = vadd.f32 %v4939_v46, %v280_v47  ;;  %v260_v4 = vadd.f32 %v251_v58, %v214_v0  ;;  %5373 = vmatprep.subr.mxu0 %v6030_v24  ;;  %v819_v0 = vld [vmem:[#allocation2 + $0x78] sm:$0xff] }
 0x15f   :  { %v282_v61 = vadd.f32 %v267_v55, %v258_v51  ;;  %5374 = vmatpush3.msra.mxu0 %v586_v38  ;;  %v976_v38 = vld [vmem:[#allocation2 + $0xb0] sm:$0xff] }
 0x160   :  { %v299_v62 = vmax.f32 %v293_v54, 0.0  ;;  %v283_v63 = vadd.f32 %v269_v56, %v259_v57  ;;  %v298_v1 = vmax.f32 %v292_v59, 0.0  ;;  %5389 = vmatprep.subr.mxu0 %v6030_v24  ;;  %v6295_v56 = vld [vmem:[%s7091_s7] ss:$0 sm:$0xff] }
 0x161   :  { %v294_v3 = vadd.f32 %v4939_v46, %v282_v61  ;;  %v6302_v59 = vld [vmem:[%s7092_s8] ss:$0 sm:$0xff] }
 0x162   :  { %v295_v5 = vadd.f32 %v4939_v46, %v283_v63  ;;  %v271_v6 = vpop.permute.xlu0 %270  ;;  %v310_v7 = vmul.f32 %v4940_v60, %v298_v1  ;;  %v311_v9 = vmul.f32 %v4940_v60, %v299_v62 }
 0x163   :  { %v300_v10 = vmax.f32 %v294_v3, 0.0  ;;  %v284_v11 = vadd.f32 %v271_v6, %v260_v4  ;;  %v818_v6 = vld [vmem:[#allocation2 + $0x70] sm:$0xff] }
 0x164   :  { %v301_v12 = vmax.f32 %v295_v5, 0.0  ;;  %v322_v13 = vadd.f32 %v4941_v2, %v310_v7  ;;  %v323_v14 = vadd.f32 %v4941_v2, %v311_v9  ;;  %v740_v5 = vld [vmem:[#allocation2 + $0x58] sm:$0xff] }
 0x165   :  { %v312_v15 = vmul.f32 %v4940_v60, %v300_v10  ;;  %v296_v16 = vadd.f32 %v4939_v46, %v284_v11  ;;  %v739_v10 = vld [vmem:[#allocation2 + $0x50] sm:$0xff]  ;;  %v817_v11 = vld [vmem:[#allocation2 + $0x68] sm:$0xff] }
 0x166   :  { %v313_v17 = vmul.f32 %v4940_v60, %v301_v12  ;;  %5358 = vmatprep.mubr.msk.f32.mxu1 %vm347_vm4, %v322_v13 }
 0x167   :  { %v324_v19 = vadd.f32 %v4941_v2, %v312_v15  ;;  %v302_v20 = vmax.f32 %v296_v16, 0.0  ;;  %5359 = vmatmul.mubr.msk.f32.vlgmr.msra.gmra.mxu1 %vm347_vm4, %v323_v14 }
 0x168   :  { %v325_v21 = vadd.f32 %v4941_v2, %v313_v17  ;;  %5379 = vmatpush3.msra.mxu1 %v584_v28  ;;  %v738_v17 = vld [vmem:[#allocation2 + $0x48] sm:$0xff] }
 0x169   :  { %v314_v22 = vmul.f32 %v4940_v60, %v302_v20  ;;  %5361 = vmatprep.mubr.msk.f32.mxu1 %vm347_vm4, %v324_v19  ;;  %5380 = vmatprep.subr.mxu1 %v6030_v24  ;;  %v816_v19 = vld [vmem:[#allocation2 + $0x60] sm:$0xff] }
 0x16a   :  { %5381 = vmatpush3.msra.mxu1 %v583_v31 }
 0x16b   :  { %5362 = vmatmul.mubr.msk.f32.gmra.mxu1 %vm347_vm4, %v325_v21  ;;  %v326_v23 = vadd.f32 %v4941_v2, %v314_v22  ;;  %5382 = vmatprep.subr.mxu1 %v6030_v24 }
 0x16c   :  { %5383 = vmatpush3.msra.mxu1 %v582_v34 }
 0x16d   :  { %v338_v25 = vsel %vm332_vm5, %v326_v23, 0.0  ;;  %5384 = vmatprep.subr.mxu1 %v6030_v24 }
 0x16e   :  { %5364 = vmatprep.mubr.msk.f32.mxu1 %vm347_vm4, %v338_v25  ;;  %5385 = vmatpush3.msra.mxu1 %v581_v37 }
 0x16f   :  { %5365 = vmatmul.mubr.f32.gmra.mxu1 %v6030_v24  ;;  %5400 = vmatprep.subr.mxu1 %v6030_v24 }
 0x170   :  { %5386 = vmatprep.mubr.msk.f32.mxu1 %vm6031_vm6, %v6030_v24 }
 0x227   :  { %v6241_v26 = vpop.f32.mrf.mxu1 }
 0x229   :  { %v432_v27 = vpop.f32.mrf.mxu1 }
 0x22a   :  { %467 = vrot.lane.b32.xlu1 %v432_v27, %s6028_s30 }
 0x22b   :  { %v6244_v29 = vpop.f32.mrf.mxu1 }
 0x22d   :  { %v6247_v32 = vpop.f32.mrf.mxu1 }
 0x22e   :  { %503 = vrot.lane.b32.xlu1 %v432_v27, %s6029_s20 }
 0x22f   :  { %v5366_v35 = vpop.f32.mrf.mxu1 }
 0x230   :  { %477 = vrot.lane.b32.xlu0 %v5366_v35, %s6028_s30 }
 0x231   :  { %v452_v39 = vpop.f32.mrf.mxu1 }
 0x232   :  { %505 = vrot.lane.b32.xlu1 %v6241_v26, %s6029_s20 }
 0x234   :  { %469 = vrot.lane.b32.xlu0 %v6241_v26, %s6028_s30 }
 0x236   :  { %507 = vrot.lane.b32.xlu1 %v6247_v32, %s6029_s20 }
 0x238   :  { %471 = vrot.lane.b32.xlu0 %v6247_v32, %s6028_s30 }
 0x23a   :  { %509 = vrot.lane.b32.xlu1 %v6244_v29, %s6029_s20 }
 0x23c   :  { %473 = vrot.lane.b32.xlu0 %v6244_v29, %s6028_s30 }
 0x23e   :  { %511 = vrot.lane.b32.xlu1 %v452_v39, %s6029_s20 }
 0x240   :  { %475 = vrot.lane.b32.xlu0 %v452_v39, %s6028_s30 }
 0x244   :  { %513 = vrot.lane.b32.xlu0 %v5366_v35, %s6029_s20 }
 0x29c   :  { %v468_v40 = vpop.permute.xlu1 %467 }
 0x29d   :  { %v485_v43 = vrot.slane %v468_v40, 4  ;;  %v897_v40 = vld [vmem:[#allocation2 + $0x90] sm:$0xff] }
 0x2a0   :  { %v504_v41 = vpop.permute.xlu1 %503 }
 0x2a2   :  { %v478_v42 = vpop.permute.xlu0 %477 }
 0x2a3   :  { %v490_v44 = vrot.slane %v478_v42, 4 }
 0x2a4   :  { %v506_v46 = vpop.permute.xlu1 %505 }
 0x2a5   :  { %v496_v45 = vsel %vm212_vm2, %v490_v44, %v485_v43 }
 0x2a6   :  { %v497_v47 = vadd.f32 %v5366_v35, %v496_v45  ;;  %v6279_v48 = vpop.permute.xlu0 %469 }
 0x2a7   :  { %v486_v50 = vrot.slane %v6279_v48, 4  ;;  %v974_v48 = vld [vmem:[#allocation2 + $0xa0] sm:$0xff] }
 0x2a8   :  { %v521_v51 = vadd.f32 %v504_v41, %v497_v47  ;;  %v6297_v57 = vpop.permute.xlu1 %507 }
 0x2a9   :  { %v495_v52 = vsel %vm212_vm2, %v485_v43, %v486_v50 }
 0x2aa   :  { %v533_v53 = vadd.f32 %v6284_v49, %v521_v51  ;;  %v498_v54 = vadd.f32 %v495_v52, %v432_v27  ;;  %v6290_v55 = vpop.permute.xlu0 %471  ;;  %v737_v27 = vld [vmem:[#allocation2 + $0x40] sm:$0xff] }
 0x2ab   :  { %v487_v20 = vrot.slane %v6290_v55, 4  ;;  %v895_v52 = vld [vmem:[#allocation2 + $0x80] sm:$0xff] }
 0x2ac   :  { %v539_v58 = vmax.f32 %v533_v53, 0.0  ;;  %v522_v61 = vadd.f32 %v506_v46, %v498_v54  ;;  %v6308_v1 = vpop.permute.xlu1 %509  ;;  %v896_v46 = vld [vmem:[#allocation2 + $0x88] sm:$0xff]  ;;  %v1135_v53 = vld [vmem:[#allocation2 + $0xf8] sm:$0xff] }
 0x2ad   :  { %v494_v33 = vsel %vm212_vm2, %v486_v50, %v487_v20  ;;  %v1056_v54 = vld [vmem:[#allocation2 + $0xd8] sm:$0xff] }
 0x2ae   :  { %v551_v60 = vmul.f32 %v6295_v56, %v539_v58  ;;  %v6305_v62 = vpop.permute.xlu0 %473  ;;  %v534_v2 = vadd.f32 %v6284_v49, %v522_v61  ;;  %v499_v42 = vadd.f32 %v6241_v26, %v494_v33  ;;  %v1134_v58 = vld [vmem:[#allocation2 + $0xf0] sm:$0xff]  ;;  %v1133_v61 = vld [vmem:[#allocation2 + $0xe8] sm:$0xff] }
 0x2af   :  { %v488_v7 = vrot.slane %v6305_v62, 4  ;;  %v1213_v62 = vld [vmem:[#allocation2 + $0x110] sm:$0xff] }
 0x2b0   :  { %v563_v63 = vadd.f32 %v6302_v59, %v551_v60  ;;  %v540_v14 = vmax.f32 %v534_v2, 0.0  ;;  %v512_v21 = vpop.permute.xlu1 %511  ;;  %v523_v50 = vadd.f32 %v6297_v57, %v499_v42  ;;  %v1055_v60 = vld [vmem:[#allocation2 + $0xd0] sm:$0xff]  ;;  %v1132_v2 = vld [vmem:[#allocation2 + $0xe0] sm:$0xff]  ;;  %v1688_v42 = vld [vmem:[#allocation2 + $0x1d8] sm:$0xff] }
 0x2b2   :  { %5387 = vmatmul.mubr.msk.f32.vlgmr.msra.gmra.mxu1 %vm347_vm4, %v563_v63  ;;  %v476_v3 = vpop.permute.xlu0 %475  ;;  %v591_v4 = vrot.slane %v563_v63, 2  ;;  %v820_v25 = vrot.slane %v563_v63, 6  ;;  %v552_v30 = vmul.f32 %v6295_v56, %v540_v14  ;;  %v741_v35 = vrot.slane %v563_v63, 4  ;;  %v1054_v63 = vld [vmem:[#allocation2 + $0xc8] sm:$0xff] }
 0x2b3   :  { %5401 = vmatpush3.msra.mxu1 %v819_v0  ;;  %v489_v9 = vrot.slane %v476_v3, 4  ;;  %5408 = vmatprep.mubr.msk.f32.mxu1 %vm6031_vm6, %v6030_v24  ;;  %v535_v57 = vadd.f32 %v6284_v49, %v523_v50  ;;  %v1212_v14 = vld [vmem:[#allocation2 + $0x108] sm:$0xff] }
 0x2b4   :  { %5402 = vmatprep.subr.mxu1 %v6030_v24  ;;  %5376 = vmatmul.mubr.msk.f32.vlgmr.msra.gmra.mxu0 %vm347_vm4, %v591_v4  ;;  %v6344_v41 = vadd.f32 %v6302_v59, %v552_v30  ;;  %v1053_v4 = vld [vmem:[#allocation2 + $0xc0] sm:$0xff]  ;;  %v1609_v30 = vld [vmem:[#allocation2 + $0x1b8] sm:$0xff] }
 0x2b5   :  { %v492_v12 = vsel %vm212_vm2, %v488_v7, %v489_v9  ;;  %5390 = vmatpush3.msra.mxu0 %v740_v5  ;;  %5403 = vmatpush3.msra.mxu1 %v818_v6  ;;  %v491_v13 = vsel %vm212_vm2, %v489_v9, %v490_v44  ;;  %v975_v44 = vld [vmem:[#allocation2 + $0xa8] sm:$0xff]  ;;  %v541_v0 = vmax.f32 %v535_v57, 0.0  ;;  %v1293_v5 = vld [vmem:[#allocation2 + $0x138] sm:$0xff]  ;;  %v493_v9 = vsel %vm212_vm2, %v487_v20, %v488_v7  ;;  %v1924_v57 = vld [vmem:[#allocation2 + $0x230] sm:$0xff] }
 0x2b6   :  { %v501_v15 = vadd.f32 %v6244_v29, %v492_v12  ;;  %5391 = vmatprep.subr.mxu0 %v6030_v24  ;;  %5404 = vmatprep.subr.mxu1 %v6030_v24  ;;  %v514_v16 = vpop.permute.xlu0 %513  ;;  %v502_v22 = vadd.f32 %v491_v13, %v452_v39  ;;  %v977_v29 = vld [vmem:[#allocation2 + $0xb8] sm:$0xff]  ;;  %v978_v51 = vrot.slane %v6344_v41, 2  ;;  %v1136_v3 = vrot.slane %v6344_v41, 6  ;;  %v1292_v12 = vld [vmem:[#allocation2 + $0x130] sm:$0xff]  ;;  %v1291_v13 = vld [vmem:[#allocation2 + $0x128] sm:$0xff] }
 0x2b7   :  { %5392 = vmatpush3.msra.mxu0 %v739_v10  ;;  %5405 = vmatpush3.msra.mxu1 %v817_v11  ;;  %v553_v6 = vmul.f32 %v6295_v56, %v541_v0  ;;  %v1057_v10 = vrot.slane %v6344_v41, 4  ;;  %v1214_v11 = vld [vmem:[#allocation2 + $0x118] sm:$0xff]  ;;  %v500_v7 = vadd.f32 %v493_v9, %v6247_v32  ;;  %v2081_v9 = vld [vmem:[#allocation2 + $0x268] sm:$0xff] }
 0x2b8   :  { %v525_v23 = vadd.f32 %v512_v21, %v501_v15  ;;  %5393 = vmatprep.subr.mxu0 %v6030_v24  ;;  %5406 = vmatprep.subr.mxu1 %v6030_v24  ;;  %v526_v28 = vadd.f32 %v514_v16, %v502_v22  ;;  %v1290_v15 = vld [vmem:[#allocation2 + $0x120] sm:$0xff]  ;;  %v1372_v20 = vld [vmem:[#allocation2 + $0x158] sm:$0xff]  ;;  %v1450_v21 = vld [vmem:[#allocation2 + $0x170] sm:$0xff] }
 0x2b9   :  { %5394 = vmatpush3.msra.mxu0 %v738_v17  ;;  %5407 = vmatpush3.msra.mxu1 %v816_v19  ;;  %v6397_v55 = vadd.f32 %v6302_v59, %v553_v6  ;;  %v524_v16 = vadd.f32 %v6308_v1, %v500_v7  ;;  %v1211_v17 = vld [vmem:[#allocation2 + $0x100] sm:$0xff]  ;;  %v1451_v19 = vld [vmem:[#allocation2 + $0x178] sm:$0xff]  ;;  %v1371_v22 = vld [vmem:[#allocation2 + $0x150] sm:$0xff] }
 0x2ba   :  { %v537_v31 = vadd.f32 %v6284_v49, %v525_v23  ;;  %5395 = vmatprep.subr.mxu0 %v6030_v24  ;;  %5409 = vmatmul.mubr.msk.f32.vlgmr.msra.gmra.mxu1 %vm347_vm4, %v820_v25  ;;  %v538_v34 = vadd.f32 %v6284_v49, %v526_v28  ;;  %v1449_v23 = vld [vmem:[#allocation2 + $0x168] sm:$0xff]  ;;  %v2003_v6 = vld [vmem:[#allocation2 + $0x250] sm:$0xff]  ;;  %v2241_v7 = vld [vmem:[#allocation2 + $0x2b8] sm:$0xff] }
 0x2bb   :  { %5422 = vmatprep.subr.mxu1 %v6030_v24  ;;  %5396 = vmatpush3.msra.mxu0 %v737_v27  ;;  %v1294_v32 = vrot.slane %v6397_v55, 2  ;;  %v536_v1 = vadd.f32 %v6284_v49, %v524_v16  ;;  %v1370_v25 = vld [vmem:[#allocation2 + $0x148] sm:$0xff]  ;;  %v1448_v27 = vld [vmem:[#allocation2 + $0x160] sm:$0xff]  ;;  %v1452_v28 = vrot.slane %v6397_v55, 6  ;;  %v1373_v33 = vrot.slane %v6397_v55, 4  ;;  %v2161_v16 = vld [vmem:[#allocation2 + $0x290] sm:$0xff] }
 0x2bc   :  { %v543_v37 = vmax.f32 %v537_v31, 0.0  ;;  %5397 = vmatprep.mubr.msk.f32.mxu0 %vm6031_vm6, %v6030_v24  ;;  %5423 = vmatpush3.msra.mxu1 %v977_v29  ;;  %v544_v39 = vmax.f32 %v538_v34, 0.0  ;;  %v1369_v29 = vld [vmem:[#allocation2 + $0x140] sm:$0xff]  ;;  %v1530_v34 = vld [vmem:[#allocation2 + $0x198] sm:$0xff] }
 0x2bd   :  { %5398 = vmatmul.mubr.msk.f32.vlgmr.msra.gmra.mxu0 %vm347_vm4, %v741_v35  ;;  %5411 = vmatprep.subr.mxu0 %v6030_v24  ;;  %v542_v49 = vmax.f32 %v536_v1, 0.0  ;;  %v1608_v35 = vld [vmem:[#allocation2 + $0x1b0] sm:$0xff]  ;;  %v2159_v1 = vld [vmem:[#allocation2 + $0x280] sm:$0xff] }
 0x2be   :  { %v555_v43 = vmul.f32 %v6295_v56, %v543_v37  ;;  %5424 = vmatprep.subr.mxu1 %v6030_v24  ;;  %5412 = vmatpush3.msra.mxu0 %v898_v36  ;;  %v556_v45 = vmul.f32 %v6295_v56, %v544_v39  ;;  %v1607_v37 = vld [vmem:[#allocation2 + $0x1a8] sm:$0xff]  ;;  %v1606_v39 = vld [vmem:[#allocation2 + $0x1a0] sm:$0xff] }
 0x2bf   :  { %5425 = vmatpush3.msra.mxu1 %v976_v38  ;;  %5413 = vmatprep.subr.mxu0 %v6030_v24  ;;  %v554_v31 = vmul.f32 %v6295_v56, %v542_v49  ;;  %v1529_v56 = vld [vmem:[#allocation2 + $0x190] sm:$0xff]  ;;  %v1528_v38 = vld [vmem:[#allocation2 + $0x188] sm:$0xff] }
 0x2c0   :  { %v6352_v47 = vadd.f32 %v6302_v59, %v555_v43  ;;  %5426 = vmatprep.subr.mxu1 %v6030_v24  ;;  %5414 = vmatpush3.msra.mxu0 %v897_v40  ;;  %v6356_v26 = vadd.f32 %v6302_v59, %v556_v45  ;;  %v1766_v43 = vld [vmem:[#allocation2 + $0x1f0] sm:$0xff]  ;;  %v1765_v45 = vld [vmem:[#allocation2 + $0x1e8] sm:$0xff] }
 0x2c1   :  { %5427 = vmatpush3.msra.mxu1 %v975_v44  ;;  %5415 = vmatprep.subr.mxu0 %v6030_v24  ;;  %v566_v36 = vadd.f32 %v6302_v59, %v554_v31  ;;  %v1527_v59 = vld [vmem:[#allocation2 + $0x180] sm:$0xff]  ;;  %v1687_v44 = vld [vmem:[#allocation2 + $0x1d0] sm:$0xff] }
 0x2c2   :  { %5428 = vmatprep.subr.mxu1 %v6030_v24  ;;  %5416 = vmatpush3.msra.mxu0 %v896_v46  ;;  %v1686_v46 = vld [vmem:[#allocation2 + $0x1c8] sm:$0xff]  ;;  %v1926_v0 = vrot.slane %v6352_v47, 2  ;;  %v4977_v49 = vld [vmem:[%s7107_s21 + $0x50] sm:$0xff] }
 0x2c3   :  { %5429 = vmatpush3.msra.mxu1 %v974_v48  ;;  %5430 = vmatprep.mubr.msk.f32.mxu1 %vm6031_vm6, %v6030_v24  ;;  %v1610_v40 = vrot.slane %v566_v36, 2  ;;  %v1764_v48 = vld [vmem:[#allocation2 + $0x1e0] sm:$0xff]  ;;  %v1768_v50 = vrot.slane %v566_v36, 6 }
 0x2c4   :  { %5417 = vmatprep.subr.mxu0 %v6030_v24  ;;  %5431 = vmatmul.mubr.msk.f32.vlgmr.msra.gmra.mxu1 %vm347_vm4, %v978_v51  ;;  %v1685_v51 = vld [vmem:[#allocation2 + $0x1c0] sm:$0xff] }
 0x2c5   :  { %5444 = vmatprep.subr.mxu1 %v6030_v24  ;;  %5418 = vmatpush3.msra.mxu0 %v895_v52  ;;  %v1925_v52 = vld [vmem:[#allocation2 + $0x238] sm:$0xff] }
 0x2c6   :  { %5419 = vmatprep.mubr.msk.f32.mxu0 %vm6031_vm6, %v6030_v24  ;;  %5445 = vmatpush3.msra.mxu1 %v1135_v53  ;;  %v1689_v53 = vrot.slane %v566_v36, 4 }
 0x2c7   :  { %5420 = vmatmul.mubr.msk.f32.vlgmr.msra.gmra.mxu0 %vm347_vm4, %v6344_v41  ;;  %5433 = vmatprep.subr.mxu0 %v6030_v24  ;;  %v1767_v41 = vld [vmem:[#allocation2 + $0x1f8] sm:$0xff] }
 0x2c8   :  { %5446 = vmatprep.subr.mxu1 %v6030_v24  ;;  %5434 = vmatpush3.msra.mxu0 %v1056_v54  ;;  %v1846_v54 = vld [vmem:[#allocation2 + $0x218] sm:$0xff] }
 0x2c9   :  { %5447 = vmatpush3.msra.mxu1 %v1134_v58  ;;  %5435 = vmatprep.subr.mxu0 %v6030_v24  ;;  %v1845_v58 = vld [vmem:[#allocation2 + $0x210] sm:$0xff] }
 0x2ca   :  { %5448 = vmatprep.subr.mxu1 %v6030_v24  ;;  %5436 = vmatpush3.msra.mxu0 %v1055_v60  ;;  %v1923_v60 = vld [vmem:[#allocation2 + $0x228] sm:$0xff] }
 0x2cb   :  { %5449 = vmatpush3.msra.mxu1 %v1133_v61  ;;  %5437 = vmatprep.subr.mxu0 %v6030_v24  ;;  %v1844_v61 = vld [vmem:[#allocation2 + $0x208] sm:$0xff] }
 0x2cc   :  { %5450 = vmatprep.subr.mxu1 %v6030_v24  ;;  %5438 = vmatpush3.msra.mxu0 %v1054_v63  ;;  %v1922_v63 = vld [vmem:[#allocation2 + $0x220] sm:$0xff] }
 0x2cd   :  { %5451 = vmatpush3.msra.mxu1 %v1132_v2  ;;  %5452 = vmatprep.mubr.msk.f32.mxu1 %vm6031_vm6, %v6030_v24  ;;  %v1843_v2 = vld [vmem:[#allocation2 + $0x200] sm:$0xff] }
 0x2ce   :  { %5439 = vmatprep.subr.mxu0 %v6030_v24  ;;  %5453 = vmatmul.mubr.msk.f32.vlgmr.msra.gmra.mxu1 %vm347_vm4, %v1136_v3  ;;  %v2083_v3 = vld [vmem:[#allocation2 + $0x278] sm:$0xff] }
 0x2cf   :  { %5466 = vmatprep.subr.mxu1 %v6030_v24  ;;  %5440 = vmatpush3.msra.mxu0 %v1053_v4  ;;  %v2004_v4 = vld [vmem:[#allocation2 + $0x258] sm:$0xff] }
 0x2d0   :  { %5441 = vmatprep.mubr.msk.f32.mxu0 %vm6031_vm6, %v6030_v24  ;;  %5467 = vmatpush3.msra.mxu1 %v1293_v5  ;;  %v2082_v5 = vld [vmem:[#allocation2 + $0x270] sm:$0xff] }
 0x2d1   :  { %5442 = vmatmul.mubr.msk.f32.vlgmr.msra.gmra.mxu0 %vm347_vm4, %v1057_v10  ;;  %5455 = vmatprep.subr.mxu0 %v6030_v24  ;;  %v2002_v10 = vld [vmem:[#allocation2 + $0x248] sm:$0xff] }
 0x2d2   :  { %5468 = vmatprep.subr.mxu1 %v6030_v24  ;;  %5456 = vmatpush3.msra.mxu0 %v1214_v11  ;;  %v2080_v11 = vld [vmem:[#allocation2 + $0x260] sm:$0xff] }
 0x2d3   :  { %5469 = vmatpush3.msra.mxu1 %v1292_v12  ;;  %5457 = vmatprep.subr.mxu0 %v6030_v24  ;;  %v6485_v12 = vadd.s32 40, %v6157_v8 }
 0x2d4   :  { %5470 = vmatprep.subr.mxu1 %v6030_v24  ;;  %5458 = vmatpush3.msra.mxu0 %v1213_v62  ;;  %v2084_v62 = vrot.slane %v6352_v47, 6 }
 0x2d5   :  { %5471 = vmatpush3.msra.mxu1 %v1291_v13  ;;  %5459 = vmatprep.subr.mxu0 %v6030_v24  ;;  %v2005_v13 = vrot.slane %v6352_v47, 4  ;;  %vm574_vm7 = vcmp.lt.s32.totalorder %v6485_v12, 44  ;;  %v4319_v12 = vld [vmem:[#allocation2 + $0x520] sm:$0xff] }
 0x2d6   :  { %5472 = vmatprep.subr.mxu1 %v6030_v24  ;;  %5460 = vmatpush3.msra.mxu0 %v1212_v14  ;;  %v2162_v14 = vld [vmem:[#allocation2 + $0x298] sm:$0xff] }
 0x2d7   :  { %5473 = vmatpush3.msra.mxu1 %v1290_v15  ;;  %5474 = vmatprep.mubr.msk.f32.mxu1 %vm6031_vm6, %v6030_v24  ;;  %v2240_v15 = vld [vmem:[#allocation2 + $0x2b0] sm:$0xff] }
 0x2d8   :  { %5461 = vmatprep.subr.mxu0 %v6030_v24  ;;  %5475 = vmatmul.mubr.msk.f32.vlgmr.msra.gmra.mxu1 %vm347_vm4, %v1294_v32  ;;  %v2239_v32 = vld [vmem:[#allocation2 + $0x2a8] sm:$0xff] }
 0x2d9   :  { %5488 = vmatprep.subr.mxu1 %v6030_v24  ;;  %5462 = vmatpush3.msra.mxu0 %v1211_v17  ;;  %v2160_v17 = vld [vmem:[#allocation2 + $0x288] sm:$0xff] }
 0x2da   :  { %5463 = vmatprep.mubr.msk.f32.mxu0 %vm6031_vm6, %v6030_v24  ;;  %5489 = vmatpush3.msra.mxu1 %v1451_v19  ;;  %v2238_v19 = vld [vmem:[#allocation2 + $0x2a0] sm:$0xff] }
 0x2db   :  { %5464 = vmatmul.mubr.msk.f32.vlgmr.msra.gmra.mxu0 %vm347_vm4, %v6397_v55  ;;  %5477 = vmatprep.subr.mxu0 %v6030_v24  ;;  %v2001_v55 = vld [vmem:[#allocation2 + $0x240] sm:$0xff] }
 0x2dc   :  { %5490 = vmatprep.subr.mxu1 %v6030_v24  ;;  %5478 = vmatpush3.msra.mxu0 %v1372_v20 }
 0x2dd   :  { %5491 = vmatpush3.msra.mxu1 %v1450_v21  ;;  %5479 = vmatprep.subr.mxu0 %v6030_v24  ;;  %v4973_v21 = vld [vmem:[%s7107_s21 + $0x30] sm:$0xff] }
 0x2de   :  { %5492 = vmatprep.subr.mxu1 %v6030_v24  ;;  %5480 = vmatpush3.msra.mxu0 %v1371_v22  ;;  %v4974_v22 = vld [vmem:[%s7107_s21 + $0x38] sm:$0xff] }
 0x2df   :  { %5493 = vmatpush3.msra.mxu1 %v1449_v23  ;;  %5481 = vmatprep.subr.mxu0 %v6030_v24  ;;  %v4975_v23 = vld [vmem:[%s7107_s21 + $0x40] sm:$0xff] }
 0x2e0   :  { %5494 = vmatprep.subr.mxu1 %v6030_v24  ;;  %5482 = vmatpush3.msra.mxu0 %v1370_v25  ;;  %v4976_v25 = vld [vmem:[%s7107_s21 + $0x48] sm:$0xff] }
 0x2e1   :  { %5495 = vmatpush3.msra.mxu1 %v1448_v27  ;;  %5496 = vmatprep.mubr.msk.f32.mxu1 %vm6031_vm6, %v6030_v24  ;;  %v4978_v27 = vld [vmem:[%s7107_s21 + $0x58] sm:$0xff] }
 0x2e2   :  { %5483 = vmatprep.subr.mxu0 %v6030_v24  ;;  %5497 = vmatmul.mubr.msk.f32.vlgmr.msra.gmra.mxu1 %vm347_vm4, %v1452_v28 }
 0x2e3   :  { %5510 = vmatprep.subr.mxu1 %v6030_v24  ;;  %5484 = vmatpush3.msra.mxu0 %v1369_v29 }
 0x2e4   :  { %5485 = vmatprep.mubr.msk.f32.mxu0 %vm6031_vm6, %v6030_v24  ;;  %5511 = vmatpush3.msra.mxu1 %v1609_v30 }
 0x2e5   :  { %5486 = vmatmul.mubr.msk.f32.vlgmr.msra.gmra.mxu0 %vm347_vm4, %v1373_v33  ;;  %5499 = vmatprep.subr.mxu0 %v6030_v24 }
 0x2e6   :  { %5512 = vmatprep.subr.mxu1 %v6030_v24  ;;  %5500 = vmatpush3.msra.mxu0 %v1530_v34 }
 0x2e7   :  { %5513 = vmatpush3.msra.mxu1 %v1608_v35  ;;  %5501 = vmatprep.subr.mxu0 %v6030_v24 }
 0x2e8   :  { %5514 = vmatprep.subr.mxu1 %v6030_v24  ;;  %5502 = vmatpush3.msra.mxu0 %v1529_v56 }
 0x2e9   :  { %5515 = vmatpush3.msra.mxu1 %v1607_v37  ;;  %5503 = vmatprep.subr.mxu0 %v6030_v24 }
 0x2ea   :  { %5516 = vmatprep.subr.mxu1 %v6030_v24  ;;  %5504 = vmatpush3.msra.mxu0 %v1528_v38 }
 0x2eb   :  { %5517 = vmatpush3.msra.mxu1 %v1606_v39  ;;  %5518 = vmatprep.mubr.msk.f32.mxu1 %vm6031_vm6, %v6030_v24 }
 0x2ec   :  { %5505 = vmatprep.subr.mxu0 %v6030_v24  ;;  %5519 = vmatmul.mubr.msk.f32.vlgmr.msra.gmra.mxu1 %vm347_vm4, %v1610_v40 }
 0x2ed   :  { %5532 = vmatprep.subr.mxu1 %v6030_v24  ;;  %5506 = vmatpush3.msra.mxu0 %v1527_v59 }
 0x2ee   :  { %5507 = vmatprep.mubr.msk.f32.mxu0 %vm6031_vm6, %v6030_v24  ;;  %5533 = vmatpush3.msra.mxu1 %v1767_v41 }
 0x2ef   :  { %5508 = vmatmul.mubr.msk.f32.vlgmr.msra.gmra.mxu0 %vm347_vm4, %v566_v36  ;;  %5521 = vmatprep.subr.mxu0 %v6030_v24 }
 0x2f0   :  { %5534 = vmatprep.subr.mxu1 %v6030_v24  ;;  %5522 = vmatpush3.msra.mxu0 %v1688_v42 }
 0x2f1   :  { %5535 = vmatpush3.msra.mxu1 %v1766_v43  ;;  %5523 = vmatprep.subr.mxu0 %v6030_v24 }
 0x2f2   :  { %5536 = vmatprep.subr.mxu1 %v6030_v24  ;;  %5524 = vmatpush3.msra.mxu0 %v1687_v44 }
 0x2f3   :  { %5537 = vmatpush3.msra.mxu1 %v1765_v45  ;;  %5525 = vmatprep.subr.mxu0 %v6030_v24 }
 0x2f4   :  { %5538 = vmatprep.subr.mxu1 %v6030_v24  ;;  %5526 = vmatpush3.msra.mxu0 %v1686_v46 }
 0x2f5   :  { %5539 = vmatpush3.msra.mxu1 %v1764_v48  ;;  %5540 = vmatprep.mubr.msk.f32.mxu1 %vm6031_vm6, %v6030_v24 }
 0x2f6   :  { %5527 = vmatprep.subr.mxu0 %v6030_v24  ;;  %5541 = vmatmul.mubr.msk.f32.vlgmr.msra.gmra.mxu1 %vm347_vm4, %v1768_v50 }
 0x2f7   :  { %5554 = vmatprep.subr.mxu1 %v6030_v24  ;;  %5528 = vmatpush3.msra.mxu0 %v1685_v51 }
 0x2f8   :  { %5529 = vmatprep.mubr.msk.f32.mxu0 %vm6031_vm6, %v6030_v24  ;;  %5555 = vmatpush3.msra.mxu1 %v1925_v52 }
 0x2f9   :  { %5530 = vmatmul.mubr.msk.f32.vlgmr.msra.gmra.mxu0 %vm347_vm4, %v1689_v53  ;;  %5543 = vmatprep.subr.mxu0 %v6030_v24 }
 0x2fa   :  { %5556 = vmatprep.subr.mxu1 %v6030_v24  ;;  %5544 = vmatpush3.msra.mxu0 %v1846_v54 }
 0x2fb   :  { %5557 = vmatpush3.msra.mxu1 %v1924_v57  ;;  %5545 = vmatprep.subr.mxu0 %v6030_v24 }
 0x2fc   :  { %5558 = vmatprep.subr.mxu1 %v6030_v24  ;;  %5546 = vmatpush3.msra.mxu0 %v1845_v58 }
 0x2fd   :  { %5559 = vmatpush3.msra.mxu1 %v1923_v60  ;;  %5547 = vmatprep.subr.mxu0 %v6030_v24 }
 0x2fe   :  { %5560 = vmatprep.subr.mxu1 %v6030_v24  ;;  %5548 = vmatpush3.msra.mxu0 %v1844_v61 }
 0x2ff   :  { %5561 = vmatpush3.msra.mxu1 %v1922_v63  ;;  %5562 = vmatprep.mubr.msk.f32.mxu1 %vm6031_vm6, %v6030_v24 }
 0x300   :  { %5549 = vmatprep.subr.mxu0 %v6030_v24  ;;  %5563 = vmatmul.mubr.msk.f32.vlgmr.msra.gmra.mxu1 %vm347_vm4, %v1926_v0 }
 0x301   :  { %5576 = vmatprep.subr.mxu1 %v6030_v24  ;;  %5550 = vmatpush3.msra.mxu0 %v1843_v2 }
 0x302   :  { %5551 = vmatprep.mubr.msk.f32.mxu0 %vm6031_vm6, %v6030_v24  ;;  %5577 = vmatpush3.msra.mxu1 %v2083_v3 }
 0x303   :  { %5552 = vmatmul.mubr.msk.f32.vlgmr.msra.gmra.mxu0 %vm347_vm4, %v6352_v47  ;;  %5565 = vmatprep.subr.mxu0 %v6030_v24  ;;  %v580_v47 = vsel %vm574_vm7, %v6356_v26, 0.0  ;;  %v4979_v26 = vld [vmem:[%s7106_s19 + $0x4] sm:$0xf] }
 0x304   :  { %5578 = vmatprep.subr.mxu1 %v6030_v24  ;;  %5566 = vmatpush3.msra.mxu0 %v2004_v4  ;;  %v2242_v20 = vrot.slane %v580_v47, 2 }
 0x305   :  { %5579 = vmatpush3.msra.mxu1 %v2082_v5  ;;  %5567 = vmatprep.subr.mxu0 %v6030_v24 }
 0x306   :  { %5580 = vmatprep.subr.mxu1 %v6030_v24  ;;  %5568 = vmatpush3.msra.mxu0 %v2003_v6 }
 0x307   :  { %5581 = vmatpush3.msra.mxu1 %v2081_v9  ;;  %5569 = vmatprep.subr.mxu0 %v6030_v24 }
 0x308   :  { %5582 = vmatprep.subr.mxu1 %v6030_v24  ;;  %5570 = vmatpush3.msra.mxu0 %v2002_v10 }
 0x309   :  { %5583 = vmatpush3.msra.mxu1 %v2080_v11  ;;  %5584 = vmatprep.mubr.msk.f32.mxu1 %vm6031_vm6, %v6030_v24 }
 0x30a   :  { %5571 = vmatprep.subr.mxu0 %v6030_v24  ;;  %5585 = vmatmul.mubr.msk.f32.vlgmr.msra.gmra.mxu1 %vm347_vm4, %v2084_v62 }
 0x30b   :  { %5598 = vmatprep.subr.mxu1 %v6030_v24  ;;  %5572 = vmatpush3.msra.mxu0 %v2001_v55 }
 0x30c   :  { %5573 = vmatprep.mubr.msk.f32.mxu0 %vm6031_vm6, %v6030_v24  ;;  %5599 = vmatpush3.msra.mxu1 %v2241_v7 }
 0x30d   :  { %5574 = vmatmul.mubr.msk.f32.vlgmr.msra.gmra.mxu0 %vm347_vm4, %v2005_v13  ;;  %5587 = vmatprep.subr.mxu0 %v6030_v24 }
 0x30e   :  { %5600 = vmatprep.subr.mxu1 %v6030_v24  ;;  %5588 = vmatpush3.msra.mxu0 %v2162_v14 }
 0x30f   :  { %5601 = vmatpush3.msra.mxu1 %v2240_v15  ;;  %5589 = vmatprep.subr.mxu0 %v6030_v24 }
 0x310   :  { %5602 = vmatprep.subr.mxu1 %v6030_v24  ;;  %5590 = vmatpush3.msra.mxu0 %v2161_v16 }
 0x311   :  { %5603 = vmatpush3.msra.mxu1 %v2239_v32  ;;  %5591 = vmatprep.subr.mxu0 %v6030_v24 }
 0x312   :  { %5604 = vmatprep.subr.mxu1 %v6030_v24  ;;  %5592 = vmatpush3.msra.mxu0 %v2160_v17 }
 0x313   :  { %5605 = vmatpush3.msra.mxu1 %v2238_v19  ;;  %5606 = vmatprep.mubr.msk.f32.mxu1 %vm6031_vm6, %v6030_v24 }
 0x314   :  { %5593 = vmatprep.subr.mxu0 %v6030_v24  ;;  %5607 = vmatmul.mubr.msk.f32.vlgmr.msra.gmra.mxu1 %vm347_vm4, %v2242_v20 }
 0x315   :  { %5594 = vmatpush3.msra.mxu0 %v2159_v1  ;;  %5595 = vmatprep.mubr.msk.f32.mxu0 %vm6031_vm6, %v6030_v24 }
 0x316   :  { %5596 = vmatmul.mubr.msk.f32.vlgmr.msra.gmra.mxu0 %vm347_vm4, %v580_v47  ;;  %5609 = vmatprep.subr.msk.mxu0 %vm107_vm0, %v4979_v26 }
 0x317   :  { %5610 = vmatpush3.msk.msra.mxu0 %vm107_vm0, %v4979_v26  ;;  %5611 = vmatprep.mubr.msk.f32.mxu0 %vm88_vm1, %v4973_v21 }
 0x318   :  { %5637 = vmatprep.subr.mxu0 %v6030_v24 }
 0x31a   :  { %5612 = vmatmul.mubr.msk.f32.vlgmr.msra.gmra.mxu0 %vm88_vm1, %v4974_v22 }
 0x31b   :  { %5614 = vmatprep.mubr.msk.f32.mxu0 %vm88_vm1, %v4975_v23 }
 0x31e   :  { %5615 = vmatmul.mubr.msk.f32.gmra.mxu0 %vm88_vm1, %v4976_v25 }
 0x31f   :  { %5617 = vmatprep.mubr.msk.f32.mxu0 %vm88_vm1, %v4977_v49 }
 0x322   :  { %5618 = vmatmul.mubr.msk.f32.gmra.mxu0 %vm88_vm1, %v4978_v27 }
 0x323   :  { %5645 = vmatprep.mubr.msk.f32.mxu0 %vm6031_vm6, %v6030_v24 }
 0x372   :  { %v732_v28 = vpop.f32.mrf.mxu1 }
 0x374   :  { %v660_v29 = vpop.f32.mrf.mxu0  ;;  %v5388_v30 = vpop.f32.mrf.mxu1 }
 0x375   :  { %v733_v31 = vadd.f32 %v732_v28, %v660_v29 }
 0x376   :  { %v5377_v33 = vpop.f32.mrf.mxu0 }
 0x37a   :  { %v889_v34 = vpop.f32.mrf.mxu1 }
 0x37c   :  { %v5410_v35 = vpop.f32.mrf.mxu1 }
 0x37d   :  { %v810_v56 = vpop.f32.mrf.mxu0 }
 0x37e   :  { %v814_v36 = vadd.f32 %v810_v56, %v733_v31 }
 0x37f   :  { %v5399_v37 = vpop.f32.mrf.mxu0 }
 0x380   :  { %v893_v38 = vadd.f32 %v889_v34, %v814_v36 }
 0x384   :  { %v1047_v39 = vpop.f32.mrf.mxu1 }
 0x386   :  { %v5432_v40 = vpop.f32.mrf.mxu1 }
 0x387   :  { %v968_v59 = vpop.f32.mrf.mxu0 }
 0x388   :  { %v972_v41 = vadd.f32 %v968_v59, %v893_v38 }
 0x389   :  { %v5421_v42 = vpop.f32.mrf.mxu0 }
 0x38a   :  { %v1051_v43 = vadd.f32 %v1047_v39, %v972_v41  ;;  %v4996_v39 = vld [vmem:[%s7089_s5 + $0x38] sm:$0xff]  ;;  %v4995_v42 = vld [vmem:[%s7089_s5 + $0x30] sm:$0xff] }
 0x38b   :  { %5620 = vmatprep.subr.mxu1 %v4996_v39 }
 0x38c   :  { %5621 = vmatpush3.msra.mxu1 %v4996_v39 }
 0x38d   :  { %5622 = vmatprep.subr.mxu1 %v4995_v42 }
 0x38e   :  { %v1205_v44 = vpop.f32.mrf.mxu1  ;;  %5623 = vmatpush3.msra.mxu1 %v4995_v42 }
 0x390   :  { %v5454_v45 = vpop.f32.mrf.mxu1 }
 0x391   :  { %v1126_v46 = vpop.f32.mrf.mxu0 }
 0x392   :  { %v1130_v48 = vadd.f32 %v1126_v46, %v1051_v43 }
 0x393   :  { %v5443_v50 = vpop.f32.mrf.mxu0 }
 0x394   :  { %v1209_v51 = vadd.f32 %v1205_v44, %v1130_v48  ;;  %v4994_v48 = vld [vmem:[%s7089_s5 + $0x28] sm:$0xff] }
 0x395   :  { %5624 = vmatprep.subr.mxu1 %v4994_v48 }
 0x396   :  { %5625 = vmatpush3.msra.mxu1 %v4994_v48 }
 0x398   :  { %v1363_v52 = vpop.f32.mrf.mxu1 }
 0x39a   :  { %v5476_v53 = vpop.f32.mrf.mxu1 }
 0x39b   :  { %v1284_v54 = vpop.f32.mrf.mxu0 }
 0x39c   :  { %v1288_v57 = vadd.f32 %v1284_v54, %v1209_v51  ;;  %v4993_v51 = vld [vmem:[%s7089_s5 + $0x20] sm:$0xff] }
 0x39d   :  { %v5465_v58 = vpop.f32.mrf.mxu0  ;;  %5626 = vmatprep.subr.mxu1 %v4993_v51 }
 0x39e   :  { %v1367_v60 = vadd.f32 %v1363_v52, %v1288_v57  ;;  %5627 = vmatpush3.msra.mxu1 %v4993_v51 }
 0x39f   :  { %5659 = vmatprep.subr.mxu1 %v6030_v24 }
 0x3a2   :  { %v1521_v61 = vpop.f32.mrf.mxu1 }
 0x3a4   :  { %v5498_v63 = vpop.f32.mrf.mxu1 }
 0x3a5   :  { %v1442_v0 = vpop.f32.mrf.mxu0 }
 0x3a6   :  { %v1446_v2 = vadd.f32 %v1442_v0, %v1367_v60 }
 0x3a7   :  { %v5487_v3 = vpop.f32.mrf.mxu0 }
 0x3a8   :  { %v1525_v4 = vadd.f32 %v1521_v61, %v1446_v2 }
 0x3ac   :  { %v1679_v5 = vpop.f32.mrf.mxu1 }
 0x3ae   :  { %v5520_v6 = vpop.f32.mrf.mxu1 }
 0x3af   :  { %v1600_v9 = vpop.f32.mrf.mxu0 }
 0x3b0   :  { %v1604_v10 = vadd.f32 %v1600_v9, %v1525_v4 }
 0x3b1   :  { %v5509_v11 = vpop.f32.mrf.mxu0 }
 0x3b2   :  { %v1683_v62 = vadd.f32 %v1679_v5, %v1604_v10  ;;  %v4990_v5 = vld [vmem:[%s7086_s2 + $0x1] ss:$0 sm:$0xff] }
 0x3b6   :  { %v1837_v55 = vpop.f32.mrf.mxu1 }
 0x3b8   :  { %v5542_v7 = vpop.f32.mrf.mxu1 }
 0x3b9   :  { %v1758_v13 = vpop.f32.mrf.mxu0 }
 0x3ba   :  { %v1762_v14 = vadd.f32 %v1758_v13, %v1683_v62 }
 0x3bb   :  { %v5531_v15 = vpop.f32.mrf.mxu0 }
 0x3bc   :  { %v1841_v16 = vadd.f32 %v1837_v55, %v1762_v14 }
 0x3c0   :  { %v1995_v32 = vpop.f32.mrf.mxu1 }
 0x3c2   :  { %v5564_v47 = vpop.f32.mrf.mxu1 }
 0x3c3   :  { %v1916_v17 = vpop.f32.mrf.mxu0 }
 0x3c4   :  { %v1920_v19 = vadd.f32 %v1916_v17, %v1841_v16 }
 0x3c5   :  { %v5553_v20 = vpop.f32.mrf.mxu0 }
 0x3c6   :  { %v1999_v1 = vadd.f32 %v1995_v32, %v1920_v19  ;;  %v4991_v19 = vld [vmem:[%s7087_s3 + $0x1] ss:$0 sm:$0xff] }
 0x3ca   :  { %v2153_v26 = vpop.f32.mrf.mxu1 }
 0x3cc   :  { %v5586_v21 = vpop.f32.mrf.mxu1 }
 0x3cd   :  { %v2074_v22 = vpop.f32.mrf.mxu0 }
 0x3ce   :  { %v2078_v23 = vadd.f32 %v2074_v22, %v1999_v1 }
 0x3cf   :  { %v5575_v25 = vpop.f32.mrf.mxu0 }
 0x3d0   :  { %v2157_v49 = vadd.f32 %v2153_v26, %v2078_v23 }
 0x3d4   :  { %v2311_v27 = vpop.f32.mrf.mxu1 }
 0x3d6   :  { %v2232_v28 = vpop.f32.mrf.mxu0  ;;  %v5608_v29 = vpop.f32.mrf.mxu1 }
 0x3d7   :  { %v2236_v30 = vadd.f32 %v2232_v28, %v2157_v49 }
 0x3d8   :  { %v5597_v31 = vpop.f32.mrf.mxu0 }
 0x3d9   :  { %v6547_v33 = vadd.f32 %v2311_v27, %v2236_v30  ;;  %v4992_v30 = vld [vmem:[%s7088_s4 + $0x1] ss:$0 sm:$0xff] }
 0x3da   :  { %v5613_v34 = vpop.f32.mrf.mxu0 }
 0x3db   :  { %2475 = vrot.lane.b32.xlu1 %v5613_v34, %s6028_s30  ;;  %v2456_v56 = vrot.slane %v5613_v34, 4 }
 0x3dc   :  { %v2426_v35 = vpop.f32.mrf.mxu0 }
 0x3dd   :  { %v2455_v36 = vrot.slane %v2426_v35, 4 }
 0x3de   :  { %v6550_v37 = vpop.f32.mrf.mxu0 }
 0x3df   :  { %2473 = vrot.lane.b32.xlu1 %v2426_v35, %s6028_s30  ;;  %v2465_v38 = vsel %vm212_vm2, %v2455_v36, %v2456_v56  ;;  %v2458_v59 = vrot.slane %v6550_v37, 4 }
 0x3e0   :  { %v2436_v40 = vpop.f32.mrf.mxu0 }
 0x3e1   :  { %v2457_v41 = vrot.slane %v2436_v40, 4  ;;  %2477 = vrot.lane.b32.xlu0 %v2436_v40, %s6028_s30 }
 0x3e2   :  { %v5619_v43 = vpop.f32.mrf.mxu0 }
 0x3e3   :  { %v2460_v44 = vrot.slane %v5619_v43, 4  ;;  %2479 = vrot.lane.b32.xlu1 %v6550_v37, %s6028_s30  ;;  %v2464_v45 = vsel %vm212_vm2, %v2456_v56, %v2457_v41  ;;  %v2463_v46 = vsel %vm212_vm2, %v2457_v41, %v2458_v59 }
 0x3e4   :  { %v2446_v52 = vpop.f32.mrf.mxu0 }
 0x3e5   :  { %2483 = vrot.lane.b32.xlu0 %v5619_v43, %s6028_s30  ;;  %v2466_v50 = vsel %vm212_vm2, %v2460_v44, %v2455_v36  ;;  %v2459_v15 = vrot.slane %v2446_v52, 4 }
 0x3e7   :  { %2511 = vrot.lane.b32.xlu1 %v5613_v34, %s6029_s20  ;;  %v2462_v25 = vsel %vm212_vm2, %v2458_v59, %v2459_v15  ;;  %v6654_v15 = vld [vmem:[%s7090_s6 + $0x1] ss:$0 sm:$0xff] }
 0x3e9   :  { %2509 = vrot.lane.b32.xlu0 %v2426_v35, %s6029_s20 }
 0x3eb   :  { %2513 = vrot.lane.b32.xlu1 %v2436_v40, %s6029_s20 }
 0x3ed   :  { %2481 = vrot.lane.b32.xlu0 %v2446_v52, %s6028_s30 }
 0x3ef   :  { %2517 = vrot.lane.b32.xlu1 %v2446_v52, %s6029_s20 }
 0x3f1   :  { %2515 = vrot.lane.b32.xlu0 %v6550_v37, %s6029_s20 }
 0x44d   :  { %v2476_v53 = vpop.permute.xlu1 %2475 }
 0x44e   :  { %v2492_v58 = vrot.slane %v2476_v53, 6 }
 0x451   :  { %v2474_v54 = vpop.permute.xlu1 %2473 }
 0x452   :  { %v2491_v57 = vrot.slane %v2474_v54, 6 }
 0x453   :  { %v2478_v60 = vpop.permute.xlu0 %2477 }
 0x454   :  { %v2493_v61 = vrot.slane %v2478_v60, 6  ;;  %v2501_v0 = vsel %vm249_vm3, %v2491_v57, %v2492_v58  ;;  %v2827_v60 = vld [vmem:[#allocation2 + $0x2f0] sm:$0xff] }
 0x455   :  { %v2480_v63 = vpop.permute.xlu1 %2479  ;;  %v2504_v4 = vadd.f32 %v2501_v0, %v2465_v38  ;;  %v2826_v0 = vld [vmem:[#allocation2 + $0x2e8] sm:$0xff] }
 0x456   :  { %v2500_v9 = vsel %vm249_vm3, %v2492_v58, %v2493_v61  ;;  %v2494_v62 = vrot.slane %v2480_v63, 6  ;;  %v2979_v58 = vld [vmem:[#allocation2 + $0x318] sm:$0xff] }
 0x457   :  { %v2484_v2 = vpop.permute.xlu0 %2483  ;;  %v2505_v14 = vadd.f32 %v2500_v9, %v2464_v45 }
 0x458   :  { %v2496_v3 = vrot.slane %v2484_v2, 6  ;;  %v2499_v26 = vsel %vm249_vm3, %v2493_v61, %v2494_v62  ;;  %v2978_v61 = vld [vmem:[#allocation2 + $0x310] sm:$0xff]  ;;  %v2977_v2 = vld [vmem:[#allocation2 + $0x308] sm:$0xff] }
 0x459   :  { %v2512_v6 = vpop.permute.xlu1 %2511  ;;  %v2506_v29 = vadd.f32 %v2499_v26, %v2463_v46 }
 0x45a   :  { %v2528_v10 = vadd.f32 %v2512_v6, %v2504_v4  ;;  %v2502_v11 = vsel %vm249_vm3, %v2496_v3, %v2491_v57  ;;  %v2828_v57 = vld [vmem:[#allocation2 + $0x2f8] sm:$0xff]  ;;  %v2825_v3 = vld [vmem:[#allocation2 + $0x2e0] sm:$0xff] }
 0x45b   :  { %v2510_v55 = vpop.permute.xlu0 %2509  ;;  %v2503_v7 = vadd.f32 %v2502_v11, %v2466_v50  ;;  %5638 = vmatpush3.msra.mxu0 %v2828_v57  ;;  %v2976_v4 = vld [vmem:[#allocation2 + $0x300] sm:$0xff] }
 0x45c   :  { %v2540_v13 = vadd.f32 %v4990_v5, %v2528_v10  ;;  %5639 = vmatprep.subr.mxu0 %v6030_v24  ;;  %v2820_v57 = vld [vmem:[#allocation2 + $0x2c0] sm:$0xff] }
 0x45d   :  { %v2527_v16 = vadd.f32 %v2510_v55, %v2503_v7  ;;  %v2514_v32 = vpop.permute.xlu1 %2513  ;;  %5640 = vmatpush3.msra.mxu0 %v2827_v60  ;;  %v3134_v60 = vld [vmem:[#allocation2 + $0x340] sm:$0xff] }
 0x45e   :  { %v2546_v47 = vmax.f32 %v2540_v13, 0.0  ;;  %v2529_v17 = vadd.f32 %v2514_v32, %v2505_v14  ;;  %5641 = vmatprep.subr.mxu0 %v6030_v24 }
 0x45f   :  { %v2539_v20 = vadd.f32 %v4990_v5, %v2527_v16  ;;  %v2482_v1 = vpop.permute.xlu0 %2481  ;;  %5642 = vmatpush3.msra.mxu0 %v2826_v0 }
 0x460   :  { %v2541_v21 = vadd.f32 %v4990_v5, %v2529_v17  ;;  %v2495_v22 = vrot.slane %v2482_v1, 6  ;;  %v2558_v49 = vmul.f32 %v4991_v19, %v2546_v47  ;;  %5643 = vmatprep.subr.mxu0 %v6030_v24  ;;  %v6664_v1 = vld [vmem:[%s7091_s7 + $0x1] ss:$0 sm:$0xff] }
 0x461   :  { %v2545_v23 = vmax.f32 %v2539_v20, 0.0  ;;  %v2518_v36 = vpop.permute.xlu1 %2517  ;;  %5644 = vmatpush3.msra.mxu0 %v2825_v3 }
 0x462   :  { %v2547_v27 = vmax.f32 %v2541_v21, 0.0  ;;  %v2498_v28 = vsel %vm249_vm3, %v2494_v62, %v2495_v22  ;;  %v2570_v40 = vadd.f32 %v4992_v30, %v2558_v49  ;;  %5648 = vmatprep.subr.mxu0 %v6030_v24 }
 0x463   :  { %v2557_v31 = vmul.f32 %v4991_v19, %v2545_v23  ;;  %v2507_v34 = vadd.f32 %v2498_v28, %v2462_v25  ;;  %v2516_v35 = vpop.permute.xlu0 %2515  ;;  %v6671_v23 = vld [vmem:[%s7092_s8 + $0x1] ss:$0 sm:$0xff] }
 0x464   :  { %v2559_v56 = vmul.f32 %v4991_v19, %v2547_v27  ;;  %v2530_v37 = vadd.f32 %v2516_v35, %v2506_v29 }
 0x465   :  { %v2569_v38 = vadd.f32 %v4992_v30, %v2557_v31  ;;  %v2531_v39 = vadd.f32 %v2518_v36, %v2507_v34  ;;  %v2823_v34 = vld [vmem:[#allocation2 + $0x2d8] sm:$0xff] }
 0x466   :  { %v2571_v59 = vadd.f32 %v4992_v30, %v2559_v56  ;;  %v2542_v41 = vadd.f32 %v4990_v5, %v2530_v37  ;;  %v3137_v37 = vld [vmem:[#allocation2 + $0x358] sm:$0xff] }
 0x467   :  { %v2543_v42 = vadd.f32 %v4990_v5, %v2531_v39  ;;  %5628 = vmatprep.mubr.msk.f32.mxu1 %vm347_vm4, %v2569_v38  ;;  %v2822_v39 = vld [vmem:[#allocation2 + $0x2d0] sm:$0xff] }
 0x468   :  { %v2548_v43 = vmax.f32 %v2542_v41, 0.0  ;;  %5629 = vmatmul.mubr.msk.f32.vlgmr.msra.gmra.mxu1 %vm347_vm4, %v2570_v40  ;;  %v3136_v41 = vld [vmem:[#allocation2 + $0x350] sm:$0xff] }
 0x469   :  { %v2549_v44 = vmax.f32 %v2543_v42, 0.0  ;;  %5631 = vmatprep.mubr.msk.f32.mxu1 %vm347_vm4, %v2571_v59  ;;  %5660 = vmatpush3.msra.mxu1 %v2979_v58 }
 0x46a   :  { %v2560_v45 = vmul.f32 %v4991_v19, %v2548_v43  ;;  %5661 = vmatprep.subr.mxu1 %v6030_v24 }
 0x46b   :  { %v2561_v46 = vmul.f32 %v4991_v19, %v2549_v44  ;;  %5662 = vmatpush3.msra.mxu1 %v2978_v61 }
 0x46c   :  { %v2572_v48 = vadd.f32 %v4992_v30, %v2560_v45  ;;  %5663 = vmatprep.subr.mxu1 %v6030_v24  ;;  %v2821_v45 = vld [vmem:[#allocation2 + $0x2c8] sm:$0xff] }
 0x46d   :  { %v2573_v50 = vadd.f32 %v4992_v30, %v2561_v46  ;;  %5664 = vmatpush3.msra.mxu1 %v2977_v2 }
 0x46e   :  { %5632 = vmatmul.mubr.msk.f32.gmra.mxu1 %vm347_vm4, %v2572_v48  ;;  %5665 = vmatprep.subr.mxu1 %v6030_v24 }
 0x46f   :  { %v2579_v51 = vsel %vm332_vm5, %v2573_v50, 0.0  ;;  %5666 = vmatpush3.msra.mxu1 %v2976_v4  ;;  %v3135_v50 = vld [vmem:[#allocation2 + $0x348] sm:$0xff]  ;;  %v3058_v4 = vld [vmem:[#allocation2 + $0x338] sm:$0xff] }
 0x470   :  { %5634 = vmatprep.mubr.msk.f32.mxu1 %vm347_vm4, %v2579_v51  ;;  %5681 = vmatprep.subr.mxu1 %v6030_v24 }
 0x472   :  { %5635 = vmatmul.mubr.f32.gmra.mxu1 %v6030_v24 }
 0x473   :  { %5667 = vmatprep.mubr.msk.f32.mxu1 %vm6031_vm6, %v6030_v24 }
 0x528   :  { %v6617_v52 = vpop.f32.mrf.mxu1 }
 0x52a   :  { %v2676_v53 = vpop.f32.mrf.mxu1 }
 0x52b   :  { %2711 = vrot.lane.b32.xlu0 %v2676_v53, %s6028_s30 }
 0x52e   :  { %v6620_v54 = vpop.f32.mrf.mxu1 }
 0x52f   :  { %2747 = vrot.lane.b32.xlu0 %v2676_v53, %s6029_s20 }
 0x530   :  { %v6623_v18 = vpop.f32.mrf.mxu1 }
 0x532   :  { %v5636_v63 = vpop.f32.mrf.mxu1 }
 0x533   :  { %2749 = vrot.lane.b32.xlu0 %v6617_v52, %s6029_s20  ;;  %2721 = vrot.lane.b32.xlu1 %v5636_v63, %s6028_s30 }
 0x534   :  { %v2696_v5 = vpop.f32.mrf.mxu1 }
 0x537   :  { %2751 = vrot.lane.b32.xlu0 %v6623_v18, %s6029_s20  ;;  %2713 = vrot.lane.b32.xlu1 %v6617_v52, %s6028_s30 }
 0x53b   :  { %2753 = vrot.lane.b32.xlu0 %v6620_v54, %s6029_s20  ;;  %2715 = vrot.lane.b32.xlu1 %v6623_v18, %s6028_s30 }
 0x53f   :  { %2717 = vrot.lane.b32.xlu1 %v6620_v54, %s6028_s30  ;;  %2755 = vrot.lane.b32.xlu0 %v2696_v5, %s6029_s20 }
 0x543   :  { %2719 = vrot.lane.b32.xlu1 %v2696_v5, %s6028_s30 }
 0x547   :  { %2757 = vrot.lane.b32.xlu1 %v5636_v63, %s6029_s20 }
 0x59d   :  { %v2712_v6 = vpop.permute.xlu0 %2711 }
 0x59e   :  { %v2729_v11 = vrot.slane %v2712_v6, 4  ;;  %v3295_v6 = vld [vmem:[#allocation2 + $0x398] sm:$0xff] }
 0x5a1   :  { %v2748_v9 = vpop.permute.xlu0 %2747 }
 0x5a5   :  { %v2722_v10 = vpop.permute.xlu1 %2721  ;;  %v2750_v55 = vpop.permute.xlu0 %2749 }
 0x5a6   :  { %v2734_v62 = vrot.slane %v2722_v10, 4 }
 0x5a8   :  { %v2740_v7 = vsel %vm212_vm2, %v2734_v62, %v2729_v11 }
 0x5a9   :  { %v2741_v13 = vadd.f32 %v5636_v63, %v2740_v7  ;;  %v2714_v14 = vpop.permute.xlu1 %2713  ;;  %v6666_v26 = vpop.permute.xlu0 %2751 }
 0x5aa   :  { %v2730_v16 = vrot.slane %v2714_v14, 4  ;;  %v3293_v14 = vld [vmem:[#allocation2 + $0x388] sm:$0xff] }
 0x5ab   :  { %v2765_v32 = vadd.f32 %v2748_v9, %v2741_v13 }
 0x5ac   :  { %v2739_v47 = vsel %vm212_vm2, %v2729_v11, %v2730_v16  ;;  %v3294_v11 = vld [vmem:[#allocation2 + $0x390] sm:$0xff] }
 0x5ad   :  { %v2777_v17 = vadd.f32 %v6654_v15, %v2765_v32  ;;  %v2742_v19 = vadd.f32 %v2739_v47, %v2676_v53  ;;  %v6659_v20 = vpop.permute.xlu1 %2715  ;;  %v6680_v29 = vpop.permute.xlu0 %2753  ;;  %v3292_v32 = vld [vmem:[#allocation2 + $0x380] sm:$0xff] }
 0x5ae   :  { %v2731_v40 = vrot.slane %v6659_v20, 4  ;;  %v3374_v20 = vld [vmem:[#allocation2 + $0x3b8] sm:$0xff] }
 0x5af   :  { %v2783_v21 = vmax.f32 %v2777_v17, 0.0  ;;  %v2766_v22 = vadd.f32 %v2750_v55, %v2742_v19  ;;  %v3056_v55 = vld [vmem:[#allocation2 + $0x328] sm:$0xff] }
 0x5b1   :  { %v2795_v25 = vmul.f32 %v6664_v1, %v2783_v21  ;;  %v6674_v49 = vpop.permute.xlu1 %2717  ;;  %v2778_v28 = vadd.f32 %v6654_v15, %v2766_v22  ;;  %v2756_v46 = vpop.permute.xlu0 %2755  ;;  %v3453_v21 = vld [vmem:[#allocation2 + $0x3d8] sm:$0xff] }
 0x5b2   :  { %v2732_v35 = vrot.slane %v6674_v49, 4  ;;  %v3611_v49 = vld [vmem:[#allocation2 + $0x418] sm:$0xff] }
 0x5b3   :  { %v6677_v27 = vadd.f32 %v6671_v23, %v2795_v25  ;;  %v2784_v38 = vmax.f32 %v2778_v28, 0.0  ;;  %v3215_v25 = vld [vmem:[#allocation2 + $0x370] sm:$0xff]  ;;  %v3214_v28 = vld [vmem:[#allocation2 + $0x368] sm:$0xff] }
 0x5b5   :  { %v2720_v30 = vpop.permute.xlu1 %2719  ;;  %v2830_v31 = vrot.slane %v6677_v27, 2  ;;  %v2980_v36 = vrot.slane %v6677_v27, 4  ;;  %v2796_v51 = vmul.f32 %v6664_v1, %v2784_v38  ;;  %v3059_v17 = vrot.slane %v6677_v27, 6 }
 0x5b6   :  { %v2733_v56 = vrot.slane %v2720_v30, 4  ;;  %v3451_v30 = vld [vmem:[#allocation2 + $0x3c8] sm:$0xff] }
 0x5b7   :  { %5646 = vmatmul.mubr.msk.f32.vlgmr.msra.gmra.mxu0 %vm347_vm4, %v2830_v31  ;;  %5668 = vmatmul.mubr.msk.f32.vlgmr.msra.gmra.mxu1 %vm347_vm4, %v2980_v36  ;;  %v6712_v3 = vadd.f32 %v6671_v23, %v2796_v51  ;;  %v3450_v36 = vld [vmem:[#allocation2 + $0x3c0] sm:$0xff]  ;;  %v3530_v51 = vld [vmem:[#allocation2 + $0x3e8] sm:$0xff] }
 0x5b8   :  { %v2736_v59 = vsel %vm212_vm2, %v2732_v35, %v2733_v56  ;;  %5649 = vmatpush3.msra.mxu0 %v2823_v34  ;;  %v2735_v42 = vsel %vm212_vm2, %v2733_v56, %v2734_v62  ;;  %5682 = vmatpush3.msra.mxu1 %v3137_v37  ;;  %v3213_v34 = vld [vmem:[#allocation2 + $0x360] sm:$0xff]  ;;  %v2737_v56 = vsel %vm212_vm2, %v2731_v40, %v2732_v35  ;;  %v3610_v35 = vld [vmem:[#allocation2 + $0x410] sm:$0xff] }
 0x5b9   :  { %v2745_v43 = vadd.f32 %v6620_v54, %v2736_v59  ;;  %5650 = vmatprep.subr.mxu0 %v6030_v24  ;;  %v2758_v44 = vpop.permute.xlu1 %2757  ;;  %5683 = vmatprep.subr.mxu1 %v6030_v24  ;;  %v2746_v48 = vadd.f32 %v2735_v42, %v2696_v5  ;;  %v2738_v54 = vsel %vm212_vm2, %v2730_v16, %v2731_v40  ;;  %v3055_v16 = vld [vmem:[#allocation2 + $0x320] sm:$0xff]  ;;  %v3296_v19 = vrot.slane %v6712_v3, 4  ;;  %v3372_v40 = vld [vmem:[#allocation2 + $0x3a8] sm:$0xff] }
 0x5ba   :  { %5651 = vmatpush3.msra.mxu0 %v2822_v39  ;;  %5684 = vmatpush3.msra.mxu1 %v3136_v41  ;;  %v2743_v0 = vadd.f32 %v6617_v52, %v2738_v54  ;;  %v3057_v52 = vld [vmem:[#allocation2 + $0x330] sm:$0xff]  ;;  %v3217_v37 = vrot.slane %v6712_v3, 2  ;;  %v2744_v38 = vadd.f32 %v2737_v56, %v6623_v18  ;;  %v3609_v59 = vld [vmem:[#allocation2 + $0x408] sm:$0xff]  ;;  %v3371_v41 = vld [vmem:[#allocation2 + $0x3a0] sm:$0xff] }
 0x5bb   :  { %v2769_v53 = vadd.f32 %v2756_v46, %v2745_v43  ;;  %5652 = vmatprep.subr.mxu0 %v6030_v24  ;;  %v2770_v58 = vadd.f32 %v2758_v44, %v2746_v48  ;;  %5685 = vmatprep.subr.mxu1 %v6030_v24  ;;  %v3373_v18 = vld [vmem:[#allocation2 + $0x3b0] sm:$0xff]  ;;  %v3608_v42 = vld [vmem:[#allocation2 + $0x400] sm:$0xff]  ;;  %v4401_v56 = vld [vmem:[#allocation2 + $0x558] sm:$0xff] }
 0x5bc   :  { %5653 = vmatpush3.msra.mxu0 %v2821_v45  ;;  %5686 = vmatpush3.msra.mxu1 %v3135_v50  ;;  %v2767_v62 = vadd.f32 %v6666_v26, %v2743_v0  ;;  %v3216_v26 = vld [vmem:[#allocation2 + $0x378] sm:$0xff]  ;;  %v2768_v39 = vadd.f32 %v6680_v29, %v2744_v38  ;;  %v3375_v29 = vrot.slane %v6712_v3, 6  ;;  %v3531_v48 = vld [vmem:[#allocation2 + $0x3f0] sm:$0xff]  ;;  %v3529_v54 = vld [vmem:[#allocation2 + $0x3e0] sm:$0xff] }
 0x5bd   :  { %v2781_v61 = vadd.f32 %v6654_v15, %v2769_v53  ;;  %5654 = vmatprep.subr.mxu0 %v6030_v24  ;;  %v2782_v63 = vadd.f32 %v6654_v15, %v2770_v58  ;;  %5687 = vmatprep.subr.mxu1 %v6030_v24  ;;  %v3532_v45 = vld [vmem:[#allocation2 + $0x3f8] sm:$0xff]  ;;  %v3768_v50 = vld [vmem:[#allocation2 + $0x450] sm:$0xff]  ;;  %v3767_v53 = vld [vmem:[#allocation2 + $0x448] sm:$0xff] }
 0x5be   :  { %5655 = vmatpush3.msra.mxu0 %v2820_v57  ;;  %5656 = vmatprep.mubr.msk.f32.mxu0 %vm6031_vm6, %v6030_v24  ;;  %v2779_v47 = vadd.f32 %v6654_v15, %v2767_v62  ;;  %v2780_v43 = vadd.f32 %v6654_v15, %v2768_v39  ;;  %v3769_v15 = vld [vmem:[#allocation2 + $0x458] sm:$0xff]  ;;  %v3766_v58 = vld [vmem:[#allocation2 + $0x440] sm:$0xff]  ;;  %v3689_v0 = vld [vmem:[#allocation2 + $0x430] sm:$0xff] }
 0x5bf   :  { %v2787_v2 = vmax.f32 %v2781_v61, 0.0  ;;  %5688 = vmatpush3.msra.mxu1 %v3134_v60  ;;  %v2788_v5 = vmax.f32 %v2782_v63, 0.0  ;;  %5689 = vmatprep.mubr.msk.f32.mxu1 %vm6031_vm6, %v6030_v24  ;;  %v3690_v61 = vld [vmem:[#allocation2 + $0x438] sm:$0xff]  ;;  %v4084_v62 = vld [vmem:[#allocation2 + $0x4d0] sm:$0xff]  ;;  %v4162_v38 = vld [vmem:[#allocation2 + $0x4e8] sm:$0xff] }
 0x5c0   :  { %5657 = vmatmul.mubr.msk.f32.vlgmr.msra.gmra.mxu0 %vm347_vm4, %v6677_v27  ;;  %5670 = vmatprep.subr.mxu0 %v6030_v24  ;;  %v2785_v22 = vmax.f32 %v2779_v47, 0.0  ;;  %v3452_v27 = vld [vmem:[#allocation2 + $0x3d0] sm:$0xff]  ;;  %v2786_v46 = vmax.f32 %v2780_v43, 0.0  ;;  %v3927_v63 = vld [vmem:[#allocation2 + $0x498] sm:$0xff]  ;;  %v4478_v43 = vld [vmem:[#allocation2 + $0x568] sm:$0xff] }
 0x5c1   :  { %v2799_v9 = vmul.f32 %v6664_v1, %v2787_v2  ;;  %5690 = vmatmul.mubr.msk.f32.vlgmr.msra.gmra.mxu1 %vm347_vm4, %v6712_v3  ;;  %v2800_v10 = vmul.f32 %v6664_v1, %v2788_v5  ;;  %5703 = vmatprep.subr.mxu1 %v6030_v24  ;;  %v3926_v2 = vld [vmem:[#allocation2 + $0x490] sm:$0xff]  ;;  %v3925_v3 = vld [vmem:[#allocation2 + $0x488] sm:$0xff]  ;;  %v3924_v5 = vld [vmem:[#allocation2 + $0x480] sm:$0xff] }
 0x5c2   :  { %5671 = vmatpush3.msra.mxu0 %v3058_v4  ;;  %5704 = vmatpush3.msra.mxu1 %v3295_v6  ;;  %v2797_v31 = vmul.f32 %v6664_v1, %v2785_v22  ;;  %v2798_v57 = vmul.f32 %v6664_v1, %v2786_v46  ;;  %v3687_v4 = vld [vmem:[#allocation2 + $0x420] sm:$0xff]  ;;  %v4004_v22 = vld [vmem:[#allocation2 + $0x4a8] sm:$0xff] }
 0x5c3   :  { %5672 = vmatprep.subr.mxu0 %v6030_v24  ;;  %v6727_v7 = vadd.f32 %v6671_v23, %v2799_v9  ;;  %v6730_v13 = vadd.f32 %v6671_v23, %v2800_v10  ;;  %5705 = vmatprep.subr.mxu1 %v6030_v24  ;;  %v4085_v10 = vld [vmem:[#allocation2 + $0x4d8] sm:$0xff]  ;;  %v4972_v46 = vld [vmem:[%s7094_s10] ss:$0 sm:$0xff] }
 0x5c4   :  { %5673 = vmatpush3.msra.mxu0 %v3057_v52  ;;  %5706 = vmatpush3.msra.mxu1 %v3294_v11  ;;  %v6766_v8 = vadd.f32 %v6671_v23, %v2797_v31  ;;  %v6804_v1 = vadd.f32 %v6671_v23, %v2798_v57  ;;  %v3688_v23 = vld [vmem:[#allocation2 + $0x428] sm:$0xff]  ;;  %v3848_v52 = vld [vmem:[#allocation2 + $0x478] sm:$0xff]  ;;  %v3847_v11 = vld [vmem:[#allocation2 + $0x470] sm:$0xff] }
 0x5c5   :  { %5674 = vmatprep.subr.mxu0 %v6030_v24  ;;  %5707 = vmatprep.subr.mxu1 %v6030_v24  ;;  %v4244_v31 = vrot.slane %v6727_v7, 4  ;;  %v2818_v39 = vsel %vm574_vm7, %v6730_v13, 0.0  ;;  %v4323_v13 = vrot.slane %v6727_v7, 6  ;;  %v5032_v57 = vld [vmem:[%s7095_s11 + $0x20] sm:$0xff] }
 0x5c6   :  { %5675 = vmatpush3.msra.mxu0 %v3056_v55  ;;  %5708 = vmatpush3.msra.mxu1 %v3293_v14  ;;  %v3612_v44 = vrot.slane %v6766_v8, 4  ;;  %v3533_v60 = vrot.slane %v6766_v8, 2  ;;  %v3691_v6 = vrot.slane %v6766_v8, 6  ;;  %v3928_v9 = vrot.slane %v6804_v1, 4  ;;  %v3846_v55 = vld [vmem:[#allocation2 + $0x468] sm:$0xff] }
 0x5c7   :  { %5676 = vmatprep.subr.mxu0 %v6030_v24  ;;  %5709 = vmatprep.subr.mxu1 %v6030_v24  ;;  %v4083_v14 = vld [vmem:[#allocation2 + $0x4c8] sm:$0xff]  ;;  %v3849_v47 = vrot.slane %v6804_v1, 2 }
 0x5c8   :  { %5677 = vmatpush3.msra.mxu0 %v3055_v16  ;;  %5678 = vmatprep.mubr.msk.f32.mxu0 %vm6031_vm6, %v6030_v24  ;;  %v3845_v16 = vld [vmem:[#allocation2 + $0x460] sm:$0xff] }
 0x5c9   :  { %5710 = vmatpush3.msra.mxu1 %v3292_v32  ;;  %5711 = vmatprep.mubr.msk.f32.mxu1 %vm6031_vm6, %v6030_v24  ;;  %v4082_v32 = vld [vmem:[#allocation2 + $0x4c0] sm:$0xff] }
 0x5ca   :  { %5679 = vmatmul.mubr.msk.f32.vlgmr.msra.gmra.mxu0 %vm347_vm4, %v3059_v17  ;;  %5692 = vmatprep.subr.mxu0 %v6030_v24  ;;  %v4006_v17 = vld [vmem:[#allocation2 + $0x4b8] sm:$0xff] }
 0x5cb   :  { %5712 = vmatmul.mubr.msk.f32.vlgmr.msra.gmra.mxu1 %vm347_vm4, %v3296_v19  ;;  %5725 = vmatprep.subr.mxu1 %v6030_v24  ;;  %v4243_v19 = vld [vmem:[#allocation2 + $0x518] sm:$0xff] }
 0x5cc   :  { %5693 = vmatpush3.msra.mxu0 %v3216_v26  ;;  %5726 = vmatpush3.msra.mxu1 %v3453_v21  ;;  %v4005_v26 = vld [vmem:[#allocation2 + $0x4b0] sm:$0xff] }
 0x5cd   :  { %5694 = vmatprep.subr.mxu0 %v6030_v24  ;;  %5727 = vmatprep.subr.mxu1 %v6030_v24  ;;  %v4242_v21 = vld [vmem:[#allocation2 + $0x510] sm:$0xff] }
 0x5ce   :  { %5695 = vmatpush3.msra.mxu0 %v3215_v25  ;;  %5728 = vmatpush3.msra.mxu1 %v3452_v27  ;;  %v4241_v25 = vld [vmem:[#allocation2 + $0x508] sm:$0xff]  ;;  %v4003_v27 = vld [vmem:[#allocation2 + $0x4a0] sm:$0xff] }
 0x5cf   :  { %5696 = vmatprep.subr.mxu0 %v6030_v24  ;;  %5729 = vmatprep.subr.mxu1 %v6030_v24 }
 0x5d0   :  { %5697 = vmatpush3.msra.mxu0 %v3214_v28  ;;  %5730 = vmatpush3.msra.mxu1 %v3451_v30  ;;  %v4240_v28 = vld [vmem:[#allocation2 + $0x500] sm:$0xff]  ;;  %v4007_v30 = vrot.slane %v6804_v1, 6 }
 0x5d1   :  { %5698 = vmatprep.subr.mxu0 %v6030_v24  ;;  %5731 = vmatprep.subr.mxu1 %v6030_v24 }
 0x5d2   :  { %5699 = vmatpush3.msra.mxu0 %v3213_v34  ;;  %5700 = vmatprep.mubr.msk.f32.mxu0 %vm6031_vm6, %v6030_v24  ;;  %v4164_v34 = vld [vmem:[#allocation2 + $0x4f8] sm:$0xff] }
 0x5d3   :  { %5732 = vmatpush3.msra.mxu1 %v3450_v36  ;;  %5733 = vmatprep.mubr.msk.f32.mxu1 %vm6031_vm6, %v6030_v24  ;;  %v4163_v36 = vld [vmem:[#allocation2 + $0x4f0] sm:$0xff] }
 0x5d4   :  { %5701 = vmatmul.mubr.msk.f32.vlgmr.msra.gmra.mxu0 %vm347_vm4, %v3217_v37  ;;  %5714 = vmatprep.subr.mxu0 %v6030_v24  ;;  %v4400_v37 = vld [vmem:[#allocation2 + $0x550] sm:$0xff] }
 0x5d5   :  { %5734 = vmatmul.mubr.msk.f32.vlgmr.msra.gmra.mxu1 %vm347_vm4, %v6766_v8  ;;  %5747 = vmatprep.subr.mxu1 %v6030_v24  ;;  %v4399_v8 = vld [vmem:[#allocation2 + $0x548] sm:$0xff] }
 0x5d6   :  { %5715 = vmatpush3.msra.mxu0 %v3374_v20  ;;  %5748 = vmatpush3.msra.mxu1 %v3611_v49  ;;  %v4161_v20 = vld [vmem:[#allocation2 + $0x4e0] sm:$0xff] }
 0x5d7   :  { %5716 = vmatprep.subr.mxu0 %v6030_v24  ;;  %5749 = vmatprep.subr.mxu1 %v6030_v24  ;;  %v4398_v49 = vld [vmem:[#allocation2 + $0x540] sm:$0xff] }
 0x5d8   :  { %5717 = vmatpush3.msra.mxu0 %v3373_v18  ;;  %5750 = vmatpush3.msra.mxu1 %v3610_v35  ;;  %v4165_v18 = vrot.slane %v6727_v7, 2  ;;  %v4322_v35 = vld [vmem:[#allocation2 + $0x538] sm:$0xff] }
 0x5d9   :  { %5718 = vmatprep.subr.mxu0 %v6030_v24  ;;  %5751 = vmatprep.subr.mxu1 %v6030_v24 }
 0x5da   :  { %5719 = vmatpush3.msra.mxu0 %v3372_v40  ;;  %5752 = vmatpush3.msra.mxu1 %v3609_v59  ;;  %v4321_v40 = vld [vmem:[#allocation2 + $0x530] sm:$0xff]  ;;  %v4320_v59 = vld [vmem:[#allocation2 + $0x528] sm:$0xff] }
 0x5db   :  { %5720 = vmatprep.subr.mxu0 %v6030_v24  ;;  %5753 = vmatprep.subr.mxu1 %v6030_v24 }
 0x5dc   :  { %5721 = vmatpush3.msra.mxu0 %v3371_v41  ;;  %5722 = vmatprep.mubr.msk.f32.mxu0 %vm6031_vm6, %v6030_v24  ;;  %v4480_v41 = vld [vmem:[#allocation2 + $0x578] sm:$0xff] }
 0x5dd   :  { %5754 = vmatpush3.msra.mxu1 %v3608_v42  ;;  %5755 = vmatprep.mubr.msk.f32.mxu1 %vm6031_vm6, %v6030_v24  ;;  %v4479_v42 = vld [vmem:[#allocation2 + $0x570] sm:$0xff] }
 0x5de   :  { %5723 = vmatmul.mubr.msk.f32.vlgmr.msra.gmra.mxu0 %vm347_vm4, %v3375_v29  ;;  %5736 = vmatprep.subr.mxu0 %v6030_v24  ;;  %v4477_v29 = vld [vmem:[#allocation2 + $0x560] sm:$0xff] }
 0x5df   :  { %5756 = vmatmul.mubr.msk.f32.vlgmr.msra.gmra.mxu1 %vm347_vm4, %v3612_v44  ;;  %5769 = vmatprep.subr.mxu1 %v6030_v24  ;;  %v4567_v44 = vld [vmem:[%s7095_s11 + $0x18] sm:$0xff] }
 0x5e0   :  { %5737 = vmatpush3.msra.mxu0 %v3532_v45  ;;  %5770 = vmatpush3.msra.mxu1 %v3769_v15  ;;  %v4566_v45 = vld [vmem:[%s7095_s11 + $0x10] sm:$0xff]  ;;  %v4565_v15 = vld [vmem:[%s7095_s11 + $0x8] sm:$0xff] }
 0x5e1   :  { %5738 = vmatprep.subr.mxu0 %v6030_v24  ;;  %5771 = vmatprep.subr.mxu1 %v6030_v24 }
 0x5e2   :  { %5739 = vmatpush3.msra.mxu0 %v3531_v48  ;;  %5772 = vmatpush3.msra.mxu1 %v3768_v50  ;;  %v4564_v48 = vld [vmem:[%s7095_s11] sm:$0xff]  ;;  %v2323_v50 = vadd.f32 %v4972_v46, %v6547_v33  ;;  %v5034_v33 = vld [vmem:[%s7095_s11 + $0x30] sm:$0xff] }
 0x5e3   :  { %5740 = vmatprep.subr.mxu0 %v6030_v24  ;;  %5773 = vmatprep.subr.mxu1 %v6030_v24 }
 0x5e4   :  { %5741 = vmatpush3.msra.mxu0 %v3530_v51  ;;  %5774 = vmatpush3.msra.mxu1 %v3767_v53  ;;  %v5035_v51 = vld [vmem:[%s7095_s11 + $0x38] sm:$0xff]  ;;  %v5033_v53 = vld [vmem:[%s7095_s11 + $0x28] sm:$0xff] }
 0x5e5   :  { %5742 = vmatprep.subr.mxu0 %v6030_v24  ;;  %5775 = vmatprep.subr.mxu1 %v6030_v24 }
 0x5e6   :  { %5743 = vmatpush3.msra.mxu0 %v3529_v54  ;;  %5744 = vmatprep.mubr.msk.f32.mxu0 %vm6031_vm6, %v6030_v24 }
 0x5e7   :  { %5776 = vmatpush3.msra.mxu1 %v3766_v58  ;;  %5777 = vmatprep.mubr.msk.f32.mxu1 %vm6031_vm6, %v6030_v24 }
 0x5e8   :  { %5745 = vmatmul.mubr.msk.f32.vlgmr.msra.gmra.mxu0 %vm347_vm4, %v3533_v60  ;;  %5758 = vmatprep.subr.mxu0 %v6030_v24 }
 0x5e9   :  { %5778 = vmatmul.mubr.msk.f32.vlgmr.msra.gmra.mxu1 %vm347_vm4, %v6804_v1  ;;  %5791 = vmatprep.subr.mxu1 %v6030_v24 }
 0x5ea   :  { %5759 = vmatpush3.msra.mxu0 %v3690_v61  ;;  %5792 = vmatpush3.msra.mxu1 %v3927_v63 }
 0x5eb   :  { %5760 = vmatprep.subr.mxu0 %v6030_v24  ;;  %5793 = vmatprep.subr.mxu1 %v6030_v24 }
 0x5ec   :  { %5761 = vmatpush3.msra.mxu0 %v3689_v0  ;;  %5794 = vmatpush3.msra.mxu1 %v3926_v2 }
 0x5ed   :  { %5762 = vmatprep.subr.mxu0 %v6030_v24  ;;  %5795 = vmatprep.subr.mxu1 %v6030_v24 }
 0x5ee   :  { %5763 = vmatpush3.msra.mxu0 %v3688_v23  ;;  %5796 = vmatpush3.msra.mxu1 %v3925_v3 }
 0x5ef   :  { %5764 = vmatprep.subr.mxu0 %v6030_v24  ;;  %5797 = vmatprep.subr.mxu1 %v6030_v24 }
 0x5f0   :  { %5765 = vmatpush3.msra.mxu0 %v3687_v4  ;;  %5766 = vmatprep.mubr.msk.f32.mxu0 %vm6031_vm6, %v6030_v24 }
 0x5f1   :  { %5798 = vmatpush3.msra.mxu1 %v3924_v5  ;;  %5799 = vmatprep.mubr.msk.f32.mxu1 %vm6031_vm6, %v6030_v24 }
 0x5f2   :  { %5767 = vmatmul.mubr.msk.f32.vlgmr.msra.gmra.mxu0 %vm347_vm4, %v3691_v6  ;;  %5780 = vmatprep.subr.mxu0 %v6030_v24 }
 0x5f3   :  { %5800 = vmatmul.mubr.msk.f32.vlgmr.msra.gmra.mxu1 %vm347_vm4, %v3928_v9  ;;  %5813 = vmatprep.subr.mxu1 %v6030_v24 }
 0x5f4   :  { %5781 = vmatpush3.msra.mxu0 %v3848_v52  ;;  %5814 = vmatpush3.msra.mxu1 %v4085_v10 }
 0x5f5   :  { %5782 = vmatprep.subr.mxu0 %v6030_v24  ;;  %5815 = vmatprep.subr.mxu1 %v6030_v24 }
 0x5f6   :  { %5783 = vmatpush3.msra.mxu0 %v3847_v11  ;;  %5816 = vmatpush3.msra.mxu1 %v4084_v62 }
 0x5f7   :  { %5784 = vmatprep.subr.mxu0 %v6030_v24  ;;  %5817 = vmatprep.subr.mxu1 %v6030_v24 }
 0x5f8   :  { %5785 = vmatpush3.msra.mxu0 %v3846_v55  ;;  %5818 = vmatpush3.msra.mxu1 %v4083_v14 }
 0x5f9   :  { %5786 = vmatprep.subr.mxu0 %v6030_v24  ;;  %5819 = vmatprep.subr.mxu1 %v6030_v24 }
 0x5fa   :  { %5787 = vmatpush3.msra.mxu0 %v3845_v16  ;;  %5788 = vmatprep.mubr.msk.f32.mxu0 %vm6031_vm6, %v6030_v24 }
 0x5fb   :  { %5820 = vmatpush3.msra.mxu1 %v4082_v32  ;;  %5821 = vmatprep.mubr.msk.f32.mxu1 %vm6031_vm6, %v6030_v24 }
 0x5fc   :  { %5789 = vmatmul.mubr.msk.f32.vlgmr.msra.gmra.mxu0 %vm347_vm4, %v3849_v47  ;;  %5802 = vmatprep.subr.mxu0 %v6030_v24 }
 0x5fd   :  { %5822 = vmatmul.mubr.msk.f32.vlgmr.msra.gmra.mxu1 %vm347_vm4, %v6727_v7  ;;  %5835 = vmatprep.subr.mxu1 %v6030_v24  ;;  %v4481_v7 = vrot.slane %v2818_v39, 2 }
 0x5fe   :  { %5803 = vmatpush3.msra.mxu0 %v4006_v17  ;;  %5836 = vmatpush3.msra.mxu1 %v4243_v19 }
 0x5ff   :  { %5804 = vmatprep.subr.mxu0 %v6030_v24  ;;  %5837 = vmatprep.subr.mxu1 %v6030_v24 }
 0x600   :  { %5805 = vmatpush3.msra.mxu0 %v4005_v26  ;;  %5838 = vmatpush3.msra.mxu1 %v4242_v21 }
 0x601   :  { %5806 = vmatprep.subr.mxu0 %v6030_v24  ;;  %5839 = vmatprep.subr.mxu1 %v6030_v24 }
 0x602   :  { %5807 = vmatpush3.msra.mxu0 %v4004_v22  ;;  %5840 = vmatpush3.msra.mxu1 %v4241_v25 }
 0x603   :  { %5808 = vmatprep.subr.mxu0 %v6030_v24  ;;  %5841 = vmatprep.subr.mxu1 %v6030_v24 }
 0x604   :  { %5809 = vmatpush3.msra.mxu0 %v4003_v27  ;;  %5810 = vmatprep.mubr.msk.f32.mxu0 %vm6031_vm6, %v6030_v24 }
 0x605   :  { %5842 = vmatpush3.msra.mxu1 %v4240_v28  ;;  %5843 = vmatprep.mubr.msk.f32.mxu1 %vm6031_vm6, %v6030_v24 }
 0x606   :  { %5811 = vmatmul.mubr.msk.f32.vlgmr.msra.gmra.mxu0 %vm347_vm4, %v4007_v30  ;;  %5824 = vmatprep.subr.mxu0 %v6030_v24 }
 0x607   :  { %5844 = vmatmul.mubr.msk.f32.vlgmr.msra.gmra.mxu1 %vm347_vm4, %v4244_v31  ;;  %5857 = vmatprep.subr.mxu1 %v6030_v24 }
 0x608   :  { %5825 = vmatpush3.msra.mxu0 %v4164_v34  ;;  %5858 = vmatpush3.msra.mxu1 %v4401_v56 }
 0x609   :  { %5826 = vmatprep.subr.mxu0 %v6030_v24  ;;  %5859 = vmatprep.subr.mxu1 %v6030_v24 }
 0x60a   :  { %5827 = vmatpush3.msra.mxu0 %v4163_v36  ;;  %5860 = vmatpush3.msra.mxu1 %v4400_v37 }
 0x60b   :  { %5828 = vmatprep.subr.mxu0 %v6030_v24  ;;  %5861 = vmatprep.subr.mxu1 %v6030_v24 }
 0x60c   :  { %5829 = vmatpush3.msra.mxu0 %v4162_v38  ;;  %5862 = vmatpush3.msra.mxu1 %v4399_v8 }
 0x60d   :  { %5830 = vmatprep.subr.mxu0 %v6030_v24  ;;  %5863 = vmatprep.subr.mxu1 %v6030_v24 }
 0x60e   :  { %5831 = vmatpush3.msra.mxu0 %v4161_v20  ;;  %5832 = vmatprep.mubr.msk.f32.mxu0 %vm6031_vm6, %v6030_v24 }
 0x60f   :  { %5864 = vmatpush3.msra.mxu1 %v4398_v49  ;;  %5865 = vmatprep.mubr.msk.f32.mxu1 %vm6031_vm6, %v6030_v24 }
 0x610   :  { %5833 = vmatmul.mubr.msk.f32.vlgmr.msra.gmra.mxu0 %vm347_vm4, %v4165_v18  ;;  %5846 = vmatprep.subr.mxu0 %v6030_v24 }
 0x611   :  { %5866 = vmatmul.mubr.msk.f32.vlgmr.msra.gmra.mxu1 %vm347_vm4, %v2818_v39  ;;  %5847 = vmatpush3.msra.mxu0 %v4322_v35 }
 0x612   :  { %5854 = vmatprep.mubr.msk.f32.mxu0 %vm6031_vm6, %v6030_v24  ;;  %5848 = vmatprep.subr.mxu0 %v6030_v24 }
 0x613   :  { %5879 = vmatprep.subr.mxu1 %v6030_v24  ;;  %5849 = vmatpush3.msra.mxu0 %v4321_v40 }
 0x614   :  { %5887 = vmatprep.mubr.msk.f32.mxu1 %vm6031_vm6, %v6030_v24  ;;  %5850 = vmatprep.subr.mxu0 %v6030_v24 }
 0x615   :  { %5851 = vmatpush3.msra.mxu0 %v4320_v59  ;;  %5880 = vmatpush3.msra.mxu1 %v5035_v51 }
 0x616   :  { %5852 = vmatprep.subr.mxu0 %v6030_v24  ;;  %5881 = vmatprep.subr.mxu1 %v6030_v24 }
 0x617   :  { %5853 = vmatpush3.msra.mxu0 %v4319_v12  ;;  %5882 = vmatpush3.msra.mxu1 %v5034_v33 }
 0x618   :  { %5855 = vmatmul.mubr.msk.f32.vlgmr.msra.gmra.mxu0 %vm347_vm4, %v4323_v13  ;;  %5868 = vmatprep.subr.mxu0 %v6030_v24 }
 0x619   :  { %5869 = vmatpush3.msra.mxu0 %v4480_v41  ;;  %5876 = vmatprep.mubr.msk.f32.mxu0 %vm6031_vm6, %v6030_v24 }
 0x61a   :  { %5870 = vmatprep.subr.mxu0 %v6030_v24  ;;  %5883 = vmatprep.subr.mxu1 %v6030_v24 }
 0x61b   :  { %5871 = vmatpush3.msra.mxu0 %v4479_v42  ;;  %5884 = vmatpush3.msra.mxu1 %v5033_v53 }
 0x61c   :  { %5872 = vmatprep.subr.mxu0 %v6030_v24  ;;  %5885 = vmatprep.subr.mxu1 %v6030_v24 }
 0x61d   :  { %5873 = vmatpush3.msra.mxu0 %v4478_v43  ;;  %5886 = vmatpush3.msra.mxu1 %v5032_v57 }
 0x61e   :  { %5874 = vmatprep.subr.mxu0 %v6030_v24  ;;  %5901 = vmatprep.subr.mxu1 %v6030_v24 }
 0x61f   :  { %5875 = vmatpush3.msra.mxu0 %v4477_v29 }
 0x620   :  { %5877 = vmatmul.mubr.msk.f32.vlgmr.msra.gmra.mxu0 %vm347_vm4, %v4481_v7  ;;  %5890 = vmatprep.subr.mxu0 %v6030_v24 }
 0x621   :  { %5891 = vmatpush3.msra.mxu0 %v4567_v44  ;;  %5898 = vmatprep.mubr.msk.f32.mxu0 %vm6031_vm6, %v6030_v24 }
 0x622   :  { %5892 = vmatprep.subr.mxu0 %v6030_v24 }
 0x623   :  { %5893 = vmatpush3.msra.mxu0 %v4566_v45 }
 0x624   :  { %5894 = vmatprep.subr.mxu0 %v6030_v24 }
 0x625   :  { %5895 = vmatpush3.msra.mxu0 %v4565_v15 }
 0x626   :  { %5896 = vmatprep.subr.mxu0 %v6030_v24 }
 0x627   :  { %5897 = vmatpush3.msra.mxu0 %v4564_v48 }
 0x628   :  { %5899 = vmatmul.mubr.msk.f32.vlgmr.msra.gmra.mxu0 %vm347_vm4, %v2323_v50  ;;  %5936 = vmatprep.subr.mxu0 %v6030_v24 }
 0x629   :  { %5968 = vmatprep.mubr.msk.f32.mxu0 %vm6031_vm6, %v6030_v24 }
 0x677   :  { %v2899_v54 = vpop.f32.mrf.mxu0  ;;  %v3049_v58 = vpop.f32.mrf.mxu1 }
 0x679   :  { %v5647_v60 = vpop.f32.mrf.mxu0  ;;  %v5669_v1 = vpop.f32.mrf.mxu1 }
 0x680   :  { %v2971_v61 = vpop.f32.mrf.mxu0 }
 0x681   :  { %v2972_v63 = vadd.f32 %v2971_v61, %v2899_v54  ;;  %v3207_v0 = vpop.f32.mrf.mxu1  ;;  %v5031_v54 = vld [vmem:[%s7094_s10 + $0x1] ss:$0 sm:$0xff]  ;;  %v4743_v61 = vld [vmem:[%s7097_s13 + $0x78] sm:$0xff] }
 0x682   :  { %v5658_v2 = vpop.f32.mrf.mxu0 }
 0x683   :  { %v5691_v23 = vpop.f32.mrf.mxu1  ;;  %v3053_v3 = vadd.f32 %v3049_v58, %v2972_v63  ;;  %v4742_v63 = vld [vmem:[%s7097_s13 + $0x70] sm:$0xff] }
 0x684   :  { %v4740_v23 = vld [vmem:[%s7097_s13 + $0x60] sm:$0xff] }
 0x68a   :  { %v3128_v4 = vpop.f32.mrf.mxu0 }
 0x68b   :  { %v3365_v5 = vpop.f32.mrf.mxu1  ;;  %v3132_v21 = vadd.f32 %v3128_v4, %v3053_v3  ;;  %v4739_v4 = vld [vmem:[%s7097_s13 + $0x58] sm:$0xff] }
 0x68c   :  { %v5680_v6 = vpop.f32.mrf.mxu0 }
 0x68d   :  { %v5713_v9 = vpop.f32.mrf.mxu1  ;;  %v3211_v22 = vadd.f32 %v3207_v0, %v3132_v21  ;;  %v4741_v0 = vld [vmem:[%s7097_s13 + $0x68] sm:$0xff]  ;;  %v4833_v21 = vld [vmem:[%s7099_s15 + $0x58] sm:$0xff] }
 0x68e   :  { %v4737_v6 = vld [vmem:[%s7097_s13 + $0x48] sm:$0xff]  ;;  %v4736_v9 = vld [vmem:[%s7097_s13 + $0x40] sm:$0xff] }
 0x694   :  { %v3286_v52 = vpop.f32.mrf.mxu0 }
 0x695   :  { %v3523_v10 = vpop.f32.mrf.mxu1  ;;  %v3290_v25 = vadd.f32 %v3286_v52, %v3211_v22  ;;  %v4735_v52 = vld [vmem:[%s7097_s13 + $0x38] sm:$0xff]  ;;  %v4832_v22 = vld [vmem:[%s7099_s15 + $0x50] sm:$0xff] }
 0x696   :  { %v5702_v11 = vpop.f32.mrf.mxu0 }
 0x697   :  { %v5735_v62 = vpop.f32.mrf.mxu1  ;;  %v3369_v34 = vadd.f32 %v3365_v5, %v3290_v25  ;;  %v4738_v5 = vld [vmem:[%s7097_s13 + $0x50] sm:$0xff]  ;;  %v4733_v11 = vld [vmem:[%s7097_s13 + $0x28] sm:$0xff] }
 0x698   :  { %v4732_v62 = vld [vmem:[%s7097_s13 + $0x20] sm:$0xff]  ;;  %v4831_v25 = vld [vmem:[%s7099_s15 + $0x48] sm:$0xff] }
 0x69e   :  { %v3444_v55 = vpop.f32.mrf.mxu0 }
 0x69f   :  { %v3681_v14 = vpop.f32.mrf.mxu1  ;;  %v3448_v56 = vadd.f32 %v3444_v55, %v3369_v34  ;;  %v4731_v55 = vld [vmem:[%s7097_s13 + $0x18] sm:$0xff]  ;;  %v4826_v34 = vld [vmem:[%s7099_s15 + $0x20] sm:$0xff] }
 0x6a0   :  { %v5724_v16 = vpop.f32.mrf.mxu0 }
 0x6a1   :  { %v5757_v32 = vpop.f32.mrf.mxu1  ;;  %v3527_v36 = vadd.f32 %v3523_v10, %v3448_v56  ;;  %v4734_v10 = vld [vmem:[%s7097_s13 + $0x30] sm:$0xff]  ;;  %v4729_v16 = vld [vmem:[%s7097_s13 + $0x8] sm:$0xff]  ;;  %v4825_v56 = vld [vmem:[%s7099_s15 + $0x18] sm:$0xff] }
 0x6a2   :  { %v4728_v32 = vld [vmem:[%s7097_s13] sm:$0xff] }
 0x6a8   :  { %v3602_v47 = vpop.f32.mrf.mxu0 }
 0x6a9   :  { %v3839_v17 = vpop.f32.mrf.mxu1  ;;  %v3606_v8 = vadd.f32 %v3602_v47, %v3527_v36  ;;  %v4837_v47 = vld [vmem:[%s7099_s15 + $0x78] sm:$0xff] }
 0x6aa   :  { %v5746_v19 = vpop.f32.mrf.mxu0  ;;  %5937 = vmatpush3.msra.mxu0 %v4837_v47 }
 0x6ab   :  { %v5779_v26 = vpop.f32.mrf.mxu1  ;;  %v3685_v18 = vadd.f32 %v3681_v14, %v3606_v8  ;;  %v4730_v14 = vld [vmem:[%s7097_s13 + $0x10] sm:$0xff]  ;;  %5938 = vmatprep.subr.mxu0 %v6030_v24  ;;  %v4835_v19 = vld [vmem:[%s7099_s15 + $0x68] sm:$0xff] }
 0x6ac   :  { %v4834_v26 = vld [vmem:[%s7099_s15 + $0x60] sm:$0xff] }
 0x6b2   :  { %v3760_v27 = vpop.f32.mrf.mxu0 }
 0x6b3   :  { %v3997_v28 = vpop.f32.mrf.mxu1  ;;  %v3764_v35 = vadd.f32 %v3760_v27, %v3685_v18  ;;  %v4830_v27 = vld [vmem:[%s7099_s15 + $0x40] sm:$0xff]  ;;  %v4824_v18 = vld [vmem:[%s7099_s15 + $0x10] sm:$0xff] }
 0x6b4   :  { %v5768_v30 = vpop.f32.mrf.mxu0 }
 0x6b5   :  { %v5801_v31 = vpop.f32.mrf.mxu1  ;;  %v3843_v59 = vadd.f32 %v3839_v17, %v3764_v35  ;;  %v4836_v17 = vld [vmem:[%s7099_s15 + $0x70] sm:$0xff]  ;;  %v4823_v35 = vld [vmem:[%s7099_s15 + $0x8] sm:$0xff] }
 0x6b6   :  { %5939 = vmatpush3.msra.mxu0 %v4836_v17  ;;  %v4828_v30 = vld [vmem:[%s7099_s15 + $0x30] sm:$0xff]  ;;  %v4827_v31 = vld [vmem:[%s7099_s15 + $0x28] sm:$0xff] }
 0x6b7   :  { %5940 = vmatprep.subr.mxu0 %v6030_v24 }
 0x6b8   :  { %5941 = vmatpush3.msra.mxu0 %v4835_v19 }
 0x6b9   :  { %5942 = vmatprep.subr.mxu0 %v6030_v24 }
 0x6ba   :  { %5943 = vmatpush3.msra.mxu0 %v4834_v26 }
 0x6bb   :  { %5944 = vmatprep.subr.mxu0 %v6030_v24 }
 0x6bc   :  { %v3918_v37 = vpop.f32.mrf.mxu0  ;;  %5945 = vmatpush3.msra.mxu0 %v4833_v21 }
 0x6bd   :  { %v4155_v38 = vpop.f32.mrf.mxu1  ;;  %v3922_v41 = vadd.f32 %v3918_v37, %v3843_v59  ;;  %5946 = vmatprep.subr.mxu0 %v6030_v24  ;;  %v5038_v37 = vld [vmem:[%s7096_s12] ss:$0 sm:$0xff] }
 0x6be   :  { %v5790_v20 = vpop.f32.mrf.mxu0  ;;  %5947 = vmatpush3.msra.mxu0 %v4832_v22 }
 0x6bf   :  { %v5823_v49 = vpop.f32.mrf.mxu1  ;;  %v4001_v42 = vadd.f32 %v3997_v28, %v3922_v41  ;;  %5948 = vmatprep.subr.mxu0 %v6030_v24  ;;  %v4829_v28 = vld [vmem:[%s7099_s15 + $0x38] sm:$0xff] }
 0x6c0   :  { %5949 = vmatpush3.msra.mxu0 %v4831_v25 }
 0x6c1   :  { %5950 = vmatprep.subr.mxu0 %v6030_v24 }
 0x6c2   :  { %5951 = vmatpush3.msra.mxu0 %v4830_v27 }
 0x6c3   :  { %5952 = vmatprep.subr.mxu0 %v6030_v24 }
 0x6c4   :  { %5953 = vmatpush3.msra.mxu0 %v4829_v28 }
 0x6c5   :  { %5954 = vmatprep.subr.mxu0 %v6030_v24 }
 0x6c6   :  { %v4076_v39 = vpop.f32.mrf.mxu0  ;;  %5955 = vmatpush3.msra.mxu0 %v4828_v30 }
 0x6c7   :  { %v4313_v40 = vpop.f32.mrf.mxu1  ;;  %v4080_v43 = vadd.f32 %v4076_v39, %v4001_v42  ;;  %5956 = vmatprep.subr.mxu0 %v6030_v24  ;;  %v4822_v39 = vld [vmem:[%s7099_s15] sm:$0xff]  ;;  %s6001_s15 = scalar_lea.vmem %s4924_s9, 32 }
 0x6c8   :  { %v5812_v12 = vpop.f32.mrf.mxu0  ;;  %5957 = vmatpush3.msra.mxu0 %v4827_v31  ;;  %v5040_v42 = vld [vmem:[%s7100_s16] ss:$0 sm:$0xff]  ;;  %p6002_p5 = scmp.ne.s32.totalorder %s4924_s9, %s6001_s15  ;;  %p6007_p7 = scmp.lt.s32.totalorder %s6001_s15, %s6001_s15 }
 0x6c9   :  { %v5845_v13 = vpop.f32.mrf.mxu1  ;;  %v4159_v15 = vadd.f32 %v4155_v38, %v4080_v43  ;;  %5958 = vmatprep.subr.mxu0 %v6030_v24 }
 0x6ca   :  { %5959 = vmatpush3.msra.mxu0 %v4826_v34  ;;  %p6008_p8 = por %p6007_p7, %p6006_p6 }
 0x6cb   :  { %5960 = vmatprep.subr.mxu0 %v6030_v24 }
 0x6cc   :  { %5961 = vmatpush3.msra.mxu0 %v4825_v56  ;;  %p6009_p9 = pnand %p6008_p8, %p6002_p5 }
 0x6cd   :  { %5962 = vmatprep.subr.mxu0 %v6030_v24 }
 0x6ce   :  { %5963 = vmatpush3.msra.mxu0 %v4824_v18 }
 0x6cf   :  { %5964 = vmatprep.subr.mxu0 %v6030_v24 }
 0x6d0   :  { %v4234_v29 = vpop.f32.mrf.mxu0  ;;  %5965 = vmatpush3.msra.mxu0 %v4823_v35 }
 0x6d1   :  { %v4471_v7 = vpop.f32.mrf.mxu1  ;;  %v4238_v46 = vadd.f32 %v4234_v29, %v4159_v15  ;;  %5966 = vmatprep.subr.mxu0 %v6030_v24 }
 0x6d2   :  { %v5834_v44 = vpop.f32.mrf.mxu0  ;;  %5967 = vmatpush3.msra.mxu0 %v4822_v39 }
 0x6d3   :  { %v5867_v45 = vpop.f32.mrf.mxu1  ;;  %v4317_v50 = vadd.f32 %v4313_v40, %v4238_v46  ;;  %v5039_v40 = vld [vmem:[%s7098_s14] ss:$0 sm:$0xff] }
 0x6d8   :  { %v4392_v48 = vpop.f32.mrf.mxu0 }
 0x6d9   :  { %v4396_v33 = vadd.f32 %v4392_v48, %v4317_v50 }
 0x6da   :  { %v5856_v51 = vpop.f32.mrf.mxu0 }
 0x6db   :  { %v4475_v53 = vadd.f32 %v4471_v7, %v4396_v33 }
 0x6e0   :  { %v4550_v57 = vpop.f32.mrf.mxu0 }
 0x6e1   :  { %v4554_v58 = vadd.f32 %v4550_v57, %v4475_v53 }
 0x6e2   :  { %v5878_v60 = vpop.f32.mrf.mxu0 }
 0x6e3   :  { %v4563_v1 = vadd.f32 %v5031_v54, %v4554_v58 }
 0x6e5   :  { %5888 = vmatmul.mubr.msk.f32.vlgmr.msra.gmra.mxu1 %vm347_vm4, %v4563_v1 }
 0x6e6   :  { %5902 = vmatpush3.msra.mxu1 %v4743_v61  ;;  %5933 = vmatprep.mubr.msk.f32.mxu1 %vm6031_vm6, %v6030_v24 }
 0x6e7   :  { %5903 = vmatprep.subr.mxu1 %v6030_v24 }
 0x6e8   :  { %v6953_v2 = vpop.f32.mrf.mxu0  ;;  %5904 = vmatpush3.msra.mxu1 %v4742_v63 }
 0x6e9   :  { %5905 = vmatprep.subr.mxu1 %v6030_v24 }
 0x6ea   :  { %v5900_v3 = vpop.f32.mrf.mxu0  ;;  %5906 = vmatpush3.msra.mxu1 %v4741_v0 }
 0x6eb   :  { %5907 = vmatprep.subr.mxu1 %v6030_v24 }
 0x6ec   :  { %5908 = vmatpush3.msra.mxu1 %v4740_v23 }
 0x6ed   :  { %5909 = vmatprep.subr.mxu1 %v6030_v24 }
 0x6ee   :  { %5910 = vmatpush3.msra.mxu1 %v4739_v4 }
 0x6ef   :  { %5911 = vmatprep.subr.mxu1 %v6030_v24 }
 0x6f0   :  { %5912 = vmatpush3.msra.mxu1 %v4738_v5 }
 0x6f1   :  { %5913 = vmatprep.subr.mxu1 %v6030_v24 }
 0x6f2   :  { %5914 = vmatpush3.msra.mxu1 %v4737_v6 }
 0x6f3   :  { %5915 = vmatprep.subr.mxu1 %v6030_v24 }
 0x6f4   :  { %5916 = vmatpush3.msra.mxu1 %v4736_v9 }
 0x6f5   :  { %5917 = vmatprep.subr.mxu1 %v6030_v24 }
 0x6f6   :  { %5918 = vmatpush3.msra.mxu1 %v4735_v52 }
 0x6f7   :  { %5919 = vmatprep.subr.mxu1 %v6030_v24 }
 0x6f8   :  { %5920 = vmatpush3.msra.mxu1 %v4734_v10 }
 0x6f9   :  { %5921 = vmatprep.subr.mxu1 %v6030_v24 }
 0x6fa   :  { %5922 = vmatpush3.msra.mxu1 %v4733_v11 }
 0x6fb   :  { %5923 = vmatprep.subr.mxu1 %v6030_v24 }
 0x6fc   :  { %5924 = vmatpush3.msra.mxu1 %v4732_v62 }
 0x6fd   :  { %5925 = vmatprep.subr.mxu1 %v6030_v24 }
 0x6fe   :  { %5926 = vmatpush3.msra.mxu1 %v4731_v55 }
 0x6ff   :  { %5927 = vmatprep.subr.mxu1 %v6030_v24 }
 0x700   :  { %5928 = vmatpush3.msra.mxu1 %v4730_v14 }
 0x701   :  { %5929 = vmatprep.subr.mxu1 %v6030_v24 }
 0x702   :  { %5930 = vmatpush3.msra.mxu1 %v4729_v16 }
 0x703   :  { %5931 = vmatprep.subr.mxu1 %v6030_v24 }
 0x704   :  { %5932 = vmatpush3.msra.mxu1 %v4728_v32 }
 0x7a5   :  { %v4642_v36 = vpop.f32.mrf.mxu1 }
 0x7a6   :  { %v4716_v38 = vadd.f32 %v6953_v2, %v4642_v36 }
 0x7a7   :  { %v5889_v8 = vpop.f32.mrf.mxu1 }
 0x7a8   :  { %v4726_v20 = vadd.f32 %v5038_v37, %v4716_v38 }
 0x7aa   :  { %v4727_v49 = vmax.f32 %v4726_v20, 0.0 }
 0x7ac   :  { %5934 = vmatmul.mubr.f32.vlgmr.msra.gmra.mxu1 %v4727_v49 }
 0x86c   :  { %v4817_v59 = vpop.f32.mrf.mxu1 }
 0x86d   :  { %v4818_v12 = vadd.f32 %v5039_v40, %v4817_v59 }
 0x86e   :  { %v5935_v13 = vpop.f32.mrf.mxu1 }
 0x86f   :  { %v4821_v41 = vmax.f32 %v4818_v12, 0.0 }
 0x871   :  { %5969 = vmatmul.mubr.f32.vlgmr.msra.gmra.mxu0 %v4821_v41 }
 0x931   :  { %v4911_v24 = vpop.f32.mrf.mxu0 }
 0x932   :  { %v4912_v43 = vadd.f32 %v5040_v42, %v4911_v24 }
 0x933   :  { %v5970_v29 = vpop.f32.mrf.mxu0 }
 0x934   :  { %4916 = vst.msk [vmem:[#allocation5] sm:$0x3] %vm4915_vm8, %v4912_v43 }
 0x935   :  { %6012 = shalt.err (!%p6009_p9)
}
 0x936   :  { %4926 = dma.vmem_to_hbm [thread:$0]  %s4924_s9, 32, %s7101_s17, [#allocation4]  }
 0x937   :  { %6023 = dma.done.wait [#allocation4], 32  }
 0x938   :  { %6024 = vsyncadd [#allocation4], 4294967264 }
 0x939   :  { %4930 = vsyncpa [#allocation3], 1 }
 0x93a   :  { %4931 = vsyncpa [#allocation4], 1 }

</bundles_post_ra>
